<compile_context>
chip_gen: v5e
topology: v5e:2x2
jax: 0.10.0
libtpu: 0.0.40
codegen_flags: <defaults>
</compile_context>

<pallas_src>
import functools

import jax
import jax.numpy as jnp
from jax import lax
from jax.experimental import pallas as pl
from jax.experimental.pallas import tpu as pltpu

LN_EPS = 1e-5
NEG_INF = -1e9


# ----------------------------------------------------------------------------
# Tile helper
# ----------------------------------------------------------------------------
def _row_tile(m, cap=512):
    """Largest multiple-of-8 row tile that divides m (<= cap); prefer >=2 blocks."""
    if m % 8 != 0:
        return m                      # single full-extent block (allowed)
    if m >= 16:
        cap = min(cap, max(8, (m // 2) // 8 * 8))
    t = max(8, (min(m, cap) // 8) * 8)
    while m % t:
        t -= 8
    return t


# ----------------------------------------------------------------------------
# Kernel 1: fused multi-output projection  (q/k/v, cross k/v, cross q)
# ----------------------------------------------------------------------------
def _proj_kernel(x_ref, w_ref, *o_refs):
    x = x_ref[...]                                        # (TM, K)
    for i, o in enumerate(o_refs):
        o[...] = jnp.dot(x, w_ref[i],
                         preferred_element_type=jnp.float32).astype(o.dtype)


def multi_proj(x, w):
    """x:(M,K) f32, w:(n,K,N) f32 -> tuple of n (M,N) outputs, one kernel launch."""
    M, K = x.shape
    n, _, N = w.shape
    TM = _row_tile(M)
    return pl.pallas_call(
        _proj_kernel,
        out_shape=tuple(jax.ShapeDtypeStruct((M, N), jnp.float32) for _ in range(n)),
        grid=(M // TM,),
        in_specs=[pl.BlockSpec((TM, K), lambda i: (i, 0)),
                  pl.BlockSpec((n, K, N), lambda i: (0, 0, 0))],
        out_specs=tuple(pl.BlockSpec((TM, N), lambda i: (i, 0)) for _ in range(n)),
        compiler_params=pltpu.CompilerParams(dimension_semantics=("parallel",)),
    )(x, w)


# ----------------------------------------------------------------------------
# Kernel 2: attention + out-projection + residual + LayerNorm (per batch elem)
# ----------------------------------------------------------------------------
def _attn_block_kernel(q_ref, k_ref, v_ref, padq_ref, wo_ref, r_ref, g_ref, b_ref,
                       o_ref, *, scale, causal):
    H, L, Dh = q_ref.shape[1], q_ref.shape[2], q_ref.shape[3]
    q = q_ref[0]                                          # (H, L, Dh)
    k = k_ref[0]
    v = v_ref[0]

    # scores per head (contract over head_dim)
    s = jnp.einsum('hid,hjd->hij', q, k, preferred_element_type=jnp.float32)

    # query-axis pad mask (reference _get_pad_mask broadcasting), built from (L,1)
    mask = jnp.broadcast_to(padq_ref[0] > 0.5, (L, L))
    if causal:
        # reference quirk: lower triangle (tril) OR-ed in, cross-attention only
        row = lax.broadcasted_iota(jnp.int32, (L, L), 0)
        col = lax.broadcasted_iota(jnp.int32, (L, L), 1)
        mask = jnp.logical_or(mask, col <= row)

    s = jnp.where(mask[None, :, :], NEG_INF, s)           # masked_fill BEFORE scaling
    s = s / scale
    mx = jnp.max(s, axis=-1, keepdims=True)
    e = jnp.exp(s - mx)
    p = e / jnp.sum(e, axis=-1, keepdims=True)
    ctx = jnp.einsum('hij,hjd->hid', p, v)                # (H, L, Dh)

    # out-projection: einops 'b n i d -> b i (n d)' followed by Wo is exactly
    # sum_h ctx[h] @ Wo[h*Dh:(h+1)*Dh, :]  -> per-head matmul accumulation,
    # so no transpose / HBM permute is ever needed.
    out = jnp.dot(ctx[0], wo_ref[0], preferred_element_type=jnp.float32)
    for h in range(1, H):
        out = out + jnp.dot(ctx[h], wo_ref[h], preferred_element_type=jnp.float32)

    # residual add + LayerNorm epilogue (f32 statistics)
    sres = r_ref[0] + out                                 # (L, D)
    mu = jnp.mean(sres, axis=-1, keepdims=True)
    d = sres - mu
    var = jnp.mean(d * d, axis=-1, keepdims=True)
    o_ref[0] = (d * lax.rsqrt(var + LN_EPS) * g_ref[...] + b_ref[...]).astype(o_ref.dtype)


def attn_block(q, k, v, padq, wo, resid, g, b, *, causal):
    """q,k,v:(B,H,L,Dh); padq:(B,L,1); wo:(H,Dh,D); resid:(B,L,D) -> (B,L,D)."""
    B, H, L, Dh = q.shape
    D = H * Dh
    kern = functools.partial(_attn_block_kernel, scale=float(Dh) ** 0.5, causal=causal)
    qspec = pl.BlockSpec((1, H, L, Dh), lambda i: (i, 0, 0, 0))
    return pl.pallas_call(
        kern,
        out_shape=jax.ShapeDtypeStruct((B, L, D), jnp.float32),
        grid=(B,),
        in_specs=[qspec, qspec, qspec,
                  pl.BlockSpec((1, L, 1), lambda i: (i, 0, 0)),
                  pl.BlockSpec((H, Dh, D), lambda i: (0, 0, 0)),
                  pl.BlockSpec((1, L, D), lambda i: (i, 0, 0)),
                  pl.BlockSpec((1, D), lambda i: (0, 0)),
                  pl.BlockSpec((1, D), lambda i: (0, 0))],
        out_specs=pl.BlockSpec((1, L, D), lambda i: (i, 0, 0)),
        compiler_params=pltpu.CompilerParams(dimension_semantics=("parallel",)),
    )(q, k, v, padq, wo, resid, g, b)


# ----------------------------------------------------------------------------
# Kernel 3: fused FFN (w1 + ReLU + w2) + residual + LayerNorm
# ----------------------------------------------------------------------------
def _ffn_block_kernel(x_ref, w1_ref, b1_ref, w2_ref, b2_ref, g_ref, b_ref, o_ref):
    x = x_ref[...]                                        # (TM, D)
    h = jnp.dot(x, w1_ref[...], preferred_element_type=jnp.float32) + b1_ref[...]
    h = jnp.maximum(h, 0.0)
    y = jnp.dot(h, w2_ref[...], preferred_element_type=jnp.float32) + b2_ref[...]
    s = x + y
    mu = jnp.mean(s, axis=-1, keepdims=True)
    d = s - mu
    var = jnp.mean(d * d, axis=-1, keepdims=True)
    o_ref[...] = (d * lax.rsqrt(var + LN_EPS) * g_ref[...] + b_ref[...]).astype(o_ref.dtype)


def ffn_block(x, w1, b1, w2, b2, g, b):
    M, D = x.shape
    F = w1.shape[1]
    TM = _row_tile(M)
    return pl.pallas_call(
        _ffn_block_kernel,
        out_shape=jax.ShapeDtypeStruct((M, D), jnp.float32),
        grid=(M // TM,),
        in_specs=[pl.BlockSpec((TM, D), lambda i: (i, 0)),
                  pl.BlockSpec((D, F), lambda i: (0, 0)),
                  pl.BlockSpec((1, F), lambda i: (0, 0)),
                  pl.BlockSpec((F, D), lambda i: (0, 0)),
                  pl.BlockSpec((1, D), lambda i: (0, 0)),
                  pl.BlockSpec((1, D), lambda i: (0, 0)),
                  pl.BlockSpec((1, D), lambda i: (0, 0))],
        out_specs=pl.BlockSpec((TM, D), lambda i: (i, 0)),
        compiler_params=pltpu.CompilerParams(dimension_semantics=("parallel",)),
    )(x, w1, b1, w2, b2, g, b)


# ----------------------------------------------------------------------------
# Kernel 4: tied-embedding output projection + softmax (no embed.T, no logits HBM)
# ----------------------------------------------------------------------------
def _vocab_softmax_kernel(x_ref, w_ref, b_ref, o_ref):
    # logits = x @ embed.T + bias, contracting over the feature dim directly
    logits = lax.dot_general(x_ref[...], w_ref[...], (((1,), (1,)), ((), ())),
                             preferred_element_type=jnp.float32) + b_ref[...]
    mx = jnp.max(logits, axis=-1, keepdims=True)
    e = jnp.exp(logits - mx)
    o_ref[...] = (e / jnp.sum(e, axis=-1, keepdims=True)).astype(o_ref.dtype)


def vocab_softmax(x, embed_w, bias):
    # TODO(synk): for very large vocab, tile the vocab axis (2-pass softmax) so the
    # weight block fits v7x's 64 MiB VMEM; the full-vocab block is fine at this size.
    M, D = x.shape
    V = embed_w.shape[0]
    TM = _row_tile(M)
    return pl.pallas_call(
        _vocab_softmax_kernel,
        out_shape=jax.ShapeDtypeStruct((M, V), jnp.float32),
        grid=(M // TM,),
        in_specs=[pl.BlockSpec((TM, D), lambda i: (i, 0)),
                  pl.BlockSpec((V, D), lambda i: (0, 0)),
                  pl.BlockSpec((1, V), lambda i: (0, 0))],
        out_specs=pl.BlockSpec((TM, V), lambda i: (i, 0)),
        compiler_params=pltpu.CompilerParams(dimension_semantics=("parallel",)),
    )(x, embed_w, bias)


# ----------------------------------------------------------------------------
# Model glue (parameters, embedding, positional encoding)
# ----------------------------------------------------------------------------
def pos_enc_mat(max_len, dim):
    pos = jnp.arange(max_len, dtype=jnp.float32)[:, None]
    i = jnp.arange(dim // 2, dtype=jnp.float32)[None, :]
    angle = pos / jnp.power(10000.0, 2.0 * i / dim)
    pe = jnp.zeros((max_len, dim), jnp.float32)
    pe = pe.at[:, 0::2].set(jnp.sin(angle))
    pe = pe.at[:, 1::2].set(jnp.cos(angle))
    return pe


def init_params(key, vocab, dim, mlp_dim, n_layers, n_heads, pad_id=0):
    head_dim = dim // n_heads
    ks = iter(jax.random.split(key, 1024))

    def nrm(shape):
        return jax.random.normal(next(ks), shape, jnp.float32) * 0.02

    embed = nrm((vocab, dim)).at[pad_id].set(0.0)          # padding_idx row zeroed

    def ln_p():
        return {"g": jnp.ones((1, dim), jnp.float32),
                "b": jnp.zeros((1, dim), jnp.float32)}

    def ff_p():
        return {"w1": nrm((dim, mlp_dim)), "b1": nrm((1, mlp_dim)),
                "w2": nrm((mlp_dim, dim)), "b2": nrm((1, dim))}

    def enc_layer():
        return {"w_qkv": nrm((3, dim, dim)),                 # stacked q|k|v (no bias)
                "wo": nrm((n_heads, head_dim, dim)),         # out-proj, per-head slabs
                "ln1": ln_p(), "ff": ff_p(), "ln2": ln_p()}

    def dec_layer():
        return {"w_qkv": nrm((3, dim, dim)),
                "wo_self": nrm((n_heads, head_dim, dim)),
                "ln1": ln_p(),
                "wq_cross": nrm((1, dim, dim)),
                "w_kv_cross": nrm((2, dim, dim)),
                "wo_cross": nrm((n_heads, head_dim, dim)),
                "ln2": ln_p(), "ff": ff_p(), "ln3": ln_p()}

    enc = [enc_layer() for _ in range(n_layers)]
    dec = [dec_layer() for _ in range(n_layers)]
    out_b = nrm((1, vocab))
    return {"embed": embed, "enc": enc, "dec": dec, "out_b": out_b}


def input_embed(tokens, embed_w, pe):
    dim = embed_w.shape[1]
    # TODO(synk): embedding gather + positional-encoding add stay in JAX glue.
    x = jnp.take(embed_w, tokens, axis=0)                  # (B, L, dim)
    x = x * (dim ** 0.5)
    return x + pe[None, :tokens.shape[1], :]


# ----------------------------------------------------------------------------
# Forward pass
# ----------------------------------------------------------------------------
def transformer_forward(params, src_seq, trg_seq, pe, *, n_heads, pad_id=0):
    B, L = src_seq.shape
    vocab, dim = params["embed"].shape
    head_dim = dim // n_heads

    # query-axis pad indicators (B, L, 1); lower-tri mask is built in-kernel.
    src_padq = (src_seq == pad_id).astype(jnp.float32)[:, :, None]
    trg_padq = (trg_seq == pad_id).astype(jnp.float32)[:, :, None]

    def split_heads(t):
        # torch `.view(b, n_heads, l, head_dim)` — raw row-major reinterpret
        return t.reshape(B, n_heads, L, head_dim)

    # ---------------- Encoder ----------------
    x = input_embed(src_seq, params["embed"], pe)
    for lp in params["enc"]:
        q, k, v = multi_proj(x.reshape(B * L, dim), lp["w_qkv"])
        x = attn_block(split_heads(q), split_heads(k), split_heads(v),
                       src_padq, lp["wo"], x,
                       lp["ln1"]["g"], lp["ln1"]["b"], causal=False)
        x = ffn_block(x.reshape(B * L, dim),
                      lp["ff"]["w1"], lp["ff"]["b1"],
                      lp["ff"]["w2"], lp["ff"]["b2"],
                      lp["ln2"]["g"], lp["ln2"]["b"]).reshape(B, L, dim)
    enc_flat = x.reshape(B * L, dim)

    # ---------------- Decoder ----------------
    y = input_embed(trg_seq, params["embed"], pe)
    for lp in params["dec"]:
        # decoder self-attention (pad mask only, as in reference)
        q, k, v = multi_proj(y.reshape(B * L, dim), lp["w_qkv"])
        y = attn_block(split_heads(q), split_heads(k), split_heads(v),
                       trg_padq, lp["wo_self"], y,
                       lp["ln1"]["g"], lp["ln1"]["b"], causal=False)
        # cross-attention (pad mask OR lower-tri "subsequent" mask, as in reference)
        q = multi_proj(y.reshape(B * L, dim), lp["wq_cross"])[0]
        k, v = multi_proj(enc_flat, lp["w_kv_cross"])
        y = attn_block(split_heads(q), split_heads(k), split_heads(v),
                       trg_padq, lp["wo_cross"], y,
                       lp["ln2"]["g"], lp["ln2"]["b"], causal=True)
        # feed-forward
        y = ffn_block(y.reshape(B * L, dim),
                      lp["ff"]["w1"], lp["ff"]["b1"],
                      lp["ff"]["w2"], lp["ff"]["b2"],
                      lp["ln3"]["g"], lp["ln3"]["b"]).reshape(B, L, dim)

    # tied-embedding output projection + softmax (fused)
    probs = vocab_softmax(y.reshape(B * L, dim), params["embed"], params["out_b"])
    return probs.reshape(B, L, vocab)


# ----------------------------------------------------------------------------
if __name__ == "__main__":
    VOCAB = 128
    SEQ_LEN = 16
    DIM = 64
    N_HEADS = 4
    MLP_DIM = 128
    N_LAYERS = 2
    BATCH = 2
    PAD_ID = 0

    key = jax.random.PRNGKey(0)
    kp, ks, kt = jax.random.split(key, 3)

    params = init_params(kp, VOCAB, DIM, MLP_DIM, N_LAYERS, N_HEADS, pad_id=PAD_ID)
    pe = pos_enc_mat(SEQ_LEN, DIM)

    src_seq = jax.random.randint(ks, (BATCH, SEQ_LEN), 1, VOCAB, dtype=jnp.int32)
    trg_seq = jax.random.randint(kt, (BATCH, SEQ_LEN), 1, VOCAB, dtype=jnp.int32)
    # introduce some padding to exercise the pad masks
    src_seq = src_seq.at[:, -3:].set(PAD_ID)
    trg_seq = trg_seq.at[:, -2:].set(PAD_ID)

    fwd = jax.jit(functools.partial(transformer_forward, n_heads=N_HEADS, pad_id=PAD_ID))
    out = fwd(params, src_seq, trg_seq, pe)
    out = jax.block_until_ready(out)

    assert out.shape == (BATCH, SEQ_LEN, VOCAB)
    print("KERNEL_OK")
</pallas_src>

<mosaic_0001>
module attributes {stable_mosaic.version = 11 : i64} {
  func.func @_proj_kernel(%arg0: i32, %arg1: memref<16x64xf32, #tpu.memory_space<vmem>>, %arg2: memref<1x64x64xf32, #tpu.memory_space<vmem>>, %arg3: memref<16x64xf32, #tpu.memory_space<vmem>>) attributes {dimension_semantics = [#tpu.dimension_semantics<parallel>], iteration_bounds = array<i64: 2>, scalar_prefetch = 0 : i64, scratch_operands = 0 : i64, tpu.core_type = #tpu.core_type<tc>, window_params = [{transform_indices = @transform_0, window_bounds = array<i64: 16, 64>}, {pipeline_mode = #tpu.pipeline_mode<synchronous>, transform_indices = @transform_1, window_bounds = array<i64: 1, 64, 64>}, {transform_indices = @transform_2, window_bounds = array<i64: 16, 64>}]} {
    %c0 = arith.constant 0 : index
    %c0_0 = arith.constant 0 : index
    %0 = vector.load %arg1[%c0, %c0_0] : memref<16x64xf32, #tpu.memory_space<vmem>>, vector<16x64xf32>
    %c0_1 = arith.constant 0 : index
    %c0_2 = arith.constant 0 : index
    %c0_3 = arith.constant 0 : index
    %1 = vector.load %arg2[%c0_1, %c0_2, %c0_3] : memref<1x64x64xf32, #tpu.memory_space<vmem>>, vector<1x64x64xf32>
    %2 = vector.shape_cast %1 : vector<1x64x64xf32> to vector<64x64xf32>
    %cst = arith.constant dense<0.000000e+00> : vector<16x64xf32>
    %3 = tpu.matmul %0, %2, %cst {dimension_numbers = #tpu.dot_dimension_numbers<[1], [0], [0], [1], [0, 0, 1, 1], [], []>} : vector<16x64xf32>, vector<64x64xf32>, vector<16x64xf32> -> vector<16x64xf32>
    %c0_4 = arith.constant 0 : index
    %c0_5 = arith.constant 0 : index
    %4 = vector.load %arg3[%c0_4, %c0_5] : memref<16x64xf32, #tpu.memory_space<vmem>>, vector<16x64xf32>
    tpu.vector_store %arg3[%c0_4, %c0_5], %3 {strides = array<i32>} : memref<16x64xf32, #tpu.memory_space<vmem>>, vector<16x64xf32>,
    return
  }
  func.func @transform_0(%arg0: i32) -> (i32, i32) {
    %c0_i32 = arith.constant 0 : i32
    %c0_i32_0 = arith.constant 0 : i32
    return %arg0, %c0_i32 : i32, i32
  }
  func.func @transform_1(%arg0: i32) -> (i32, i32, i32) {
    %c0_i32 = arith.constant 0 : i32
    %c0_i32_0 = arith.constant 0 : i32
    %c0_i32_1 = arith.constant 0 : i32
    %c0_i32_2 = arith.constant 0 : i32
    return %c0_i32, %c0_i32_0, %c0_i32_1 : i32, i32, i32
  }
  func.func @transform_2(%arg0: i32) -> (i32, i32) {
    %c0_i32 = arith.constant 0 : i32
    %c0_i32_0 = arith.constant 0 : i32
    return %arg0, %c0_i32 : i32, i32
  }
}

module attributes {stable_mosaic.version = 11 : i64} {
  func.func @_proj_kernel(%arg0: i32, %arg1: memref<16x64xf32, #tpu.memory_space<vmem>>, %arg2: memref<3x64x64xf32, #tpu.memory_space<vmem>>, %arg3: memref<16x64xf32, #tpu.memory_space<vmem>>, %arg4: memref<16x64xf32, #tpu.memory_space<vmem>>, %arg5: memref<16x64xf32, #tpu.memory_space<vmem>>) attributes {dimension_semantics = [#tpu.dimension_semantics<parallel>], iteration_bounds = array<i64: 2>, scalar_prefetch = 0 : i64, scratch_operands = 0 : i64, tpu.core_type = #tpu.core_type<tc>, window_params = [{transform_indices = @transform_0, window_bounds = array<i64: 16, 64>}, {pipeline_mode = #tpu.pipeline_mode<synchronous>, transform_indices = @transform_1, window_bounds = array<i64: 3, 64, 64>}, {transform_indices = @transform_2, window_bounds = array<i64: 16, 64>}, {transform_indices = @transform_3, window_bounds = array<i64: 16, 64>}, {transform_indices = @transform_4, window_bounds = array<i64: 16, 64>}]} {
    %c0 = arith.constant 0 : index
    %c0_0 = arith.constant 0 : index
    %0 = vector.load %arg1[%c0, %c0_0] : memref<16x64xf32, #tpu.memory_space<vmem>>, vector<16x64xf32>
    %c0_1 = arith.constant 0 : index
    %c0_2 = arith.constant 0 : index
    %c0_3 = arith.constant 0 : index
    %1 = vector.load %arg2[%c0_1, %c0_2, %c0_3] : memref<3x64x64xf32, #tpu.memory_space<vmem>>, vector<1x64x64xf32>
    %2 = vector.shape_cast %1 : vector<1x64x64xf32> to vector<64x64xf32>
    %cst = arith.constant dense<0.000000e+00> : vector<16x64xf32>
    %3 = tpu.matmul %0, %2, %cst {dimension_numbers = #tpu.dot_dimension_numbers<[1], [0], [0], [1], [0, 0, 1, 1], [], []>} : vector<16x64xf32>, vector<64x64xf32>, vector<16x64xf32> -> vector<16x64xf32>
    %c0_4 = arith.constant 0 : index
    %c0_5 = arith.constant 0 : index
    %4 = vector.load %arg3[%c0_4, %c0_5] : memref<16x64xf32, #tpu.memory_space<vmem>>, vector<16x64xf32>
    tpu.vector_store %arg3[%c0_4, %c0_5], %3 {strides = array<i32>} : memref<16x64xf32, #tpu.memory_space<vmem>>, vector<16x64xf32>,
    %c1 = arith.constant 1 : index
    %c0_6 = arith.constant 0 : index
    %c0_7 = arith.constant 0 : index
    %5 = vector.load %arg2[%c1, %c0_6, %c0_7] : memref<3x64x64xf32, #tpu.memory_space<vmem>>, vector<1x64x64xf32>
    %6 = vector.shape_cast %5 : vector<1x64x64xf32> to vector<64x64xf32>
    %cst_8 = arith.constant dense<0.000000e+00> : vector<16x64xf32>
    %7 = tpu.matmul %0, %6, %cst_8 {dimension_numbers = #tpu.dot_dimension_numbers<[1], [0], [0], [1], [0, 0, 1, 1], [], []>} : vector<16x64xf32>, vector<64x64xf32>, vector<16x64xf32> -> vector<16x64xf32>
    %c0_9 = arith.constant 0 : index
    %c0_10 = arith.constant 0 : index
    %8 = vector.load %arg4[%c0_9, %c0_10] : memref<16x64xf32, #tpu.memory_space<vmem>>, vector<16x64xf32>
    tpu.vector_store %arg4[%c0_9, %c0_10], %7 {strides = array<i32>} : memref<16x64xf32, #tpu.memory_space<vmem>>, vector<16x64xf32>,
    %c2 = arith.constant 2 : index
    %c0_11 = arith.constant 0 : index
    %c0_12 = arith.constant 0 : index
    %9 = vector.load %arg2[%c2, %c0_11, %c0_12] : memref<3x64x64xf32, #tpu.memory_space<vmem>>, vector<1x64x64xf32>
    %10 = vector.shape_cast %9 : vector<1x64x64xf32> to vector<64x64xf32>
    %cst_13 = arith.constant dense<0.000000e+00> : vector<16x64xf32>
    %11 = tpu.matmul %0, %10, %cst_13 {dimension_numbers = #tpu.dot_dimension_numbers<[1], [0], [0], [1], [0, 0, 1, 1], [], []>} : vector<16x64xf32>, vector<64x64xf32>, vector<16x64xf32> -> vector<16x64xf32>
    %c0_14 = arith.constant 0 : index
    %c0_15 = arith.constant 0 : index
    %12 = vector.load %arg5[%c0_14, %c0_15] : memref<16x64xf32, #tpu.memory_space<vmem>>, vector<16x64xf32>
    tpu.vector_store %arg5[%c0_14, %c0_15], %11 {strides = array<i32>} : memref<16x64xf32, #tpu.memory_space<vmem>>, vector<16x64xf32>,
    return
  }
  func.func @transform_0(%arg0: i32) -> (i32, i32) {
    %c0_i32 = arith.constant 0 : i32
    %c0_i32_0 = arith.constant 0 : i32
    return %arg0, %c0_i32 : i32, i32
  }
  func.func @transform_1(%arg0: i32) -> (i32, i32, i32) {
    %c0_i32 = arith.constant 0 : i32
    %c0_i32_0 = arith.constant 0 : i32
    %c0_i32_1 = arith.constant 0 : i32
    %c0_i32_2 = arith.constant 0 : i32
    return %c0_i32, %c0_i32_0, %c0_i32_1 : i32, i32, i32
  }
  func.func @transform_2(%arg0: i32) -> (i32, i32) {
    %c0_i32 = arith.constant 0 : i32
    %c0_i32_0 = arith.constant 0 : i32
    return %arg0, %c0_i32 : i32, i32
  }
  func.func @transform_3(%arg0: i32) -> (i32, i32) {
    %c0_i32 = arith.constant 0 : i32
    %c0_i32_0 = arith.constant 0 : i32
    return %arg0, %c0_i32 : i32, i32
  }
  func.func @transform_4(%arg0: i32) -> (i32, i32) {
    %c0_i32 = arith.constant 0 : i32
    %c0_i32_0 = arith.constant 0 : i32
    return %arg0, %c0_i32 : i32, i32
  }
}

module attributes {stable_mosaic.version = 11 : i64} {
  func.func @_attn_block_kernel(%arg0: i32, %arg1: memref<1x4x16x16xf32, #tpu.memory_space<vmem>>, %arg2: memref<1x4x16x16xf32, #tpu.memory_space<vmem>>, %arg3: memref<1x4x16x16xf32, #tpu.memory_space<vmem>>, %arg4: memref<1x16x1xf32, #tpu.memory_space<vmem>>, %arg5: memref<4x16x64xf32, #tpu.memory_space<vmem>>, %arg6: memref<1x16x64xf32, #tpu.memory_space<vmem>>, %arg7: memref<1x64xf32, #tpu.memory_space<vmem>>, %arg8: memref<1x64xf32, #tpu.memory_space<vmem>>, %arg9: memref<1x16x64xf32, #tpu.memory_space<vmem>>) attributes {dimension_semantics = [#tpu.dimension_semantics<parallel>], iteration_bounds = array<i64: 2>, scalar_prefetch = 0 : i64, scratch_operands = 0 : i64, tpu.core_type = #tpu.core_type<tc>, window_params = [{transform_indices = @transform_0, window_bounds = array<i64: 1, 4, 16, 16>}, {transform_indices = @transform_1, window_bounds = array<i64: 1, 4, 16, 16>}, {transform_indices = @transform_2, window_bounds = array<i64: 1, 4, 16, 16>}, {transform_indices = @transform_3, window_bounds = array<i64: 1, 16, 1>}, {pipeline_mode = #tpu.pipeline_mode<synchronous>, transform_indices = @transform_4, window_bounds = array<i64: 4, 16, 64>}, {transform_indices = @transform_5, window_bounds = array<i64: 1, 16, 64>}, {pipeline_mode = #tpu.pipeline_mode<synchronous>, transform_indices = @transform_6, window_bounds = array<i64: 1, 64>}, {pipeline_mode = #tpu.pipeline_mode<synchronous>, transform_indices = @transform_7, window_bounds = array<i64: 1, 64>}, {transform_indices = @transform_8, window_bounds = array<i64: 1, 16, 64>}]} {
    %c0 = arith.constant 0 : index
    %c0_0 = arith.constant 0 : index
    %c0_1 = arith.constant 0 : index
    %c0_2 = arith.constant 0 : index
    %0 = vector.load %arg1[%c0, %c0_0, %c0_1, %c0_2] : memref<1x4x16x16xf32, #tpu.memory_space<vmem>>, vector<1x4x16x16xf32>
    %1 = vector.shape_cast %0 : vector<1x4x16x16xf32> to vector<4x16x16xf32>
    %c0_3 = arith.constant 0 : index
    %c0_4 = arith.constant 0 : index
    %c0_5 = arith.constant 0 : index
    %c0_6 = arith.constant 0 : index
    %2 = vector.load %arg2[%c0_3, %c0_4, %c0_5, %c0_6] : memref<1x4x16x16xf32, #tpu.memory_space<vmem>>, vector<1x4x16x16xf32>
    %3 = vector.shape_cast %2 : vector<1x4x16x16xf32> to vector<4x16x16xf32>
    %c0_7 = arith.constant 0 : index
    %c0_8 = arith.constant 0 : index
    %c0_9 = arith.constant 0 : index
    %c0_10 = arith.constant 0 : index
    %4 = vector.load %arg3[%c0_7, %c0_8, %c0_9, %c0_10] : memref<1x4x16x16xf32, #tpu.memory_space<vmem>>, vector<1x4x16x16xf32>
    %5 = vector.shape_cast %4 : vector<1x4x16x16xf32> to vector<4x16x16xf32>
    "tpu.trace_start"() <{level = 10 : i32, message = "hid,hjd->hij"}> : () -> ()
    %cst = arith.constant dense<0.000000e+00> : vector<4x16x16xf32>
    %6 = tpu.matmul %1, %3, %cst {dimension_numbers = #tpu.dot_dimension_numbers<[2], [2], [1], [1], [0, 0, 0, 1, 1, 1], [0], [0]>} : vector<4x16x16xf32>, vector<4x16x16xf32>, vector<4x16x16xf32> -> vector<4x16x16xf32>
    "tpu.trace_stop"() : () -> ()
    %c0_11 = arith.constant 0 : index
    %c0_12 = arith.constant 0 : index
    %c0_13 = arith.constant 0 : index
    %7 = vector.load %arg4[%c0_11, %c0_12, %c0_13] : memref<1x16x1xf32, #tpu.memory_space<vmem>>, vector<1x16x1xf32>
    %8 = vector.shape_cast %7 : vector<1x16x1xf32> to vector<16x1xf32>
    %cst_14 = arith.constant 5.000000e-01 : f32
    %9 = vector.broadcast %cst_14 : f32 to vector<16x1xf32>
    %10 = arith.cmpf ogt, %8, %9 : vector<16x1xf32>
    %11 = vector.shape_cast %10 : vector<16x1xi1> to vector<16x1xi1>
    %12 = vector.broadcast %11 : vector<16x1xi1> to vector<16x16xi1>
    %13 = vector.shape_cast %12 : vector<16x16xi1> to vector<1x16x16xi1>
    %cst_15 = arith.constant -1.000000e+09 : f32
    %14 = vector.shape_cast %13 : vector<1x16x16xi1> to vector<1x16x16xi1>
    %15 = vector.broadcast %14 : vector<1x16x16xi1> to vector<4x16x16xi1>
    %16 = vector.broadcast %cst_15 : f32 to vector<4x16x16xf32>
    %17 = arith.select %15, %16, %6 : vector<4x16x16xi1>, vector<4x16x16xf32>
    %cst_16 = arith.constant 4.000000e+00 : f32
    %18 = vector.broadcast %cst_16 : f32 to vector<4x16x16xf32>
    %19 = arith.divf %17, %18 : vector<4x16x16xf32>
    %cst_17 = arith.constant dense<0xFF800000> : vector<4x16xf32>
    %20 = vector.multi_reduction <maximumf>, %19, %cst_17 [2] : vector<4x16x16xf32> to vector<4x16xf32>
    %21 = vector.shape_cast %20 : vector<4x16xf32> to vector<4x16x1xf32>
    %22 = vector.broadcast %21 : vector<4x16x1xf32> to vector<4x16x16xf32>
    %23 = arith.subf %19, %22 : vector<4x16x16xf32>
    %24 = math.exp %23 : vector<4x16x16xf32>
    %cst_18 = arith.constant dense<0.000000e+00> : vector<4x16xf32>
    %25 = vector.multi_reduction <add>, %24, %cst_18 [2] : vector<4x16x16xf32> to vector<4x16xf32>
    %26 = vector.shape_cast %25 : vector<4x16xf32> to vector<4x16x1xf32>
    %27 = vector.broadcast %26 : vector<4x16x1xf32> to vector<4x16x16xf32>
    %28 = arith.divf %24, %27 : vector<4x16x16xf32>
    "tpu.trace_start"() <{level = 10 : i32, message = "hij,hjd->hid"}> : () -> ()
    %cst_19 = arith.constant dense<0.000000e+00> : vector<4x16x16xf32>
    %29 = tpu.matmul %28, %5, %cst_19 {dimension_numbers = #tpu.dot_dimension_numbers<[2], [1], [1], [2], [0, 0, 0, 1, 1, 2], [0], [0]>} : vector<4x16x16xf32>, vector<4x16x16xf32>, vector<4x16x16xf32> -> vector<4x16x16xf32>
    "tpu.trace_stop"() : () -> ()
    %30 = vector.extract_strided_slice %29 {offsets = [0, 0, 0], sizes = [1, 16, 16], strides = [1, 1, 1]} : vector<4x16x16xf32> to vector<1x16x16xf32>
    %31 = vector.shape_cast %30 : vector<1x16x16xf32> to vector<16x16xf32>
    %c0_20 = arith.constant 0 : index
    %c0_21 = arith.constant 0 : index
    %c0_22 = arith.constant 0 : index
    %32 = vector.load %arg5[%c0_20, %c0_21, %c0_22] : memref<4x16x64xf32, #tpu.memory_space<vmem>>, vector<1x16x64xf32>
    %33 = vector.shape_cast %32 : vector<1x16x64xf32> to vector<16x64xf32>
    %cst_23 = arith.constant dense<0.000000e+00> : vector<16x64xf32>
    %34 = tpu.matmul %31, %33, %cst_23 {dimension_numbers = #tpu.dot_dimension_numbers<[1], [0], [0], [1], [0, 0, 1, 1], [], []>} : vector<16x16xf32>, vector<16x64xf32>, vector<16x64xf32> -> vector<16x64xf32>
    %35 = vector.extract_strided_slice %29 {offsets = [1, 0, 0], sizes = [1, 16, 16], strides = [1, 1, 1]} : vector<4x16x16xf32> to vector<1x16x16xf32>
    %36 = vector.shape_cast %35 : vector<1x16x16xf32> to vector<16x16xf32>
    %c1 = arith.constant 1 : index
    %c0_24 = arith.constant 0 : index
    %c0_25 = arith.constant 0 : index
    %37 = vector.load %arg5[%c1, %c0_24, %c0_25] : memref<4x16x64xf32, #tpu.memory_space<vmem>>, vector<1x16x64xf32>
    %38 = vector.shape_cast %37 : vector<1x16x64xf32> to vector<16x64xf32>
    %cst_26 = arith.constant dense<0.000000e+00> : vector<16x64xf32>
    %39 = tpu.matmul %36, %38, %cst_26 {dimension_numbers = #tpu.dot_dimension_numbers<[1], [0], [0], [1], [0, 0, 1, 1], [], []>} : vector<16x16xf32>, vector<16x64xf32>, vector<16x64xf32> -> vector<16x64xf32>
    %40 = arith.addf %34, %39 : vector<16x64xf32>
    %41 = vector.extract_strided_slice %29 {offsets = [2, 0, 0], sizes = [1, 16, 16], strides = [1, 1, 1]} : vector<4x16x16xf32> to vector<1x16x16xf32>
    %42 = vector.shape_cast %41 : vector<1x16x16xf32> to vector<16x16xf32>
    %c2 = arith.constant 2 : index
    %c0_27 = arith.constant 0 : index
    %c0_28 = arith.constant 0 : index
    %43 = vector.load %arg5[%c2, %c0_27, %c0_28] : memref<4x16x64xf32, #tpu.memory_space<vmem>>, vector<1x16x64xf32>
    %44 = vector.shape_cast %43 : vector<1x16x64xf32> to vector<16x64xf32>
    %cst_29 = arith.constant dense<0.000000e+00> : vector<16x64xf32>
    %45 = tpu.matmul %42, %44, %cst_29 {dimension_numbers = #tpu.dot_dimension_numbers<[1], [0], [0], [1], [0, 0, 1, 1], [], []>} : vector<16x16xf32>, vector<16x64xf32>, vector<16x64xf32> -> vector<16x64xf32>
    %46 = arith.addf %40, %45 : vector<16x64xf32>
    %47 = vector.extract_strided_slice %29 {offsets = [3, 0, 0], sizes = [1, 16, 16], strides = [1, 1, 1]} : vector<4x16x16xf32> to vector<1x16x16xf32>
    %48 = vector.shape_cast %47 : vector<1x16x16xf32> to vector<16x16xf32>
    %c3 = arith.constant 3 : index
    %c0_30 = arith.constant 0 : index
    %c0_31 = arith.constant 0 : index
    %49 = vector.load %arg5[%c3, %c0_30, %c0_31] : memref<4x16x64xf32, #tpu.memory_space<vmem>>, vector<1x16x64xf32>
    %50 = vector.shape_cast %49 : vector<1x16x64xf32> to vector<16x64xf32>
    %cst_32 = arith.constant dense<0.000000e+00> : vector<16x64xf32>
    %51 = tpu.matmul %48, %50, %cst_32 {dimension_numbers = #tpu.dot_dimension_numbers<[1], [0], [0], [1], [0, 0, 1, 1], [], []>} : vector<16x16xf32>, vector<16x64xf32>, vector<16x64xf32> -> vector<16x64xf32>
    %52 = arith.addf %46, %51 : vector<16x64xf32>
    %c0_33 = arith.constant 0 : index
    %c0_34 = arith.constant 0 : index
    %c0_35 = arith.constant 0 : index
    %53 = vector.load %arg6[%c0_33, %c0_34, %c0_35] : memref<1x16x64xf32, #tpu.memory_space<vmem>>, vector<1x16x64xf32>
    %54 = vector.shape_cast %53 : vector<1x16x64xf32> to vector<16x64xf32>
    %55 = arith.addf %54, %52 : vector<16x64xf32>
    %cst_36 = arith.constant dense<0.000000e+00> : vector<16xf32>
    %56 = vector.multi_reduction <add>, %55, %cst_36 [1] : vector<16x64xf32> to vector<16xf32>
    %57 = vector.shape_cast %56 : vector<16xf32> to vector<16x1xf32>
    %cst_37 = arith.constant 6.400000e+01 : f32
    %58 = vector.broadcast %cst_37 : f32 to vector<16x1xf32>
    %59 = arith.divf %57, %58 : vector<16x1xf32>
    %60 = vector.broadcast %59 : vector<16x1xf32> to vector<16x64xf32>
    %61 = arith.subf %55, %60 : vector<16x64xf32>
    %62 = arith.mulf %61, %61 : vector<16x64xf32>
    %cst_38 = arith.constant dense<0.000000e+00> : vector<16xf32>
    %63 = vector.multi_reduction <add>, %62, %cst_38 [1] : vector<16x64xf32> to vector<16xf32>
    %64 = vector.shape_cast %63 : vector<16xf32> to vector<16x1xf32>
    %cst_39 = arith.constant 6.400000e+01 : f32
    %65 = vector.broadcast %cst_39 : f32 to vector<16x1xf32>
    %66 = arith.divf %64, %65 : vector<16x1xf32>
    %cst_40 = arith.constant 9.99999974E-6 : f32
    %67 = vector.broadcast %cst_40 : f32 to vector<16x1xf32>
    %68 = arith.addf %66, %67 : vector<16x1xf32>
    %69 = math.rsqrt %68 : vector<16x1xf32>
    %70 = vector.broadcast %69 : vector<16x1xf32> to vector<16x64xf32>
    %71 = arith.mulf %61, %70 : vector<16x64xf32>
    %c0_41 = arith.constant 0 : index
    %c0_42 = arith.constant 0 : index
    %72 = vector.load %arg7[%c0_41, %c0_42] : memref<1x64xf32, #tpu.memory_space<vmem>>, vector<1x64xf32>
    %73 = vector.broadcast %72 : vector<1x64xf32> to vector<16x64xf32>
    %74 = arith.mulf %71, %73 : vector<16x64xf32>
    %c0_43 = arith.constant 0 : index
    %c0_44 = arith.constant 0 : index
    %75 = vector.load %arg8[%c0_43, %c0_44] : memref<1x64xf32, #tpu.memory_space<vmem>>, vector<1x64xf32>
    %76 = vector.broadcast %75 : vector<1x64xf32> to vector<16x64xf32>
    %77 = arith.addf %74, %76 : vector<16x64xf32>
    %c0_45 = arith.constant 0 : index
    %c0_46 = arith.constant 0 : index
    %c0_47 = arith.constant 0 : index
    %78 = vector.load %arg9[%c0_45, %c0_46, %c0_47] : memref<1x16x64xf32, #tpu.memory_space<vmem>>, vector<1x16x64xf32>
    %79 = vector.shape_cast %78 : vector<1x16x64xf32> to vector<16x64xf32>
    %80 = vector.shape_cast %77 : vector<16x64xf32> to vector<1x16x64xf32>
    tpu.vector_store %arg9[%c0_45, %c0_46, %c0_47], %80 {strides = array<i32>} : memref<1x16x64xf32, #tpu.memory_space<vmem>>, vector<1x16x64xf32>,
    return
  }
  func.func @transform_0(%arg0: i32) -> (i32, i32, i32, i32) {
    %c0_i32 = arith.constant 0 : i32
    %c0_i32_0 = arith.constant 0 : i32
    %c0_i32_1 = arith.constant 0 : i32
    %c0_i32_2 = arith.constant 0 : i32
    return %arg0, %c0_i32, %c0_i32_0, %c0_i32_1 : i32, i32, i32, i32
  }
  func.func @transform_1(%arg0: i32) -> (i32, i32, i32, i32) {
    %c0_i32 = arith.constant 0 : i32
    %c0_i32_0 = arith.constant 0 : i32
    %c0_i32_1 = arith.constant 0 : i32
    %c0_i32_2 = arith.constant 0 : i32
    return %arg0, %c0_i32, %c0_i32_0, %c0_i32_1 : i32, i32, i32, i32
  }
  func.func @transform_2(%arg0: i32) -> (i32, i32, i32, i32) {
    %c0_i32 = arith.constant 0 : i32
    %c0_i32_0 = arith.constant 0 : i32
    %c0_i32_1 = arith.constant 0 : i32
    %c0_i32_2 = arith.constant 0 : i32
    return %arg0, %c0_i32, %c0_i32_0, %c0_i32_1 : i32, i32, i32, i32
  }
  func.func @transform_3(%arg0: i32) -> (i32, i32, i32) {
    %c0_i32 = arith.constant 0 : i32
    %c0_i32_0 = arith.constant 0 : i32
    %c0_i32_1 = arith.constant 0 : i32
    return %arg0, %c0_i32, %c0_i32_0 : i32, i32, i32
  }
  func.func @transform_4(%arg0: i32) -> (i32, i32, i32) {
    %c0_i32 = arith.constant 0 : i32
    %c0_i32_0 = arith.constant 0 : i32
    %c0_i32_1 = arith.constant 0 : i32
    %c0_i32_2 = arith.constant 0 : i32
    return %c0_i32, %c0_i32_0, %c0_i32_1 : i32, i32, i32
  }
  func.func @transform_5(%arg0: i32) -> (i32, i32, i32) {
    %c0_i32 = arith.constant 0 : i32
    %c0_i32_0 = arith.constant 0 : i32
    %c0_i32_1 = arith.constant 0 : i32
    return %arg0, %c0_i32, %c0_i32_0 : i32, i32, i32
  }
  func.func @transform_6(%arg0: i32) -> (i32, i32) {
    %c0_i32 = arith.constant 0 : i32
    %c0_i32_0 = arith.constant 0 : i32
    %c0_i32_1 = arith.constant 0 : i32
    return %c0_i32, %c0_i32_0 : i32, i32
  }
  func.func @transform_7(%arg0: i32) -> (i32, i32) {
    %c0_i32 = arith.constant 0 : i32
    %c0_i32_0 = arith.constant 0 : i32
    %c0_i32_1 = arith.constant 0 : i32
    return %c0_i32, %c0_i32_0 : i32, i32
  }
  func.func @transform_8(%arg0: i32) -> (i32, i32, i32) {
    %c0_i32 = arith.constant 0 : i32
    %c0_i32_0 = arith.constant 0 : i32
    %c0_i32_1 = arith.constant 0 : i32
    return %arg0, %c0_i32, %c0_i32_0 : i32, i32, i32
  }
}

module attributes {stable_mosaic.version = 11 : i64} {
  func.func @_ffn_block_kernel(%arg0: i32, %arg1: memref<16x64xf32, #tpu.memory_space<vmem>>, %arg2: memref<64x128xf32, #tpu.memory_space<vmem>>, %arg3: memref<1x128xf32, #tpu.memory_space<vmem>>, %arg4: memref<128x64xf32, #tpu.memory_space<vmem>>, %arg5: memref<1x64xf32, #tpu.memory_space<vmem>>, %arg6: memref<1x64xf32, #tpu.memory_space<vmem>>, %arg7: memref<1x64xf32, #tpu.memory_space<vmem>>, %arg8: memref<16x64xf32, #tpu.memory_space<vmem>>) attributes {dimension_semantics = [#tpu.dimension_semantics<parallel>], iteration_bounds = array<i64: 2>, scalar_prefetch = 0 : i64, scratch_operands = 0 : i64, tpu.core_type = #tpu.core_type<tc>, window_params = [{transform_indices = @transform_0, window_bounds = array<i64: 16, 64>}, {pipeline_mode = #tpu.pipeline_mode<synchronous>, transform_indices = @transform_1, window_bounds = array<i64: 64, 128>}, {pipeline_mode = #tpu.pipeline_mode<synchronous>, transform_indices = @transform_2, window_bounds = array<i64: 1, 128>}, {pipeline_mode = #tpu.pipeline_mode<synchronous>, transform_indices = @transform_3, window_bounds = array<i64: 128, 64>}, {pipeline_mode = #tpu.pipeline_mode<synchronous>, transform_indices = @transform_4, window_bounds = array<i64: 1, 64>}, {pipeline_mode = #tpu.pipeline_mode<synchronous>, transform_indices = @transform_5, window_bounds = array<i64: 1, 64>}, {pipeline_mode = #tpu.pipeline_mode<synchronous>, transform_indices = @transform_6, window_bounds = array<i64: 1, 64>}, {transform_indices = @transform_7, window_bounds = array<i64: 16, 64>}]} {
    %c0 = arith.constant 0 : index
    %c0_0 = arith.constant 0 : index
    %0 = vector.load %arg1[%c0, %c0_0] : memref<16x64xf32, #tpu.memory_space<vmem>>, vector<16x64xf32>
    %c0_1 = arith.constant 0 : index
    %c0_2 = arith.constant 0 : index
    %1 = vector.load %arg2[%c0_1, %c0_2] : memref<64x128xf32, #tpu.memory_space<vmem>>, vector<64x128xf32>
    %cst = arith.constant dense<0.000000e+00> : vector<16x128xf32>
    %2 = tpu.matmul %0, %1, %cst {dimension_numbers = #tpu.dot_dimension_numbers<[1], [0], [0], [1], [0, 0, 1, 1], [], []>} : vector<16x64xf32>, vector<64x128xf32>, vector<16x128xf32> -> vector<16x128xf32>
    %c0_3 = arith.constant 0 : index
    %c0_4 = arith.constant 0 : index
    %3 = vector.load %arg3[%c0_3, %c0_4] : memref<1x128xf32, #tpu.memory_space<vmem>>, vector<1x128xf32>
    %4 = vector.broadcast %3 : vector<1x128xf32> to vector<16x128xf32>
    %5 = arith.addf %2, %4 : vector<16x128xf32>
    %cst_5 = arith.constant 0.000000e+00 : f32
    %6 = vector.broadcast %cst_5 : f32 to vector<16x128xf32>
    %7 = arith.maximumf %5, %6 : vector<16x128xf32>
    %c0_6 = arith.constant 0 : index
    %c0_7 = arith.constant 0 : index
    %8 = vector.load %arg4[%c0_6, %c0_7] : memref<128x64xf32, #tpu.memory_space<vmem>>, vector<128x64xf32>
    %cst_8 = arith.constant dense<0.000000e+00> : vector<16x64xf32>
    %9 = tpu.matmul %7, %8, %cst_8 {dimension_numbers = #tpu.dot_dimension_numbers<[1], [0], [0], [1], [0, 0, 1, 1], [], []>} : vector<16x128xf32>, vector<128x64xf32>, vector<16x64xf32> -> vector<16x64xf32>
    %c0_9 = arith.constant 0 : index
    %c0_10 = arith.constant 0 : index
    %10 = vector.load %arg5[%c0_9, %c0_10] : memref<1x64xf32, #tpu.memory_space<vmem>>, vector<1x64xf32>
    %11 = vector.broadcast %10 : vector<1x64xf32> to vector<16x64xf32>
    %12 = arith.addf %9, %11 : vector<16x64xf32>
    %13 = arith.addf %0, %12 : vector<16x64xf32>
    %cst_11 = arith.constant dense<0.000000e+00> : vector<16xf32>
    %14 = vector.multi_reduction <add>, %13, %cst_11 [1] : vector<16x64xf32> to vector<16xf32>
    %15 = vector.shape_cast %14 : vector<16xf32> to vector<16x1xf32>
    %cst_12 = arith.constant 6.400000e+01 : f32
    %16 = vector.broadcast %cst_12 : f32 to vector<16x1xf32>
    %17 = arith.divf %15, %16 : vector<16x1xf32>
    %18 = vector.broadcast %17 : vector<16x1xf32> to vector<16x64xf32>
    %19 = arith.subf %13, %18 : vector<16x64xf32>
    %20 = arith.mulf %19, %19 : vector<16x64xf32>
    %cst_13 = arith.constant dense<0.000000e+00> : vector<16xf32>
    %21 = vector.multi_reduction <add>, %20, %cst_13 [1] : vector<16x64xf32> to vector<16xf32>
    %22 = vector.shape_cast %21 : vector<16xf32> to vector<16x1xf32>
    %cst_14 = arith.constant 6.400000e+01 : f32
    %23 = vector.broadcast %cst_14 : f32 to vector<16x1xf32>
    %24 = arith.divf %22, %23 : vector<16x1xf32>
    %cst_15 = arith.constant 9.99999974E-6 : f32
    %25 = vector.broadcast %cst_15 : f32 to vector<16x1xf32>
    %26 = arith.addf %24, %25 : vector<16x1xf32>
    %27 = math.rsqrt %26 : vector<16x1xf32>
    %28 = vector.broadcast %27 : vector<16x1xf32> to vector<16x64xf32>
    %29 = arith.mulf %19, %28 : vector<16x64xf32>
    %c0_16 = arith.constant 0 : index
    %c0_17 = arith.constant 0 : index
    %30 = vector.load %arg6[%c0_16, %c0_17] : memref<1x64xf32, #tpu.memory_space<vmem>>, vector<1x64xf32>
    %31 = vector.broadcast %30 : vector<1x64xf32> to vector<16x64xf32>
    %32 = arith.mulf %29, %31 : vector<16x64xf32>
    %c0_18 = arith.constant 0 : index
    %c0_19 = arith.constant 0 : index
    %33 = vector.load %arg7[%c0_18, %c0_19] : memref<1x64xf32, #tpu.memory_space<vmem>>, vector<1x64xf32>
    %34 = vector.broadcast %33 : vector<1x64xf32> to vector<16x64xf32>
    %35 = arith.addf %32, %34 : vector<16x64xf32>
    %c0_20 = arith.constant 0 : index
    %c0_21 = arith.constant 0 : index
    %36 = vector.load %arg8[%c0_20, %c0_21] : memref<16x64xf32, #tpu.memory_space<vmem>>, vector<16x64xf32>
    tpu.vector_store %arg8[%c0_20, %c0_21], %35 {strides = array<i32>} : memref<16x64xf32, #tpu.memory_space<vmem>>, vector<16x64xf32>,
    return
  }
  func.func @transform_0(%arg0: i32) -> (i32, i32) {
    %c0_i32 = arith.constant 0 : i32
    %c0_i32_0 = arith.constant 0 : i32
    return %arg0, %c0_i32 : i32, i32
  }
  func.func @transform_1(%arg0: i32) -> (i32, i32) {
    %c0_i32 = arith.constant 0 : i32
    %c0_i32_0 = arith.constant 0 : i32
    %c0_i32_1 = arith.constant 0 : i32
    return %c0_i32, %c0_i32_0 : i32, i32
  }
  func.func @transform_2(%arg0: i32) -> (i32, i32) {
    %c0_i32 = arith.constant 0 : i32
    %c0_i32_0 = arith.constant 0 : i32
    %c0_i32_1 = arith.constant 0 : i32
    return %c0_i32, %c0_i32_0 : i32, i32
  }
  func.func @transform_3(%arg0: i32) -> (i32, i32) {
    %c0_i32 = arith.constant 0 : i32
    %c0_i32_0 = arith.constant 0 : i32
    %c0_i32_1 = arith.constant 0 : i32
    return %c0_i32, %c0_i32_0 : i32, i32
  }
  func.func @transform_4(%arg0: i32) -> (i32, i32) {
    %c0_i32 = arith.constant 0 : i32
    %c0_i32_0 = arith.constant 0 : i32
    %c0_i32_1 = arith.constant 0 : i32
    return %c0_i32, %c0_i32_0 : i32, i32
  }
  func.func @transform_5(%arg0: i32) -> (i32, i32) {
    %c0_i32 = arith.constant 0 : i32
    %c0_i32_0 = arith.constant 0 : i32
    %c0_i32_1 = arith.constant 0 : i32
    return %c0_i32, %c0_i32_0 : i32, i32
  }
  func.func @transform_6(%arg0: i32) -> (i32, i32) {
    %c0_i32 = arith.constant 0 : i32
    %c0_i32_0 = arith.constant 0 : i32
    %c0_i32_1 = arith.constant 0 : i32
    return %c0_i32, %c0_i32_0 : i32, i32
  }
  func.func @transform_7(%arg0: i32) -> (i32, i32) {
    %c0_i32 = arith.constant 0 : i32
    %c0_i32_0 = arith.constant 0 : i32
    return %arg0, %c0_i32 : i32, i32
  }
}

module attributes {stable_mosaic.version = 11 : i64} {
  func.func @_proj_kernel(%arg0: i32, %arg1: memref<16x64xf32, #tpu.memory_space<vmem>>, %arg2: memref<2x64x64xf32, #tpu.memory_space<vmem>>, %arg3: memref<16x64xf32, #tpu.memory_space<vmem>>, %arg4: memref<16x64xf32, #tpu.memory_space<vmem>>) attributes {dimension_semantics = [#tpu.dimension_semantics<parallel>], iteration_bounds = array<i64: 2>, scalar_prefetch = 0 : i64, scratch_operands = 0 : i64, tpu.core_type = #tpu.core_type<tc>, window_params = [{transform_indices = @transform_0, window_bounds = array<i64: 16, 64>}, {pipeline_mode = #tpu.pipeline_mode<synchronous>, transform_indices = @transform_1, window_bounds = array<i64: 2, 64, 64>}, {transform_indices = @transform_2, window_bounds = array<i64: 16, 64>}, {transform_indices = @transform_3, window_bounds = array<i64: 16, 64>}]} {
    %c0 = arith.constant 0 : index
    %c0_0 = arith.constant 0 : index
    %0 = vector.load %arg1[%c0, %c0_0] : memref<16x64xf32, #tpu.memory_space<vmem>>, vector<16x64xf32>
    %c0_1 = arith.constant 0 : index
    %c0_2 = arith.constant 0 : index
    %c0_3 = arith.constant 0 : index
    %1 = vector.load %arg2[%c0_1, %c0_2, %c0_3] : memref<2x64x64xf32, #tpu.memory_space<vmem>>, vector<1x64x64xf32>
    %2 = vector.shape_cast %1 : vector<1x64x64xf32> to vector<64x64xf32>
    %cst = arith.constant dense<0.000000e+00> : vector<16x64xf32>
    %3 = tpu.matmul %0, %2, %cst {dimension_numbers = #tpu.dot_dimension_numbers<[1], [0], [0], [1], [0, 0, 1, 1], [], []>} : vector<16x64xf32>, vector<64x64xf32>, vector<16x64xf32> -> vector<16x64xf32>
    %c0_4 = arith.constant 0 : index
    %c0_5 = arith.constant 0 : index
    %4 = vector.load %arg3[%c0_4, %c0_5] : memref<16x64xf32, #tpu.memory_space<vmem>>, vector<16x64xf32>
    tpu.vector_store %arg3[%c0_4, %c0_5], %3 {strides = array<i32>} : memref<16x64xf32, #tpu.memory_space<vmem>>, vector<16x64xf32>,
    %c1 = arith.constant 1 : index
    %c0_6 = arith.constant 0 : index
    %c0_7 = arith.constant 0 : index
    %5 = vector.load %arg2[%c1, %c0_6, %c0_7] : memref<2x64x64xf32, #tpu.memory_space<vmem>>, vector<1x64x64xf32>
    %6 = vector.shape_cast %5 : vector<1x64x64xf32> to vector<64x64xf32>
    %cst_8 = arith.constant dense<0.000000e+00> : vector<16x64xf32>
    %7 = tpu.matmul %0, %6, %cst_8 {dimension_numbers = #tpu.dot_dimension_numbers<[1], [0], [0], [1], [0, 0, 1, 1], [], []>} : vector<16x64xf32>, vector<64x64xf32>, vector<16x64xf32> -> vector<16x64xf32>
    %c0_9 = arith.constant 0 : index
    %c0_10 = arith.constant 0 : index
    %8 = vector.load %arg4[%c0_9, %c0_10] : memref<16x64xf32, #tpu.memory_space<vmem>>, vector<16x64xf32>
    tpu.vector_store %arg4[%c0_9, %c0_10], %7 {strides = array<i32>} : memref<16x64xf32, #tpu.memory_space<vmem>>, vector<16x64xf32>,
    return
  }
  func.func @transform_0(%arg0: i32) -> (i32, i32) {
    %c0_i32 = arith.constant 0 : i32
    %c0_i32_0 = arith.constant 0 : i32
    return %arg0, %c0_i32 : i32, i32
  }
  func.func @transform_1(%arg0: i32) -> (i32, i32, i32) {
    %c0_i32 = arith.constant 0 : i32
    %c0_i32_0 = arith.constant 0 : i32
    %c0_i32_1 = arith.constant 0 : i32
    %c0_i32_2 = arith.constant 0 : i32
    return %c0_i32, %c0_i32_0, %c0_i32_1 : i32, i32, i32
  }
  func.func @transform_2(%arg0: i32) -> (i32, i32) {
    %c0_i32 = arith.constant 0 : i32
    %c0_i32_0 = arith.constant 0 : i32
    return %arg0, %c0_i32 : i32, i32
  }
  func.func @transform_3(%arg0: i32) -> (i32, i32) {
    %c0_i32 = arith.constant 0 : i32
    %c0_i32_0 = arith.constant 0 : i32
    return %arg0, %c0_i32 : i32, i32
  }
}

module attributes {stable_mosaic.version = 11 : i64} {
  func.func @_attn_block_kernel(%arg0: i32, %arg1: memref<1x4x16x16xf32, #tpu.memory_space<vmem>>, %arg2: memref<1x4x16x16xf32, #tpu.memory_space<vmem>>, %arg3: memref<1x4x16x16xf32, #tpu.memory_space<vmem>>, %arg4: memref<1x16x1xf32, #tpu.memory_space<vmem>>, %arg5: memref<4x16x64xf32, #tpu.memory_space<vmem>>, %arg6: memref<1x16x64xf32, #tpu.memory_space<vmem>>, %arg7: memref<1x64xf32, #tpu.memory_space<vmem>>, %arg8: memref<1x64xf32, #tpu.memory_space<vmem>>, %arg9: memref<1x16x64xf32, #tpu.memory_space<vmem>>) attributes {dimension_semantics = [#tpu.dimension_semantics<parallel>], iteration_bounds = array<i64: 2>, scalar_prefetch = 0 : i64, scratch_operands = 0 : i64, tpu.core_type = #tpu.core_type<tc>, window_params = [{transform_indices = @transform_0, window_bounds = array<i64: 1, 4, 16, 16>}, {transform_indices = @transform_1, window_bounds = array<i64: 1, 4, 16, 16>}, {transform_indices = @transform_2, window_bounds = array<i64: 1, 4, 16, 16>}, {transform_indices = @transform_3, window_bounds = array<i64: 1, 16, 1>}, {pipeline_mode = #tpu.pipeline_mode<synchronous>, transform_indices = @transform_4, window_bounds = array<i64: 4, 16, 64>}, {transform_indices = @transform_5, window_bounds = array<i64: 1, 16, 64>}, {pipeline_mode = #tpu.pipeline_mode<synchronous>, transform_indices = @transform_6, window_bounds = array<i64: 1, 64>}, {pipeline_mode = #tpu.pipeline_mode<synchronous>, transform_indices = @transform_7, window_bounds = array<i64: 1, 64>}, {transform_indices = @transform_8, window_bounds = array<i64: 1, 16, 64>}]} {
    %c0 = arith.constant 0 : index
    %c0_0 = arith.constant 0 : index
    %c0_1 = arith.constant 0 : index
    %c0_2 = arith.constant 0 : index
    %0 = vector.load %arg1[%c0, %c0_0, %c0_1, %c0_2] : memref<1x4x16x16xf32, #tpu.memory_space<vmem>>, vector<1x4x16x16xf32>
    %1 = vector.shape_cast %0 : vector<1x4x16x16xf32> to vector<4x16x16xf32>
    %c0_3 = arith.constant 0 : index
    %c0_4 = arith.constant 0 : index
    %c0_5 = arith.constant 0 : index
    %c0_6 = arith.constant 0 : index
    %2 = vector.load %arg2[%c0_3, %c0_4, %c0_5, %c0_6] : memref<1x4x16x16xf32, #tpu.memory_space<vmem>>, vector<1x4x16x16xf32>
    %3 = vector.shape_cast %2 : vector<1x4x16x16xf32> to vector<4x16x16xf32>
    %c0_7 = arith.constant 0 : index
    %c0_8 = arith.constant 0 : index
    %c0_9 = arith.constant 0 : index
    %c0_10 = arith.constant 0 : index
    %4 = vector.load %arg3[%c0_7, %c0_8, %c0_9, %c0_10] : memref<1x4x16x16xf32, #tpu.memory_space<vmem>>, vector<1x4x16x16xf32>
    %5 = vector.shape_cast %4 : vector<1x4x16x16xf32> to vector<4x16x16xf32>
    "tpu.trace_start"() <{level = 10 : i32, message = "hid,hjd->hij"}> : () -> ()
    %cst = arith.constant dense<0.000000e+00> : vector<4x16x16xf32>
    %6 = tpu.matmul %1, %3, %cst {dimension_numbers = #tpu.dot_dimension_numbers<[2], [2], [1], [1], [0, 0, 0, 1, 1, 1], [0], [0]>} : vector<4x16x16xf32>, vector<4x16x16xf32>, vector<4x16x16xf32> -> vector<4x16x16xf32>
    "tpu.trace_stop"() : () -> ()
    %c0_11 = arith.constant 0 : index
    %c0_12 = arith.constant 0 : index
    %c0_13 = arith.constant 0 : index
    %7 = vector.load %arg4[%c0_11, %c0_12, %c0_13] : memref<1x16x1xf32, #tpu.memory_space<vmem>>, vector<1x16x1xf32>
    %8 = vector.shape_cast %7 : vector<1x16x1xf32> to vector<16x1xf32>
    %cst_14 = arith.constant 5.000000e-01 : f32
    %9 = vector.broadcast %cst_14 : f32 to vector<16x1xf32>
    %10 = arith.cmpf ogt, %8, %9 : vector<16x1xf32>
    %11 = vector.shape_cast %10 : vector<16x1xi1> to vector<16x1xi1>
    %12 = vector.broadcast %11 : vector<16x1xi1> to vector<16x16xi1>
    %13 = tpu.iota {dimensions = array<i32: 0>} : vector<16x16xi32>
    %14 = tpu.iota {dimensions = array<i32: 1>} : vector<16x16xi32>
    %15 = arith.cmpi sle, %14, %13 : vector<16x16xi32>
    %16 = arith.ori %12, %15 : vector<16x16xi1>
    %17 = vector.shape_cast %16 : vector<16x16xi1> to vector<1x16x16xi1>
    %cst_15 = arith.constant -1.000000e+09 : f32
    %18 = vector.shape_cast %17 : vector<1x16x16xi1> to vector<1x16x16xi1>
    %19 = vector.broadcast %18 : vector<1x16x16xi1> to vector<4x16x16xi1>
    %20 = vector.broadcast %cst_15 : f32 to vector<4x16x16xf32>
    %21 = arith.select %19, %20, %6 : vector<4x16x16xi1>, vector<4x16x16xf32>
    %cst_16 = arith.constant 4.000000e+00 : f32
    %22 = vector.broadcast %cst_16 : f32 to vector<4x16x16xf32>
    %23 = arith.divf %21, %22 : vector<4x16x16xf32>
    %cst_17 = arith.constant dense<0xFF800000> : vector<4x16xf32>
    %24 = vector.multi_reduction <maximumf>, %23, %cst_17 [2] : vector<4x16x16xf32> to vector<4x16xf32>
    %25 = vector.shape_cast %24 : vector<4x16xf32> to vector<4x16x1xf32>
    %26 = vector.broadcast %25 : vector<4x16x1xf32> to vector<4x16x16xf32>
    %27 = arith.subf %23, %26 : vector<4x16x16xf32>
    %28 = math.exp %27 : vector<4x16x16xf32>
    %cst_18 = arith.constant dense<0.000000e+00> : vector<4x16xf32>
    %29 = vector.multi_reduction <add>, %28, %cst_18 [2] : vector<4x16x16xf32> to vector<4x16xf32>
    %30 = vector.shape_cast %29 : vector<4x16xf32> to vector<4x16x1xf32>
    %31 = vector.broadcast %30 : vector<4x16x1xf32> to vector<4x16x16xf32>
    %32 = arith.divf %28, %31 : vector<4x16x16xf32>
    "tpu.trace_start"() <{level = 10 : i32, message = "hij,hjd->hid"}> : () -> ()
    %cst_19 = arith.constant dense<0.000000e+00> : vector<4x16x16xf32>
    %33 = tpu.matmul %32, %5, %cst_19 {dimension_numbers = #tpu.dot_dimension_numbers<[2], [1], [1], [2], [0, 0, 0, 1, 1, 2], [0], [0]>} : vector<4x16x16xf32>, vector<4x16x16xf32>, vector<4x16x16xf32> -> vector<4x16x16xf32>
    "tpu.trace_stop"() : () -> ()
    %34 = vector.extract_strided_slice %33 {offsets = [0, 0, 0], sizes = [1, 16, 16], strides = [1, 1, 1]} : vector<4x16x16xf32> to vector<1x16x16xf32>
    %35 = vector.shape_cast %34 : vector<1x16x16xf32> to vector<16x16xf32>
    %c0_20 = arith.constant 0 : index
    %c0_21 = arith.constant 0 : index
    %c0_22 = arith.constant 0 : index
    %36 = vector.load %arg5[%c0_20, %c0_21, %c0_22] : memref<4x16x64xf32, #tpu.memory_space<vmem>>, vector<1x16x64xf32>
    %37 = vector.shape_cast %36 : vector<1x16x64xf32> to vector<16x64xf32>
    %cst_23 = arith.constant dense<0.000000e+00> : vector<16x64xf32>
    %38 = tpu.matmul %35, %37, %cst_23 {dimension_numbers = #tpu.dot_dimension_numbers<[1], [0], [0], [1], [0, 0, 1, 1], [], []>} : vector<16x16xf32>, vector<16x64xf32>, vector<16x64xf32> -> vector<16x64xf32>
    %39 = vector.extract_strided_slice %33 {offsets = [1, 0, 0], sizes = [1, 16, 16], strides = [1, 1, 1]} : vector<4x16x16xf32> to vector<1x16x16xf32>
    %40 = vector.shape_cast %39 : vector<1x16x16xf32> to vector<16x16xf32>
    %c1 = arith.constant 1 : index
    %c0_24 = arith.constant 0 : index
    %c0_25 = arith.constant 0 : index
    %41 = vector.load %arg5[%c1, %c0_24, %c0_25] : memref<4x16x64xf32, #tpu.memory_space<vmem>>, vector<1x16x64xf32>
    %42 = vector.shape_cast %41 : vector<1x16x64xf32> to vector<16x64xf32>
    %cst_26 = arith.constant dense<0.000000e+00> : vector<16x64xf32>
    %43 = tpu.matmul %40, %42, %cst_26 {dimension_numbers = #tpu.dot_dimension_numbers<[1], [0], [0], [1], [0, 0, 1, 1], [], []>} : vector<16x16xf32>, vector<16x64xf32>, vector<16x64xf32> -> vector<16x64xf32>
    %44 = arith.addf %38, %43 : vector<16x64xf32>
    %45 = vector.extract_strided_slice %33 {offsets = [2, 0, 0], sizes = [1, 16, 16], strides = [1, 1, 1]} : vector<4x16x16xf32> to vector<1x16x16xf32>
    %46 = vector.shape_cast %45 : vector<1x16x16xf32> to vector<16x16xf32>
    %c2 = arith.constant 2 : index
    %c0_27 = arith.constant 0 : index
    %c0_28 = arith.constant 0 : index
    %47 = vector.load %arg5[%c2, %c0_27, %c0_28] : memref<4x16x64xf32, #tpu.memory_space<vmem>>, vector<1x16x64xf32>
    %48 = vector.shape_cast %47 : vector<1x16x64xf32> to vector<16x64xf32>
    %cst_29 = arith.constant dense<0.000000e+00> : vector<16x64xf32>
    %49 = tpu.matmul %46, %48, %cst_29 {dimension_numbers = #tpu.dot_dimension_numbers<[1], [0], [0], [1], [0, 0, 1, 1], [], []>} : vector<16x16xf32>, vector<16x64xf32>, vector<16x64xf32> -> vector<16x64xf32>
    %50 = arith.addf %44, %49 : vector<16x64xf32>
    %51 = vector.extract_strided_slice %33 {offsets = [3, 0, 0], sizes = [1, 16, 16], strides = [1, 1, 1]} : vector<4x16x16xf32> to vector<1x16x16xf32>
    %52 = vector.shape_cast %51 : vector<1x16x16xf32> to vector<16x16xf32>
    %c3 = arith.constant 3 : index
    %c0_30 = arith.constant 0 : index
    %c0_31 = arith.constant 0 : index
    %53 = vector.load %arg5[%c3, %c0_30, %c0_31] : memref<4x16x64xf32, #tpu.memory_space<vmem>>, vector<1x16x64xf32>
    %54 = vector.shape_cast %53 : vector<1x16x64xf32> to vector<16x64xf32>
    %cst_32 = arith.constant dense<0.000000e+00> : vector<16x64xf32>
    %55 = tpu.matmul %52, %54, %cst_32 {dimension_numbers = #tpu.dot_dimension_numbers<[1], [0], [0], [1], [0, 0, 1, 1], [], []>} : vector<16x16xf32>, vector<16x64xf32>, vector<16x64xf32> -> vector<16x64xf32>
    %56 = arith.addf %50, %55 : vector<16x64xf32>
    %c0_33 = arith.constant 0 : index
    %c0_34 = arith.constant 0 : index
    %c0_35 = arith.constant 0 : index
    %57 = vector.load %arg6[%c0_33, %c0_34, %c0_35] : memref<1x16x64xf32, #tpu.memory_space<vmem>>, vector<1x16x64xf32>
    %58 = vector.shape_cast %57 : vector<1x16x64xf32> to vector<16x64xf32>
    %59 = arith.addf %58, %56 : vector<16x64xf32>
    %cst_36 = arith.constant dense<0.000000e+00> : vector<16xf32>
    %60 = vector.multi_reduction <add>, %59, %cst_36 [1] : vector<16x64xf32> to vector<16xf32>
    %61 = vector.shape_cast %60 : vector<16xf32> to vector<16x1xf32>
    %cst_37 = arith.constant 6.400000e+01 : f32
    %62 = vector.broadcast %cst_37 : f32 to vector<16x1xf32>
    %63 = arith.divf %61, %62 : vector<16x1xf32>
    %64 = vector.broadcast %63 : vector<16x1xf32> to vector<16x64xf32>
    %65 = arith.subf %59, %64 : vector<16x64xf32>
    %66 = arith.mulf %65, %65 : vector<16x64xf32>
    %cst_38 = arith.constant dense<0.000000e+00> : vector<16xf32>
    %67 = vector.multi_reduction <add>, %66, %cst_38 [1] : vector<16x64xf32> to vector<16xf32>
    %68 = vector.shape_cast %67 : vector<16xf32> to vector<16x1xf32>
    %cst_39 = arith.constant 6.400000e+01 : f32
    %69 = vector.broadcast %cst_39 : f32 to vector<16x1xf32>
    %70 = arith.divf %68, %69 : vector<16x1xf32>
    %cst_40 = arith.constant 9.99999974E-6 : f32
    %71 = vector.broadcast %cst_40 : f32 to vector<16x1xf32>
    %72 = arith.addf %70, %71 : vector<16x1xf32>
    %73 = math.rsqrt %72 : vector<16x1xf32>
    %74 = vector.broadcast %73 : vector<16x1xf32> to vector<16x64xf32>
    %75 = arith.mulf %65, %74 : vector<16x64xf32>
    %c0_41 = arith.constant 0 : index
    %c0_42 = arith.constant 0 : index
    %76 = vector.load %arg7[%c0_41, %c0_42] : memref<1x64xf32, #tpu.memory_space<vmem>>, vector<1x64xf32>
    %77 = vector.broadcast %76 : vector<1x64xf32> to vector<16x64xf32>
    %78 = arith.mulf %75, %77 : vector<16x64xf32>
    %c0_43 = arith.constant 0 : index
    %c0_44 = arith.constant 0 : index
    %79 = vector.load %arg8[%c0_43, %c0_44] : memref<1x64xf32, #tpu.memory_space<vmem>>, vector<1x64xf32>
    %80 = vector.broadcast %79 : vector<1x64xf32> to vector<16x64xf32>
    %81 = arith.addf %78, %80 : vector<16x64xf32>
    %c0_45 = arith.constant 0 : index
    %c0_46 = arith.constant 0 : index
    %c0_47 = arith.constant 0 : index
    %82 = vector.load %arg9[%c0_45, %c0_46, %c0_47] : memref<1x16x64xf32, #tpu.memory_space<vmem>>, vector<1x16x64xf32>
    %83 = vector.shape_cast %82 : vector<1x16x64xf32> to vector<16x64xf32>
    %84 = vector.shape_cast %81 : vector<16x64xf32> to vector<1x16x64xf32>
    tpu.vector_store %arg9[%c0_45, %c0_46, %c0_47], %84 {strides = array<i32>} : memref<1x16x64xf32, #tpu.memory_space<vmem>>, vector<1x16x64xf32>,
    return
  }
  func.func @transform_0(%arg0: i32) -> (i32, i32, i32, i32) {
    %c0_i32 = arith.constant 0 : i32
    %c0_i32_0 = arith.constant 0 : i32
    %c0_i32_1 = arith.constant 0 : i32
    %c0_i32_2 = arith.constant 0 : i32
    return %arg0, %c0_i32, %c0_i32_0, %c0_i32_1 : i32, i32, i32, i32
  }
  func.func @transform_1(%arg0: i32) -> (i32, i32, i32, i32) {
    %c0_i32 = arith.constant 0 : i32
    %c0_i32_0 = arith.constant 0 : i32
    %c0_i32_1 = arith.constant 0 : i32
    %c0_i32_2 = arith.constant 0 : i32
    return %arg0, %c0_i32, %c0_i32_0, %c0_i32_1 : i32, i32, i32, i32
  }
  func.func @transform_2(%arg0: i32) -> (i32, i32, i32, i32) {
    %c0_i32 = arith.constant 0 : i32
    %c0_i32_0 = arith.constant 0 : i32
    %c0_i32_1 = arith.constant 0 : i32
    %c0_i32_2 = arith.constant 0 : i32
    return %arg0, %c0_i32, %c0_i32_0, %c0_i32_1 : i32, i32, i32, i32
  }
  func.func @transform_3(%arg0: i32) -> (i32, i32, i32) {
    %c0_i32 = arith.constant 0 : i32
    %c0_i32_0 = arith.constant 0 : i32
    %c0_i32_1 = arith.constant 0 : i32
    return %arg0, %c0_i32, %c0_i32_0 : i32, i32, i32
  }
  func.func @transform_4(%arg0: i32) -> (i32, i32, i32) {
    %c0_i32 = arith.constant 0 : i32
    %c0_i32_0 = arith.constant 0 : i32
    %c0_i32_1 = arith.constant 0 : i32
    %c0_i32_2 = arith.constant 0 : i32
    return %c0_i32, %c0_i32_0, %c0_i32_1 : i32, i32, i32
  }
  func.func @transform_5(%arg0: i32) -> (i32, i32, i32) {
    %c0_i32 = arith.constant 0 : i32
    %c0_i32_0 = arith.constant 0 : i32
    %c0_i32_1 = arith.constant 0 : i32
    return %arg0, %c0_i32, %c0_i32_0 : i32, i32, i32
  }
  func.func @transform_6(%arg0: i32) -> (i32, i32) {
    %c0_i32 = arith.constant 0 : i32
    %c0_i32_0 = arith.constant 0 : i32
    %c0_i32_1 = arith.constant 0 : i32
    return %c0_i32, %c0_i32_0 : i32, i32
  }
  func.func @transform_7(%arg0: i32) -> (i32, i32) {
    %c0_i32 = arith.constant 0 : i32
    %c0_i32_0 = arith.constant 0 : i32
    %c0_i32_1 = arith.constant 0 : i32
    return %c0_i32, %c0_i32_0 : i32, i32
  }
  func.func @transform_8(%arg0: i32) -> (i32, i32, i32) {
    %c0_i32 = arith.constant 0 : i32
    %c0_i32_0 = arith.constant 0 : i32
    %c0_i32_1 = arith.constant 0 : i32
    return %arg0, %c0_i32, %c0_i32_0 : i32, i32, i32
  }
}

module attributes {stable_mosaic.version = 11 : i64} {
  func.func @_vocab_softmax_kernel(%arg0: i32, %arg1: memref<16x64xf32, #tpu.memory_space<vmem>>, %arg2: memref<128x64xf32, #tpu.memory_space<vmem>>, %arg3: memref<1x128xf32, #tpu.memory_space<vmem>>, %arg4: memref<16x128xf32, #tpu.memory_space<vmem>>) attributes {dimension_semantics = [#tpu.dimension_semantics<parallel>], iteration_bounds = array<i64: 2>, scalar_prefetch = 0 : i64, scratch_operands = 0 : i64, tpu.core_type = #tpu.core_type<tc>, window_params = [{transform_indices = @transform_0, window_bounds = array<i64: 16, 64>}, {pipeline_mode = #tpu.pipeline_mode<synchronous>, transform_indices = @transform_1, window_bounds = array<i64: 128, 64>}, {pipeline_mode = #tpu.pipeline_mode<synchronous>, transform_indices = @transform_2, window_bounds = array<i64: 1, 128>}, {transform_indices = @transform_3, window_bounds = array<i64: 16, 128>}]} {
    %c0 = arith.constant 0 : index
    %c0_0 = arith.constant 0 : index
    %0 = vector.load %arg1[%c0, %c0_0] : memref<16x64xf32, #tpu.memory_space<vmem>>, vector<16x64xf32>
    %c0_1 = arith.constant 0 : index
    %c0_2 = arith.constant 0 : index
    %1 = vector.load %arg2[%c0_1, %c0_2] : memref<128x64xf32, #tpu.memory_space<vmem>>, vector<128x64xf32>
    %cst = arith.constant dense<0.000000e+00> : vector<16x128xf32>
    %2 = tpu.matmul %0, %1, %cst {dimension_numbers = #tpu.dot_dimension_numbers<[1], [1], [0], [0], [0, 0, 1, 0], [], []>} : vector<16x64xf32>, vector<128x64xf32>, vector<16x128xf32> -> vector<16x128xf32>
    %c0_3 = arith.constant 0 : index
    %c0_4 = arith.constant 0 : index
    %3 = vector.load %arg3[%c0_3, %c0_4] : memref<1x128xf32, #tpu.memory_space<vmem>>, vector<1x128xf32>
    %4 = vector.broadcast %3 : vector<1x128xf32> to vector<16x128xf32>
    %5 = arith.addf %2, %4 : vector<16x128xf32>
    %cst_5 = arith.constant dense<0xFF800000> : vector<16xf32>
    %6 = vector.multi_reduction <maximumf>, %5, %cst_5 [1] : vector<16x128xf32> to vector<16xf32>
    %7 = vector.shape_cast %6 : vector<16xf32> to vector<16x1xf32>
    %8 = vector.broadcast %7 : vector<16x1xf32> to vector<16x128xf32>
    %9 = arith.subf %5, %8 : vector<16x128xf32>
    %10 = math.exp %9 : vector<16x128xf32>
    %cst_6 = arith.constant dense<0.000000e+00> : vector<16xf32>
    %11 = vector.multi_reduction <add>, %10, %cst_6 [1] : vector<16x128xf32> to vector<16xf32>
    %12 = vector.shape_cast %11 : vector<16xf32> to vector<16x1xf32>
    %13 = vector.broadcast %12 : vector<16x1xf32> to vector<16x128xf32>
    %14 = arith.divf %10, %13 : vector<16x128xf32>
    %c0_7 = arith.constant 0 : index
    %c0_8 = arith.constant 0 : index
    %15 = vector.load %arg4[%c0_7, %c0_8] : memref<16x128xf32, #tpu.memory_space<vmem>>, vector<16x128xf32>
    tpu.vector_store %arg4[%c0_7, %c0_8], %14 {strides = array<i32>} : memref<16x128xf32, #tpu.memory_space<vmem>>, vector<16x128xf32>,
    return
  }
  func.func @transform_0(%arg0: i32) -> (i32, i32) {
    %c0_i32 = arith.constant 0 : i32
    %c0_i32_0 = arith.constant 0 : i32
    return %arg0, %c0_i32 : i32, i32
  }
  func.func @transform_1(%arg0: i32) -> (i32, i32) {
    %c0_i32 = arith.constant 0 : i32
    %c0_i32_0 = arith.constant 0 : i32
    %c0_i32_1 = arith.constant 0 : i32
    return %c0_i32, %c0_i32_0 : i32, i32
  }
  func.func @transform_2(%arg0: i32) -> (i32, i32) {
    %c0_i32 = arith.constant 0 : i32
    %c0_i32_0 = arith.constant 0 : i32
    %c0_i32_1 = arith.constant 0 : i32
    return %c0_i32, %c0_i32_0 : i32, i32
  }
  func.func @transform_3(%arg0: i32) -> (i32, i32) {
    %c0_i32 = arith.constant 0 : i32
    %c0_i32_0 = arith.constant 0 : i32
    return %arg0, %c0_i32 : i32, i32
  }
}

</mosaic_0001>

<bundles_post_ra>
// kernel: transformer_forward.25
= control target key start
LH: loop header
LB: loop body
LE: loop exit
PB: predicated region body
PF: predicated region fallthrough
CT: control target
= control target key end

     0   :  { %s548_s15 = smov 0   ;;  %s661_s0 = inlined_call_operand.vmem [shape: f32[32,64], index: 0, kind: input, shape index: {}]   ;;  %s662_s1 = inlined_call_operand.vmem [shape: f32[3,64,64], index: 1, kind: input, shape index: {}]   ;;  %s663_s2 = inlined_call_operand.vmem [shape: f32[32,64], index: 2, kind: output, shape index: {0}]   ;;  %s664_s3 = inlined_call_operand.vmem [shape: f32[32,64], index: 3, kind: output, shape index: {1}]   ;;  %s665_s4 = inlined_call_operand.vmem [shape: f32[32,64], index: 4, kind: output, shape index: {2}]  }
   0x1 LB: > { %s462_s16 = sadd.s32 4294967295, %s521_s15   ;;  %p466_p0 = scmp.ge.s32.totalorder %s521_s15, 1  ;;  %s521_s15 = sphi %s548_s15, %s15_s15  }
   0x2   : > { %p168_p1 = scmp.lt.s32.totalorder %s521_s15, 3 }
   0x4   : > { %p169_p2 = pnand %p466_p0, %p168_p1 }
   0x5   : > { %s467_s21 = sshll.u32 (!%p169_p2), %s462_s16, 1 }
   0x6   : > { %172 = sbr.rel (%p169_p2) target bundleno = 168 (0xa8), region = 28  ;;  %p205_p3 = scmp.lt.s32.totalorder (!%p169_p2), %s467_s21, 3 }
   0xb   : > { %v494_v0 = vld [vmem:[%s662_s1 + $0xb8] sm:$0xff]  ;;  %v493_v1 = vld [vmem:[%s662_s1 + $0xb0] sm:$0xff]  ;;  %v492_v4 = vld [vmem:[%s662_s1 + $0xa8] sm:$0xff]  ;;  %s667_s21 = smov (!%p205_p3, %s467_s21), 3  ;;  %vm238_vm0 = vcmask 523264  }
   0xc   : > { %321 = vmatpush.msra.mxu2 %v494_v0  ;;  %v484_v2 = vld [vmem:[%s662_s1 + $0x78] sm:$0xff]  ;;  %v483_v5 = vld [vmem:[%s662_s1 + $0x70] sm:$0xff]  ;;  %v482_v7 = vld [vmem:[%s662_s1 + $0x68] sm:$0xff]  ;;  %s598_s22 = sshll.u32 %s667_s21, 3 }
   0xd   : > { %v237_v3 = vld [vmem:[%s662_s1 + $0x38] sm:$0xff]  ;;  %287 = vmatpush.msra.mxu1 %v484_v2  ;;  %v236_v6 = vld [vmem:[%s662_s1 + $0x30] sm:$0xff]  ;;  %v235_v8 = vld [vmem:[%s662_s1 + $0x28] sm:$0xff]  ;;  %s208_s8 = scalar_lea.vmem %s661_s0, %s598_s22  ;;  %s220_s24 = scalar_lea.vmem %s664_s3, %s598_s22 }
   0xe   : > { %499 = vmatpush.msra.mxu3 %v237_v3  ;;  %322 = vmatpush.msra.mxu2 %v493_v1  ;;  %v491_v9 = vld [vmem:[%s662_s1 + $0xa0] sm:$0xff]  ;;  %v490_v12 = vld [vmem:[%s662_s1 + $0x98] sm:$0xff]  ;;  %v489_v15 = vld [vmem:[%s662_s1 + $0x90] sm:$0xff]  ;;  %s214_s27 = scalar_lea.vmem %s663_s2, %s598_s22  ;;  %s226_s21 = scalar_lea.vmem %s665_s4, %s598_s22 }
   0xf   : > { %253 = vmatpush.msra.mxu0 %v237_v3  ;;  %288 = vmatpush.msra.mxu1 %v483_v5  ;;  %v481_v10 = vld [vmem:[%s662_s1 + $0x60] sm:$0xff]  ;;  %v480_v13 = vld [vmem:[%s662_s1 + $0x58] sm:$0xff]  ;;  %v479_v16 = vld [vmem:[%s662_s1 + $0x50] sm:$0xff] }
  0x10   : > { %500 = vmatpush.msra.mxu3 %v236_v6  ;;  %323 = vmatpush.msra.mxu2 %v492_v4  ;;  %v234_v11 = vld [vmem:[%s662_s1 + $0x20] sm:$0xff]  ;;  %v233_v14 = vld [vmem:[%s662_s1 + $0x18] sm:$0xff]  ;;  %v232_v17 = vld [vmem:[%s662_s1 + $0x10] sm:$0xff] }
  0x11   : > { %254 = vmatpush.msra.mxu0 %v236_v6  ;;  %289 = vmatpush.msra.mxu1 %v482_v7  ;;  %v488_v18 = vld [vmem:[%s662_s1 + $0x88] sm:$0xff]  ;;  %v487_v21 = vld [vmem:[%s662_s1 + $0x80] sm:$0xff] }
  0x12   : > { %501 = vmatpush.msra.mxu3 %v235_v8  ;;  %324 = vmatpush.msra.mxu2 %v491_v9  ;;  %v478_v19 = vld [vmem:[%s662_s1 + $0x48] sm:$0xff]  ;;  %v228_v22 = vld [vmem:[%s208_s8] sm:$0xff] }
  0x13   : > { %255 = vmatpush.msra.mxu0 %v235_v8  ;;  %290 = vmatpush.msra.mxu1 %v481_v10  ;;  %v231_v20 = vld [vmem:[%s662_s1 + $0x8] sm:$0xff]  ;;  %v477_v23 = vld [vmem:[%s662_s1 + $0x40] sm:$0xff] }
  0x14   : > { %502 = vmatpush.msra.mxu3 %v234_v11  ;;  %325 = vmatpush.msra.mxu2 %v490_v12  ;;  %v230_v24 = vld [vmem:[%s662_s1] sm:$0xff]  ;;  %v229_v25 = vld [vmem:[%s208_s8 + $0x8] sm:$0xff] }
  0x15   : > { %256 = vmatpush.msra.mxu0 %v234_v11  ;;  %291 = vmatpush.msra.mxu1 %v480_v13 }
  0x16   : > { %503 = vmatpush.msra.mxu3 %v233_v14  ;;  %326 = vmatpush.msra.mxu2 %v489_v15 }
  0x17   : > { %257 = vmatpush.msra.mxu0 %v233_v14  ;;  %292 = vmatpush.msra.mxu1 %v479_v16 }
  0x18   : > { %504 = vmatpush.msra.mxu3 %v232_v17  ;;  %327 = vmatpush.msra.mxu2 %v488_v18 }
  0x19   : > { %258 = vmatpush.msra.mxu0 %v232_v17  ;;  %293 = vmatpush.msra.mxu1 %v478_v19 }
  0x1a   : > { %505 = vmatpush.msra.mxu3 %v231_v20  ;;  %328 = vmatpush.msra.mxu2 %v487_v21 }
  0x1b   : > { %259 = vmatpush.msra.mxu0 %v231_v20  ;;  %495 = vmatmul.msk.f32.vlgmr.msra.gmra.mxu2 %vm238_vm0, %v228_v22 }
  0x1c   : > { %294 = vmatpush.msra.mxu1 %v477_v23  ;;  %506 = vmatpush.msra.mxu3 %v230_v24 }
  0x1d   : > { %485 = vmatmul.msk.f32.vlgmr.msra.gmra.mxu1 %vm238_vm0, %v228_v22  ;;  %476 = vmatmul.msk.f32.vlgmr.msra.gmra.mxu3 %vm238_vm0, %v229_v25 }
  0x1e   : > { %260 = vmatpush.msra.mxu0 %v230_v24 }
  0x1f   : > { %475 = vmatmul.msk.f32.vlgmr.msra.gmra.mxu0 %vm238_vm0, %v228_v22 }
  0x23   : > { %496 = vmatmul.msk.f32.gmra.mxu2 %vm238_vm0, %v229_v25 }
  0x25   : > { %486 = vmatmul.msk.f32.gmra.mxu1 %vm238_vm0, %v229_v25 }
  0x9a   : > { %v296_v26 = vpop.f32.mrf.mxu1 }
  0x9b   : > { %302 = vst.msk [vmem:[%s220_s24] sm:$0xff] %vm238_vm0, %v296_v26 }
  0x9c   : > { %v262_v27 = vpop.f32.mrf.mxu0 }
  0x9d   : > { %268 = vst.msk [vmem:[%s214_s27] sm:$0xff] %vm238_vm0, %v262_v27 }
  0x9e   : > { %v330_v28 = vpop.f32.mrf.mxu2 }
  0x9f   : > { %336 = vst.msk [vmem:[%s226_s21] sm:$0xff] %vm238_vm0, %v330_v28 }
  0xa0   : > { %v265_v29 = vpop.f32.mrf.mxu3 }
  0xa1   : > { %269 = vst.msk [vmem:[%s214_s27 + $0x8] sm:$0xff] %vm238_vm0, %v265_v29 }
  0xa2   : > { %v299_v30 = vpop.f32.mrf.mxu1 }
  0xa3   : > { %303 = vst.msk [vmem:[%s220_s24 + $0x8] sm:$0xff] %vm238_vm0, %v299_v30 }
  0xa6   : > { %v333_v31 = vpop.f32.mrf.mxu2 }
  0xa7   : > { %337 = vst.msk [vmem:[%s226_s21 + $0x8] sm:$0xff] %vm238_vm0, %v333_v31 }
  0xa8 PF: > { %s15_s15 = sadd.s32 1, %s521_s15  }
  0xa9   : > { %p12_p4 = scmp.ge.s32.totalorder %s15_s15, 4  }
  0xab   :  { %14 = sbr.rel (!%p12_p4) target bundleno = 1 (0x1), region = 84 }

// kernel: transformer_forward.27
= control target key start
LH: loop header
LB: loop body
LE: loop exit
PB: predicated region body
PF: predicated region fallthrough
CT: control target
= control target key end

     0   :  { %s297_s9 = smov 0   ;;  %s338_s0 = inlined_call_operand.vmem [shape: f32[32,64], index: 0, kind: input, shape index: {}]   ;;  %s339_s1 = inlined_call_operand.vmem [shape: f32[1,64,64], index: 1, kind: input, shape index: {}]   ;;  %s340_s2 = inlined_call_operand.vmem [shape: f32[32,64], index: 2, kind: output, shape index: {}]  }
   0x1 LB: > { %s245_s10 = sadd.s32 4294967295, %s280_s9   ;;  %p249_p0 = scmp.ge.s32.totalorder %s280_s9, 1  ;;  %s280_s9 = sphi %s297_s9, %s12_s9  }
   0x2   : > { %p113_p1 = scmp.lt.s32.totalorder %s280_s9, 3 }
   0x4   : > { %p114_p2 = pnand %p249_p0, %p113_p1 }
   0x5   : > { %s250_s15 = sshll.u32 (!%p114_p2), %s245_s10, 1 }
   0x6   : > { %117 = sbr.rel (%p114_p2) target bundleno = 155 (0x9b), region = 28  ;;  %p136_p3 = scmp.lt.s32.totalorder (!%p114_p2), %s250_s15, 3 }
   0xb   : > { %v156_v0 = vld [vmem:[%s339_s1 + $0x38] sm:$0xff]  ;;  %v155_v1 = vld [vmem:[%s339_s1 + $0x30] sm:$0xff]  ;;  %v154_v2 = vld [vmem:[%s339_s1 + $0x28] sm:$0xff]  ;;  %s342_s15 = smov (!%p136_p3, %s250_s15), 3  ;;  %vm157_vm0 = vcmask 523264  }
   0xc   : > { %172 = vmatpush.msra.mxu0 %v156_v0  ;;  %258 = vmatpush.msra.mxu1 %v156_v0  ;;  %v153_v3 = vld [vmem:[%s339_s1 + $0x20] sm:$0xff]  ;;  %v152_v4 = vld [vmem:[%s339_s1 + $0x18] sm:$0xff]  ;;  %s251_s22 = sshll.u32 %s342_s15, 3  ;;  %v151_v5 = vld [vmem:[%s339_s1 + $0x10] sm:$0xff] }
   0xd   : > { %v150_v6 = vld [vmem:[%s339_s1 + $0x8] sm:$0xff]  ;;  %s139_s29 = scalar_lea.vmem %s338_s0, %s251_s22  ;;  %v149_v7 = vld [vmem:[%s339_s1] sm:$0xff]  ;;  %s145_s6 = scalar_lea.vmem %s340_s2, %s251_s22 }
   0xe   : > { %173 = vmatpush.msra.mxu0 %v155_v1  ;;  %259 = vmatpush.msra.mxu1 %v155_v1  ;;  %v147_v8 = vld [vmem:[%s139_s29] sm:$0xff]  ;;  %v148_v9 = vld [vmem:[%s139_s29 + $0x8] sm:$0xff] }
  0x10   : > { %174 = vmatpush.msra.mxu0 %v154_v2  ;;  %260 = vmatpush.msra.mxu1 %v154_v2 }
  0x12   : > { %175 = vmatpush.msra.mxu0 %v153_v3  ;;  %261 = vmatpush.msra.mxu1 %v153_v3 }
  0x14   : > { %176 = vmatpush.msra.mxu0 %v152_v4  ;;  %262 = vmatpush.msra.mxu1 %v152_v4 }
  0x16   : > { %177 = vmatpush.msra.mxu0 %v151_v5  ;;  %263 = vmatpush.msra.mxu1 %v151_v5 }
  0x18   : > { %178 = vmatpush.msra.mxu0 %v150_v6  ;;  %264 = vmatpush.msra.mxu1 %v150_v6 }
  0x1a   : > { %179 = vmatpush.msra.mxu0 %v149_v7  ;;  %265 = vmatpush.msra.mxu1 %v149_v7 }
  0x1b   : > { %254 = vmatmul.msk.f32.vlgmr.msra.gmra.mxu0 %vm157_vm0, %v147_v8  ;;  %255 = vmatmul.msk.f32.vlgmr.msra.gmra.mxu1 %vm157_vm0, %v148_v9 }
  0x98   : > { %v181_v10 = vpop.f32.mrf.mxu0  ;;  %v184_v11 = vpop.f32.mrf.mxu1 }
  0x99   : > { %187 = vst.msk [vmem:[%s145_s6] sm:$0xff] %vm157_vm0, %v181_v10 }
  0x9a   : > { %188 = vst.msk [vmem:[%s145_s6 + $0x8] sm:$0xff] %vm157_vm0, %v184_v11 }
  0x9b PF: > { %s12_s9 = sadd.s32 1, %s280_s9  }
  0x9c   : > { %p9_p4 = scmp.ge.s32.totalorder %s12_s9, 4  }
  0x9e   :  { %11 = sbr.rel (!%p9_p4) target bundleno = 1 (0x1), region = 58 }

// kernel: transformer_forward.21
= control target key start
LH: loop header
LB: loop body
LE: loop exit
PB: predicated region body
PF: predicated region fallthrough
CT: control target
= control target key end

     0   :  { %s591_s24 = smov 0   ;;  %s707_s0 = inlined_call_operand.vmem [shape: f32[32,64], index: 0, kind: input, shape index: {}]   ;;  %s708_s1 = inlined_call_operand.vmem [shape: f32[64,128], index: 1, kind: input, shape index: {}]   ;;  %s709_s2 = inlined_call_operand.vmem [shape: f32[1,128], index: 2, kind: input, shape index: {}]   ;;  %s710_s3 = inlined_call_operand.vmem [shape: f32[128,64], index: 3, kind: input, shape index: {}]   ;;  %s711_s4 = inlined_call_operand.vmem [shape: f32[1,64], index: 4, kind: input, shape index: {}]   ;;  %s712_s5 = inlined_call_operand.vmem [shape: f32[1,64], index: 5, kind: input, shape index: {}]   ;;  %s713_s6 = inlined_call_operand.vmem [shape: f32[1,64], index: 6, kind: input, shape index: {}]   ;;  %s714_s7 = inlined_call_operand.vmem [shape: f32[32,64], index: 7, kind: output, shape index: {}]  }
   0x1 LB: > { %s494_s25 = sadd.s32 4294967295, %s548_s24   ;;  %p498_p0 = scmp.ge.s32.totalorder %s548_s24, 1  ;;  %s548_s24 = sphi %s591_s24, %s17_s24  }
   0x2   : > { %p238_p1 = scmp.lt.s32.totalorder %s548_s24, 3 }
   0x4   : > { %p239_p2 = pnand %p498_p0, %p238_p1 }
   0x5   : > { %s499_s30 = sshll.u32 (!%p239_p2), %s494_s25, 1 }
   0x6   : > { %242 = sbr.rel (%p239_p2) target bundleno = 570 (0x23a), region = 48  ;;  %p271_p3 = scmp.lt.s32.totalorder (!%p239_p2), %s499_s30, 3 }
   0xb   : > { %v291_v0 = vld [vmem:[%s708_s1 + $0x38] sm:$0xff]  ;;  %v290_v1 = vld [vmem:[%s708_s1 + $0x30] sm:$0xff]  ;;  %v289_v2 = vld [vmem:[%s708_s1 + $0x28] sm:$0xff]  ;;  %s716_s30 = smov (!%p271_p3, %s499_s30), 3  ;;  %vm296_vm0 = vcmask 523264   ;;  %v550_v42 = vmov 64.0  }
   0xc   : > { %311 = vmatpush.msra.mxu0 %v291_v0  ;;  %v343_v3 = vld [vmem:[%s710_s3 + $0x78] sm:$0xff]  ;;  %v342_v4 = vld [vmem:[%s710_s3 + $0x70] sm:$0xff]  ;;  %v288_v5 = vld [vmem:[%s708_s1 + $0x20] sm:$0xff]  ;;  %s500_s25 = sshll.u32 %s716_s30, 3  ;;  %536 = vrcp.f32 %v550_v42 }
   0xd   : > { %348 = vmatpush.msra.mxu1 %v343_v3  ;;  %v341_v6 = vld [vmem:[%s710_s3 + $0x68] sm:$0xff]  ;;  %507 = vmatpush.msra.mxu2 %v343_v3  ;;  %v287_v7 = vld [vmem:[%s708_s1 + $0x18] sm:$0xff]  ;;  %v340_v8 = vld [vmem:[%s710_s3 + $0x60] sm:$0xff]  ;;  %s274_s10 = scalar_lea.vmem %s707_s0, %s500_s25  ;;  %s280_s27 = scalar_lea.vmem %s714_s7, %s500_s25 }
   0xe   : > { %312 = vmatpush.msra.mxu0 %v290_v1  ;;  %v286_v9 = vld [vmem:[%s708_s1 + $0x10] sm:$0xff]  ;;  %v339_v10 = vld [vmem:[%s710_s3 + $0x58] sm:$0xff]  ;;  %v285_v11 = vld [vmem:[%s708_s1 + $0x8] sm:$0xff] }
   0xf   : > { %349 = vmatpush.msra.mxu1 %v342_v4  ;;  %508 = vmatpush.msra.mxu2 %v342_v4  ;;  %v338_v12 = vld [vmem:[%s710_s3 + $0x50] sm:$0xff]  ;;  %v284_v13 = vld [vmem:[%s708_s1] sm:$0xff]  ;;  %v337_v14 = vld [vmem:[%s710_s3 + $0x48] sm:$0xff] }
  0x10   : > { %313 = vmatpush.msra.mxu0 %v289_v2  ;;  %v282_v15 = vld [vmem:[%s274_s10] sm:$0xff]  ;;  %v335_v17 = vld [vmem:[%s710_s3 + $0x38] sm:$0xff]  ;;  %v334_v18 = vld [vmem:[%s710_s3 + $0x30] sm:$0xff] }
  0x11   : > { %350 = vmatpush.msra.mxu1 %v341_v6  ;;  %509 = vmatpush.msra.mxu2 %v341_v6  ;;  %v336_v16 = vld [vmem:[%s710_s3 + $0x40] sm:$0xff]  ;;  %v333_v19 = vld [vmem:[%s710_s3 + $0x28] sm:$0xff]  ;;  %v331_v22 = vld [vmem:[%s710_s3 + $0x18] sm:$0xff] }
  0x12   : > { %314 = vmatpush.msra.mxu0 %v288_v5  ;;  %v283_v20 = vld [vmem:[%s274_s10 + $0x8] sm:$0xff]  ;;  %v332_v21 = vld [vmem:[%s710_s3 + $0x20] sm:$0xff]  ;;  %v330_v23 = vld [vmem:[%s710_s3 + $0x10] sm:$0xff]  ;;  %v537_v43 = vpop.eup %536 }
  0x13   : > { %351 = vmatpush.msra.mxu1 %v340_v8  ;;  %510 = vmatpush.msra.mxu2 %v340_v8  ;;  %v329_v24 = vld [vmem:[%s710_s3 + $0x8] sm:$0xff]  ;;  %v328_v25 = vld [vmem:[%s710_s3] sm:$0xff]  ;;  %v380_v44 = vmul.f32 64.0, %v537_v43  ;;  %vm384_vm1 = vweird.f32 %v537_v43 }
  0x14   : > { %315 = vmatpush.msra.mxu0 %v287_v7  ;;  %v532_v26 = vld [vmem:[%s709_s2] ss:$0 sm:$0xff] }
  0x15   : > { %352 = vmatpush.msra.mxu1 %v339_v10  ;;  %511 = vmatpush.msra.mxu2 %v339_v10  ;;  %v533_v33 = vld [vmem:[%s711_s4] ss:$0 sm:$0xff]  ;;  %v381_v45 = vsub.f32 1.0, %v380_v44 }
  0x16   : > { %316 = vmatpush.msra.mxu0 %v286_v9  ;;  %v534_v7 = vld [vmem:[%s712_s5] ss:$0 sm:$0xff] }
  0x17   : > { %353 = vmatpush.msra.mxu1 %v338_v12  ;;  %512 = vmatpush.msra.mxu2 %v338_v12  ;;  %v382_v46 = vmul.f32 %v537_v43, %v381_v45  ;;  %v535_v9 = vld [vmem:[%s713_s6] ss:$0 sm:$0xff] }
  0x18   : > { %317 = vmatpush.msra.mxu0 %v285_v11 }
  0x19   : > { %354 = vmatpush.msra.mxu1 %v337_v14  ;;  %513 = vmatpush.msra.mxu2 %v337_v14  ;;  %v383_v47 = vadd.f32 %v537_v43, %v382_v46 }
  0x1a   : > { %318 = vmatpush.msra.mxu0 %v284_v13 }
  0x1b   : > { %503 = vmatmul.msk.f32.vlgmr.msra.gmra.mxu0 %vm296_vm0, %v282_v15  ;;  %355 = vmatpush.msra.mxu1 %v336_v16  ;;  %v385_v48 = vsel %vm384_vm1, %v537_v43, %v383_v47 }
  0x1c   : > { %514 = vmatpush.msra.mxu2 %v336_v16 }
  0x1d   : > { %356 = vmatpush.msra.mxu1 %v335_v17 }
  0x1e   : > { %515 = vmatpush.msra.mxu2 %v335_v17 }
  0x1f   : > { %357 = vmatpush.msra.mxu1 %v334_v18 }
  0x20   : > { %516 = vmatpush.msra.mxu2 %v334_v18 }
  0x21   : > { %358 = vmatpush.msra.mxu1 %v333_v19 }
  0x22   : > { %517 = vmatpush.msra.mxu2 %v333_v19 }
  0x23   : > { %504 = vmatmul.msk.f32.gmra.mxu0 %vm296_vm0, %v283_v20  ;;  %359 = vmatpush.msra.mxu1 %v332_v21 }
  0x24   : > { %518 = vmatpush.msra.mxu2 %v332_v21 }
  0x25   : > { %360 = vmatpush.msra.mxu1 %v331_v22 }
  0x26   : > { %519 = vmatpush.msra.mxu2 %v331_v22 }
  0x27   : > { %361 = vmatpush.msra.mxu1 %v330_v23 }
  0x28   : > { %520 = vmatpush.msra.mxu2 %v330_v23 }
  0x29   : > { %362 = vmatpush.msra.mxu1 %v329_v24 }
  0x2a   : > { %521 = vmatpush.msra.mxu2 %v329_v24 }
  0x2b   : > { %363 = vmatpush.msra.mxu1 %v328_v25 }
  0x2c   : > { %522 = vmatpush.msra.mxu2 %v328_v25 }
  0x98   : > { %v320_v27 = vpop.f32.mrf.mxu0 }
  0x99   : > { %v321_v28 = vadd.f32 %v532_v26, %v320_v27 }
  0x9b   : > { %v326_v29 = vmax.f32 %v321_v28, 0.0 }
  0x9d   : > { %364 = vmatmul.f32.vlgmr.msra.gmra.mxu1 %v326_v29 }
  0xa0   : > { %v323_v30 = vpop.f32.mrf.mxu0 }
  0xa1   : > { %v324_v31 = vadd.f32 %v532_v26, %v323_v30 }
  0xa3   : > { %v327_v32 = vmax.f32 %v324_v31, 0.0 }
  0xa5   : > { %367 = vmatmul.f32.vlgmr.msra.gmra.mxu2 %v327_v32 }
 0x11a   : > { %v365_v34 = vpop.f32.mrf.mxu1 }
 0x11b   : > { %v366_v35 = vadd.f32 %v533_v33, %v365_v34 }
 0x11d   : > { %v371_v36 = vadd.f32 %v366_v35, %v282_v15 }
 0x11f   : > { %v373_v37 = vsel %vm296_vm0, %v371_v36, 0.0 }
 0x120   : > { %374 = vadd.xlane.f32.xlu0 %v373_v37 }
 0x128   : > { %v368_v38 = vpop.f32.mrf.mxu2 }
 0x129   : > { %v369_v39 = vadd.f32 %v533_v33, %v368_v38 }
 0x12b   : > { %v372_v40 = vadd.f32 %v369_v39, %v283_v20 }
 0x12d   : > { %v376_v41 = vsel %vm296_vm0, %v372_v40, 0.0 }
 0x12e   : > { %377 = vadd.xlane.f32.xlu0 %v376_v41 }
 0x193   : > { %v375_v49 = vpop.xlane.xlu0 %374 }
 0x194   : > { %v386_v50 = vmul.f32 %v385_v48, %v375_v49 }
 0x196   : > { %v388_v51 = vsub.f32 %v371_v36, %v386_v50 }
 0x198   : > { %v390_v52 = vmul.f32 %v388_v51, %v388_v51 }
 0x19a   : > { %v392_v53 = vsel %vm296_vm0, %v390_v52, 0.0 }
 0x19b   : > { %393 = vadd.xlane.f32.xlu1 %v392_v53 }
 0x1a1   : > { %v378_v54 = vpop.xlane.xlu0 %377 }
 0x1a2   : > { %v387_v55 = vmul.f32 %v385_v48, %v378_v54 }
 0x1a4   : > { %v389_v56 = vsub.f32 %v372_v40, %v387_v55 }
 0x1a6   : > { %v391_v57 = vmul.f32 %v389_v56, %v389_v56 }
 0x1a8   : > { %v395_v58 = vsel %vm296_vm0, %v391_v57, 0.0 }
 0x1a9   : > { %396 = vadd.xlane.f32.xlu1 %v395_v58 }
 0x20e   : > { %v394_v59 = vpop.xlane.xlu1 %393 }
 0x20f   : > { %v398_v60 = vmul.f32 %v394_v59, %v385_v48 }
 0x211   : > { %v400_v61 = vadd.f32 1e-05, %v398_v60 }
 0x213   : > { %538 = vrsqrt.f32 %v400_v61  ;;  %vm408_vm3 = vweird.f32 %v400_v61 }
 0x219   : > { %v539_v62 = vpop.eup %538 }
 0x21a   : > { %v403_v63 = vmul.f32 %v539_v62, %v400_v61  ;;  %vm409_vm2 = vweird.f32 %v539_v62 }
 0x21b   : > { %vm410_vm4 = vmor %vm408_vm3, %vm409_vm2 }
 0x21c   : > { %v404_v0 = vmul.f32 %v539_v62, %v403_v63  ;;  %v397_v1 = vpop.xlane.xlu1 %396 }
 0x21d   : > { %v399_v2 = vmul.f32 %v397_v1, %v385_v48 }
 0x21e   : > { %v405_v3 = vmul.f32 0.5, %v404_v0 }
 0x21f   : > { %v401_v4 = vadd.f32 1e-05, %v399_v2 }
 0x220   : > { %v406_v5 = vsub.f32 1.5, %v405_v3 }
 0x221   : > { %540 = vrsqrt.f32 %v401_v4  ;;  %vm418_vm6 = vweird.f32 %v401_v4 }
 0x222   : > { %v407_v6 = vmul.f32 %v539_v62, %v406_v5 }
 0x224   : > { %v411_v8 = vsel %vm410_vm4, %v539_v62, %v407_v6 }
 0x225   : > { %v422_v10 = vmul.f32 %v411_v8, %v388_v51 }
 0x227   : > { %v541_v11 = vpop.eup %540  ;;  %v428_v12 = vmul.f32 %v534_v7, %v422_v10 }
 0x228   : > { %v413_v13 = vmul.f32 %v541_v11, %v401_v4  ;;  %vm419_vm5 = vweird.f32 %v541_v11 }
 0x229   : > { %v434_v14 = vadd.f32 %v535_v9, %v428_v12  ;;  %vm420_vm7 = vmor %vm418_vm6, %vm419_vm5 }
 0x22a   : > { %v414_v15 = vmul.f32 %v541_v11, %v413_v13 }
 0x22b   : > { %436 = vst.msk [vmem:[%s280_s27] sm:$0xff] %vm296_vm0, %v434_v14 }
 0x22c   : > { %v415_v16 = vmul.f32 0.5, %v414_v15 }
 0x22e   : > { %v416_v17 = vsub.f32 1.5, %v415_v16 }
 0x230   : > { %v417_v18 = vmul.f32 %v541_v11, %v416_v17 }
 0x232   : > { %v421_v19 = vsel %vm420_vm7, %v541_v11, %v417_v18 }
 0x233   : > { %v423_v20 = vmul.f32 %v421_v19, %v389_v56 }
 0x235   : > { %v429_v21 = vmul.f32 %v534_v7, %v423_v20 }
 0x237   : > { %v435_v22 = vadd.f32 %v535_v9, %v429_v21 }
 0x239   : > { %437 = vst.msk [vmem:[%s280_s27 + $0x8] sm:$0xff] %vm296_vm0, %v435_v22 }
 0x23a PF: > { %s17_s24 = sadd.s32 1, %s548_s24  }
 0x23b   : > { %p14_p4 = scmp.ge.s32.totalorder %s17_s24, 4  }
 0x23d   :  { %16 = sbr.rel (!%p14_p4) target bundleno = 1 (0x1), region = 78 }

// kernel: transformer_forward.26
= control target key start
LH: loop header
LB: loop body
LE: loop exit
PB: predicated region body
PF: predicated region fallthrough
CT: control target
= control target key end

     0   :  { %s1373_s27 = smov 0   ;;  %s1562_s0 = inlined_call_operand.vmem [shape: f32[2,4,16,16], index: 0, kind: input, shape index: {}]   ;;  %s1563_s1 = inlined_call_operand.vmem [shape: f32[2,4,16,16], index: 1, kind: input, shape index: {}]   ;;  %s1564_s2 = inlined_call_operand.vmem [shape: f32[2,4,16,16], index: 2, kind: input, shape index: {}]   ;;  %s1565_s3 = inlined_call_operand.vmem [shape: f32[2,16,1], index: 3, kind: input, shape index: {}]   ;;  %s1566_s4 = inlined_call_operand.vmem [shape: f32[4,16,64], index: 4, kind: input, shape index: {}]   ;;  %s1567_s5 = inlined_call_operand.vmem [shape: f32[2,16,64], index: 5, kind: input, shape index: {}]   ;;  %s1568_s6 = inlined_call_operand.vmem [shape: f32[1,64], index: 6, kind: input, shape index: {}]   ;;  %s1569_s7 = inlined_call_operand.vmem [shape: f32[1,64], index: 7, kind: input, shape index: {}]   ;;  %s1570_s8 = inlined_call_operand.vmem [shape: f32[2,16,64], index: 8, kind: output, shape index: {}]  }
   0x1 LB: > { %s1200_s28 = sadd.s32 4294967295, %s1323_s27   ;;  %p1204_p0 = scmp.ge.s32.totalorder %s1323_s27, 1  ;;  %s1323_s27 = sphi %s1373_s27, %s18_s27  }
   0x2   : > { %p302_p1 = scmp.lt.s32.totalorder %s1323_s27, 3 }
   0x4   : > { %p303_p2 = pnand %p1204_p0, %p302_p1 }
   0x5   : > { %p356_p3 = scmp.lt.s32.totalorder (!%p303_p2), %s1200_s28, 1 }
   0x6   : > { %306 = sbr.rel (%p303_p2) target bundleno = 991 (0x3df), region = 52 }
   0xb   : > { %v1325_v0 = vmov 0   ;;  %s1576_s28 = smov (!%p356_p3, %s1200_s28), 1  ;;  %vm410_vm0 = vcmask 130048   ;;  %v1326_v21 = vmov 4.0  }
   0xc   : > { %1274 = vset.pattern.permute.xlu0 %v1325_v0  ;;  %s1381_s29 = sshll.u32 %s1576_s28, 6  ;;  %s1383_s30 = sshll.u32 %s1576_s28, 4  ;;  %1277 = vrcp.f32 %v1326_v21 }
   0xd   : > { %s365_s11 = scalar_lea.vmem %s1563_s1, %s1381_s29  ;;  %s375_s14 = scalar_lea.vmem %s1565_s3, %s1383_s30 }
   0xe   : > { %v395_v1 = vld [vmem:[%s365_s11 + $0x8] sm:$0xff]  ;;  %v397_v2 = vld [vmem:[%s365_s11 + $0x18] sm:$0xff]  ;;  %v394_v5 = vld [vmem:[%s365_s11] sm:$0xff]  ;;  %s360_s17 = scalar_lea.vmem %s1562_s0, %s1381_s29  ;;  %s370_s20 = scalar_lea.vmem %s1564_s2, %s1381_s29 }
   0xf   : > { %v399_v3 = vld [vmem:[%s365_s11 + $0x28] sm:$0xff]  ;;  %1217 = vmatpush.xpose.msk.msra.mxu0 %vm410_vm0, %v395_v1  ;;  %1221 = vmatpush.xpose.msk.msra.mxu1 %vm410_vm0, %v397_v2  ;;  %v401_v4 = vld [vmem:[%s365_s11 + $0x38] sm:$0xff]  ;;  %v396_v6 = vld [vmem:[%s365_s11 + $0x10] sm:$0xff]  ;;  %s380_s19 = scalar_lea.vmem %s1567_s5, %s1383_s30  ;;  %s385_s26 = scalar_lea.vmem %s1570_s8, %s1383_s30 }
  0x10   : > { %1225 = vmatpush.xpose.msk.msra.mxu2 %vm410_vm0, %v399_v3  ;;  %1229 = vmatpush.xpose.msk.msra.mxu3 %vm410_vm0, %v401_v4  ;;  %v398_v7 = vld [vmem:[%s365_s11 + $0x20] sm:$0xff]  ;;  %v400_v8 = vld [vmem:[%s365_s11 + $0x30] sm:$0xff]  ;;  %v552_v15 = vld [vmem:[%s375_s14 + $0x8] sm:$0xff] }
  0x11   : > { %v551_v9 = vld [vmem:[%s375_s14] sm:$0xff]  ;;  %v388_v11 = vld [vmem:[%s360_s17 + $0x10] sm:$0xff]  ;;  %vm554_vm2 = vcmp.gt.f32.partialorder %v552_v15, 0.5  ;;  %v387_v17 = vld [vmem:[%s360_s17 + $0x8] sm:$0xff] }
  0x12   : > { %v386_v10 = vld [vmem:[%s360_s17] sm:$0xff]  ;;  %vm553_vm1 = vcmp.gt.f32.partialorder %v551_v9, 0.5  ;;  %v392_v13 = vld [vmem:[%s360_s17 + $0x30] sm:$0xff]  ;;  %v556_v16 = vsel %vm554_vm2, 1, %v1325_v0  ;;  %v389_v18 = vld [vmem:[%s360_s17 + $0x18] sm:$0xff]  ;;  %v1278_v22 = vpop.eup %1277 }
  0x13   : > { %1218 = vmatpush.xpose.msk.msra.mxu0 %vm410_vm0, %v394_v5  ;;  %1222 = vmatpush.xpose.msk.msra.mxu1 %vm410_vm0, %v396_v6  ;;  %v390_v12 = vld [vmem:[%s360_s17 + $0x20] sm:$0xff]  ;;  %v555_v14 = vsel %vm553_vm1, 1, %v1325_v0  ;;  %v391_v19 = vld [vmem:[%s360_s17 + $0x28] sm:$0xff]  ;;  %v393_v20 = vld [vmem:[%s360_s17 + $0x38] sm:$0xff]  ;;  %v574_v23 = vmul.f32 4.0, %v1278_v22  ;;  %vm578_vm3 = vweird.f32 %v1278_v22 }
  0x14   : > { %1226 = vmatpush.xpose.msk.msra.mxu2 %vm410_vm0, %v398_v7  ;;  %1230 = vmatpush.xpose.msk.msra.mxu3 %vm410_vm0, %v400_v8 }
  0x15   : > { %558 = vperm.xlu0 %1274, %v555_v14   ;;  %v575_v24 = vsub.f32 1.0, %v574_v23 }
  0x16   : > { %1219 = vmatmul.msk.f32.vlgmr.msra.gmra.mxu0 %vm410_vm0, %v386_v10  ;;  %1223 = vmatmul.msk.f32.vlgmr.msra.gmra.mxu1 %vm410_vm0, %v388_v11 }
  0x17   : > { %1227 = vmatmul.msk.f32.vlgmr.msra.gmra.mxu2 %vm410_vm0, %v390_v12  ;;  %1231 = vmatmul.msk.f32.vlgmr.msra.gmra.mxu3 %vm410_vm0, %v392_v13  ;;  %v576_v25 = vmul.f32 %v1278_v22, %v575_v24 }
  0x19   : > { %v577_v26 = vadd.f32 %v1278_v22, %v576_v25 }
  0x1b   : > { %v579_v28 = vsel %vm578_vm3, %v1278_v22, %v577_v26 }
  0x1d   : > { %561 = vperm.xlu0 %1274, %v556_v16  }
  0x1e   : > { %1220 = vmatmul.msk.f32.gmra.mxu0 %vm410_vm0, %v387_v17  ;;  %1224 = vmatmul.msk.f32.gmra.mxu1 %vm410_vm0, %v389_v18 }
  0x1f   : > { %1228 = vmatmul.msk.f32.gmra.mxu2 %vm410_vm0, %v391_v19  ;;  %1232 = vmatmul.msk.f32.gmra.mxu3 %vm410_vm0, %v393_v20 }
  0x87   : > { %v559_v27 = vpop.permute.xlu0 %558 }
  0x88   : > { %vm563_vm4 = vcmp.eq.s32.totalorder %v559_v27, 1 }
  0x8f   : > { %v562_v38 = vpop.permute.xlu0 %561 }
  0x90   : > { %vm564_vm5 = vcmp.eq.s32.totalorder %v562_v38, 1  ;;  %v407_v38 = vld [vmem:[%s370_s20 + $0x28] sm:$0xff] }
  0x91   : > { %858 = vmatpush.msrb.mxu2 %v407_v38 }
  0x93   : > { %v475_v29 = vpop.f32.mrf.mxu1  ;;  %v440_v40 = vpop.f32.mrf.mxu0 }
  0x94   : > { %v567_v30 = vsel %vm563_vm4, -1e+09, %v475_v29  ;;  %v565_v48 = vsel %vm563_vm4, -1e+09, %v440_v40 }
  0x95   : > { %v582_v31 = vmul.f32 %v579_v28, %v567_v30  ;;  %v580_v50 = vmul.f32 %v579_v28, %v565_v48 }
  0x97   : > { %v594_v32 = vsel %vm410_vm0, %v582_v31, -inf  ;;  %v588_v55 = vsel %vm410_vm0, %v580_v50, -inf }
  0x98   : > { %595 = vmax.xlane.f32.xlu0 %v594_v32 }
  0x9a   : > { %v510_v33 = vpop.f32.mrf.mxu2  ;;  %v545_v34 = vpop.f32.mrf.mxu3 }
  0x9b   : > { %v569_v35 = vsel %vm563_vm4, -1e+09, %v510_v33  ;;  %v571_v39 = vsel %vm563_vm4, -1e+09, %v545_v34  ;;  %v443_v52 = vpop.f32.mrf.mxu0  ;;  %v478_v53 = vpop.f32.mrf.mxu1 }
  0x9c   : > { %v584_v36 = vmul.f32 %v579_v28, %v569_v35  ;;  %v586_v41 = vmul.f32 %v579_v28, %v571_v39  ;;  %v566_v56 = vsel %vm564_vm5, -1e+09, %v443_v52  ;;  %v568_v57 = vsel %vm564_vm5, -1e+09, %v478_v53  ;;  %v406_v39 = vld [vmem:[%s370_s20 + $0x20] sm:$0xff]  ;;  %v408_v53 = vld [vmem:[%s370_s20 + $0x30] sm:$0xff] }
  0x9d   : > { %v581_v58 = vmul.f32 %v579_v28, %v566_v56  ;;  %v583_v59 = vmul.f32 %v579_v28, %v568_v57  ;;  %859 = vmatpush.msrb.mxu2 %v406_v39 }
  0x9e   : > { %v600_v37 = vsel %vm410_vm0, %v584_v36, -inf  ;;  %v606_v46 = vsel %vm410_vm0, %v586_v41, -inf }
  0x9f   : > { %601 = vmax.xlane.f32.xlu1 %v600_v37  ;;  %v597_v60 = vsel %vm410_vm0, %v583_v59, -inf  ;;  %v591_v61 = vsel %vm410_vm0, %v581_v58, -inf }
  0xa2   : > { %v513_v42 = vpop.f32.mrf.mxu2  ;;  %v548_v45 = vpop.f32.mrf.mxu3 }
  0xa3   : > { %v570_v43 = vsel %vm564_vm5, -1e+09, %v513_v42  ;;  %v572_v49 = vsel %vm564_vm5, -1e+09, %v548_v45  ;;  %v405_v42 = vld [vmem:[%s370_s20 + $0x18] sm:$0xff] }
  0xa4   : > { %v585_v44 = vmul.f32 %v579_v28, %v570_v43  ;;  %v587_v51 = vmul.f32 %v579_v28, %v572_v49  ;;  %829 = vmatpush.msrb.mxu1 %v405_v42  ;;  %v402_v43 = vld [vmem:[%s370_s20] sm:$0xff] }
  0xa6   : > { %v603_v47 = vsel %vm410_vm0, %v585_v44, -inf  ;;  %v609_v54 = vsel %vm410_vm0, %v587_v51, -inf }
  0xa7   : > { %607 = vmax.xlane.f32.xlu1 %v606_v46  ;;  %604 = vmax.xlane.f32.xlu2 %v603_v47  ;;  %v409_v46 = vld [vmem:[%s370_s20 + $0x38] sm:$0xff] }
  0xa8   : > { %887 = vmatpush.msrb.mxu3 %v409_v46 }
  0xaa   : > { %888 = vmatpush.msrb.mxu3 %v408_v53 }
  0xaf   : > { %610 = vmax.xlane.f32.xlu1 %v609_v54  ;;  %589 = vmax.xlane.f32.xlu2 %v588_v55 }
  0xb7   : > { %598 = vmax.xlane.f32.xlu1 %v597_v60  ;;  %592 = vmax.xlane.f32.xlu2 %v591_v61 }
 0x10b   : > { %v596_v2 = vpop.xlane.xlu0 %595 }
 0x10c   : > { %v614_v6 = vsub.f32 %v582_v31, %v596_v2 }
 0x10e   : > { %v624_v9 = vmul.f32 1.442695, %v614_v6 }
 0x112   : > { %v602_v62 = vpop.xlane.xlu1 %601 }
 0x113   : > { %v616_v63 = vsub.f32 %v584_v36, %v602_v62 }
 0x115   : > { %v628_v0 = vmul.f32 1.442695, %v616_v63 }
 0x117   : > { %1279 = vpow2.f32 %v628_v0 }
 0x11a   : > { %v605_v1 = vpop.xlane.xlu2 %604  ;;  %v608_v8 = vpop.xlane.xlu1 %607 }
 0x11b   : > { %v617_v3 = vsub.f32 %v585_v44, %v605_v1  ;;  %v618_v14 = vsub.f32 %v586_v41, %v608_v8  ;;  %v403_v41 = vld [vmem:[%s370_s20 + $0x8] sm:$0xff]  ;;  %v404_v44 = vld [vmem:[%s370_s20 + $0x10] sm:$0xff] }
 0x11c   : > { %800 = vmatpush.msrb.mxu0 %v403_v41  ;;  %830 = vmatpush.msrb.mxu1 %v404_v44 }
 0x11d   : > { %v1429_v4 = vpop.eup %1279  ;;  %v630_v5 = vmul.f32 1.442695, %v617_v3  ;;  %v632_v17 = vmul.f32 1.442695, %v618_v14 }
 0x11e   : > { %v648_v7 = vsel %vm410_vm0, %v1429_v4, 0.0  ;;  %801 = vmatpush.msrb.mxu0 %v402_v43 }
 0x11f   : > { %649 = vadd.xlane.f32.xlu2 %v648_v7  ;;  %1281 = vpow2.f32 %v630_v5 }
 0x120   : > { %1283 = vpow2.f32 %v624_v9 }
 0x122   : > { %v590_v10 = vpop.xlane.xlu2 %589  ;;  %v611_v16 = vpop.xlane.xlu1 %610 }
 0x123   : > { %v612_v11 = vsub.f32 %v580_v50, %v590_v10  ;;  %v619_v23 = vsub.f32 %v587_v51, %v611_v16 }
 0x125   : > { %v620_v12 = vmul.f32 1.442695, %v612_v11  ;;  %v1433_v13 = vpop.eup %1281  ;;  %v634_v26 = vmul.f32 1.442695, %v619_v23 }
 0x126   : > { %v651_v15 = vsel %vm410_vm0, %v1433_v13, 0.0  ;;  %v1437_v20 = vpop.eup %1283 }
 0x127   : > { %1285 = vpow2.f32 %v620_v12  ;;  %652 = vadd.xlane.f32.xlu2 %v651_v15  ;;  %v642_v25 = vsel %vm410_vm0, %v1437_v20, 0.0 }
 0x128   : > { %1287 = vpow2.f32 %v632_v17 }
 0x12a   : > { %v593_v18 = vpop.xlane.xlu2 %592  ;;  %v599_v27 = vpop.xlane.xlu1 %598 }
 0x12b   : > { %v613_v19 = vsub.f32 %v581_v58, %v593_v18  ;;  %v615_v30 = vsub.f32 %v583_v59, %v599_v27 }
 0x12d   : > { %v622_v21 = vmul.f32 1.442695, %v613_v19  ;;  %v1439_v22 = vpop.eup %1285  ;;  %v626_v33 = vmul.f32 1.442695, %v615_v30  ;;  %v1248_v19 = vld [vmem:[%s1566_s4 + $0x28] sm:$0xff] }
 0x12e   : > { %v636_v24 = vsel %vm410_vm0, %v1439_v22, 0.0  ;;  %v1445_v28 = vpop.eup %1287  ;;  %982 = vmatpush.msra.mxu2 %v1248_v19 }
 0x12f   : > { %1289 = vpow2.f32 %v622_v21  ;;  %637 = vadd.xlane.f32.xlu1 %v636_v24  ;;  %643 = vadd.xlane.f32.xlu2 %v642_v25  ;;  %v654_v31 = vsel %vm410_vm0, %v1445_v28, 0.0 }
 0x130   : > { %1291 = vpow2.f32 %v634_v26 }
 0x131   : > { %1293 = vpow2.f32 %v626_v33 }
 0x135   : > { %v1447_v29 = vpop.eup %1289 }
 0x136   : > { %v639_v32 = vsel %vm410_vm0, %v1447_v29, 0.0  ;;  %v1453_v34 = vpop.eup %1291 }
 0x137   : > { %655 = vadd.xlane.f32.xlu1 %v654_v31  ;;  %640 = vadd.xlane.f32.xlu2 %v639_v32  ;;  %v657_v35 = vsel %vm410_vm0, %v1453_v34, 0.0  ;;  %v1457_v36 = vpop.eup %1293 }
 0x138   : > { %v645_v37 = vsel %vm410_vm0, %v1457_v36, 0.0 }
 0x13f   : > { %658 = vadd.xlane.f32.xlu1 %v657_v35 }
 0x147   : > { %646 = vadd.xlane.f32.xlu1 %v645_v37 }
 0x192   : > { %v650_v40 = vpop.xlane.xlu2 %649 }
 0x193   : > { %1295 = vrcp.f32 %v650_v40  ;;  %v731_v50 = vand.u32 2147483648, %v650_v40  ;;  %v729_v52 = vand.u32 2147483647, %v650_v40  ;;  %vm725_vm7 = vweird.f32 %v650_v40 }
 0x195   : > { %v732_v55 = vor.u32 1.1754944e-38, %v731_v50  ;;  %vm730_vm9 = vcmp.eq.f32.partialorder %v729_v52, 8.507059e+37 }
 0x199   : > { %v1296_v45 = vpop.eup %1295 }
 0x19a   : > { %v721_v47 = vmul.f32 %v1296_v45, %v650_v40  ;;  %v653_v48 = vpop.xlane.xlu2 %652  ;;  %vm726_vm6 = vweird.f32 %v1296_v45 }
 0x19b   : > { %1297 = vrcp.f32 %v653_v48  ;;  %vm727_vm8 = vmor %vm725_vm7, %vm726_vm6  ;;  %v746_v1 = vand.u32 2147483648, %v653_v48  ;;  %vm740_vm11 = vweird.f32 %v653_v48  ;;  %v744_v3 = vand.u32 2147483647, %v653_v48 }
 0x19c   : > { %v722_v49 = vsub.f32 1.0, %v721_v47 }
 0x19d   : > { %v747_v11 = vor.u32 1.1754944e-38, %v746_v1  ;;  %vm745_vm13 = vcmp.eq.f32.partialorder %v744_v3, 8.507059e+37 }
 0x19e   : > { %v723_v51 = vmul.f32 %v1296_v45, %v722_v49 }
 0x1a0   : > { %v724_v54 = vadd.f32 %v1296_v45, %v723_v51 }
 0x1a1   : > { %v1298_v56 = vpop.eup %1297 }
 0x1a2   : > { %v728_v57 = vsel %vm727_vm8, %v1296_v45, %v724_v54  ;;  %v736_v58 = vmul.f32 %v1298_v56, %v653_v48  ;;  %v638_v59 = vpop.xlane.xlu1 %637  ;;  %v644_v60 = vpop.xlane.xlu2 %643  ;;  %vm741_vm10 = vweird.f32 %v1298_v56 }
 0x1a3   : > { %v733_v61 = vsel %vm730_vm9, %v732_v55, %v728_v57  ;;  %1299 = vrcp.f32 %v638_v59  ;;  %vm742_vm12 = vmor %vm740_vm11, %vm741_vm10  ;;  %v671_v17 = vand.u32 2147483648, %v638_v59  ;;  %v669_v21 = vand.u32 2147483647, %v638_v59 }
 0x1a4   : > { %v737_v62 = vsub.f32 1.0, %v736_v58  ;;  %1301 = vrcp.f32 %v644_v60  ;;  %v734_v63 = vmul.f32 %v1429_v4, %v733_v61  ;;  %v701_v24 = vand.u32 2147483648, %v644_v60 }
 0x1a5   : > { %vm665_vm15 = vweird.f32 %v638_v59  ;;  %v699_v26 = vand.u32 2147483647, %v644_v60  ;;  %v672_v32 = vor.u32 1.1754944e-38, %v671_v17  ;;  %vm695_vm3 = vweird.f32 %v644_v60 }
 0x1a6   : > { %v738_v0 = vmul.f32 %v1298_v56, %v737_v62  ;;  %1237 = vmatmul.msk.f32.vlgmr.msrb.gmra.mxu2 %vm410_vm0, %v734_v63  ;;  %vm670_vm4 = vcmp.eq.f32.partialorder %v669_v21, 8.507059e+37  ;;  %v702_v38 = vor.u32 1.1754944e-38, %v701_v24  ;;  %v1242_v21 = vld [vmem:[%s1566_s4 + $0x18] sm:$0xff]  ;;  %v1241_v24 = vld [vmem:[%s1566_s4 + $0x10] sm:$0xff] }
 0x1a7   : > { %vm700_vm6 = vcmp.eq.f32.partialorder %v699_v26, 8.507059e+37  ;;  %921 = vmatpush.msra.mxu0 %v1242_v21  ;;  %v1251_v26 = vld [vmem:[%s1566_s4 + $0x30] sm:$0xff] }
 0x1a8   : > { %v739_v2 = vadd.f32 %v1298_v56, %v738_v0 }
 0x1a9   : > { %v1300_v5 = vpop.eup %1299  ;;  %922 = vmatpush.msra.mxu0 %v1241_v24 }
 0x1aa   : > { %v1302_v6 = vpop.eup %1301  ;;  %v661_v7 = vmul.f32 %v1300_v5, %v638_v59  ;;  %v1467_v8 = vpop.xlane.xlu1 %655  ;;  %v743_v10 = vsel %vm742_vm12, %v1298_v56, %v739_v2  ;;  %vm666_vm14 = vweird.f32 %v1300_v5 }
 0x1ab   : > { %v1469_v9 = vpop.xlane.xlu2 %640  ;;  %v691_v12 = vmul.f32 %v1302_v6, %v644_v60  ;;  %1303 = vrcp.f32 %v1467_v8  ;;  %v748_v15 = vsel %vm745_vm13, %v747_v11, %v743_v10  ;;  %vm696_vm1 = vweird.f32 %v1302_v6  ;;  %vm1478_vm2 = vmor %vm665_vm15, %vm666_vm14 }
 0x1ac   : > { %v662_v4 = vsub.f32 1.0, %v661_v7  ;;  %1305 = vrcp.f32 %v1469_v9  ;;  %v749_v18 = vmul.f32 %v1433_v13, %v748_v15  ;;  %vm697_vm5 = vmor %vm695_vm3, %vm696_vm1  ;;  %v761_v43 = vand.u32 2147483648, %v1467_v8 }
 0x1ad   : > { %v692_v14 = vsub.f32 1.0, %v691_v12  ;;  %v686_v48 = vand.u32 2147483648, %v1469_v9  ;;  %v759_v50 = vand.u32 2147483647, %v1467_v8  ;;  %v684_v52 = vand.u32 2147483647, %v1469_v9 }
 0x1ae   : > { %v663_v16 = vmul.f32 %v1300_v5, %v662_v4  ;;  %1238 = vmatmul.msk.f32.gmra.mxu2 %vm410_vm0, %v749_v18  ;;  %vm755_vm9 = vweird.f32 %v1467_v8  ;;  %vm680_vm11 = vweird.f32 %v1469_v9  ;;  %v762_v55 = vor.u32 1.1754944e-38, %v761_v43 }
 0x1af   : > { %v693_v23 = vmul.f32 %v1302_v6, %v692_v14  ;;  %v687_v56 = vor.u32 1.1754944e-38, %v686_v48  ;;  %vm760_vm13 = vcmp.eq.f32.partialorder %v759_v50, 8.507059e+37  ;;  %vm685_vm14 = vcmp.eq.f32.partialorder %v684_v52, 8.507059e+37 }
 0x1b0   : > { %v664_v25 = vadd.f32 %v1300_v5, %v663_v16 }
 0x1b1   : > { %v1304_v27 = vpop.eup %1303  ;;  %v694_v13 = vadd.f32 %v1302_v6, %v693_v23  ;;  %v897_v23 = vld [vmem:[%s1566_s4 + $0x8] sm:$0xff] }
 0x1b2   : > { %v1306_v31 = vpop.eup %1305  ;;  %v751_v33 = vmul.f32 %v1304_v27, %v1467_v8  ;;  %v659_v35 = vpop.xlane.xlu1 %658  ;;  %v668_v37 = vsel %vm1478_vm2, %v1300_v5, %v664_v25  ;;  %vm756_vm7 = vweird.f32 %v1304_v27  ;;  %950 = vmatpush.msra.mxu1 %v897_v23  ;;  %v896_v25 = vld [vmem:[%s1566_s4] sm:$0xff] }
 0x1b3   : > { %v676_v39 = vmul.f32 %v1306_v31, %v1469_v9  ;;  %1307 = vrcp.f32 %v659_v35  ;;  %v673_v41 = vsel %vm670_vm4, %v672_v32, %v668_v37  ;;  %v698_v42 = vsel %vm697_vm5, %v1302_v6, %v694_v13  ;;  %vm1495_vm10 = vmor %vm755_vm9, %vm756_vm7  ;;  %v1275_v23 = vld [vmem:[%s1568_s6] ss:$0 sm:$0xff] }
 0x1b4   : > { %v752_v40 = vsub.f32 1.0, %v751_v33  ;;  %v674_v45 = vmul.f32 %v1439_v22, %v673_v41  ;;  %v703_v46 = vsel %vm700_vm6, %v702_v38, %v698_v42  ;;  %vm681_vm8 = vweird.f32 %v1306_v31  ;;  %951 = vmatpush.msra.mxu1 %v896_v25  ;;  %v1276_v25 = vld [vmem:[%s1569_s7] ss:$0 sm:$0xff] }
 0x1b5   : > { %v677_v44 = vsub.f32 1.0, %v676_v39  ;;  %v704_v49 = vmul.f32 %v1437_v20, %v703_v46  ;;  %vm682_vm12 = vmor %vm680_vm11, %vm681_vm8  ;;  %v776_v0 = vand.u32 2147483648, %v659_v35  ;;  %v774_v5 = vand.u32 2147483647, %v659_v35 }
 0x1b6   : > { %v753_v47 = vmul.f32 %v1304_v27, %v752_v40  ;;  %1233 = vmatmul.msk.f32.vlgmr.msrb.gmra.mxu0 %vm410_vm0, %v674_v45  ;;  %vm770_vm1 = vweird.f32 %v659_v35  ;;  %vm1031_vm8 = vcmask 523264  }
 0x1b7   : > { %v678_v51 = vmul.f32 %v1306_v31, %v677_v44  ;;  %1235 = vmatmul.msk.f32.vlgmr.msrb.gmra.mxu1 %vm410_vm0, %v704_v49  ;;  %v777_v8 = vor.u32 1.1754944e-38, %v776_v0  ;;  %vm775_vm3 = vcmp.eq.f32.partialorder %v774_v5, 8.507059e+37  ;;  %v1027_v44 = vld [vmem:[%s380_s19] sm:$0xff] }
 0x1b8   : > { %v754_v53 = vadd.f32 %v1304_v27, %v753_v47 }
 0x1b9   : > { %v1308_v22 = vpop.eup %1307  ;;  %v679_v20 = vadd.f32 %v1306_v31, %v678_v51 }
 0x1ba   : > { %v766_v57 = vmul.f32 %v1308_v22, %v659_v35  ;;  %v647_v58 = vpop.xlane.xlu1 %646  ;;  %v758_v59 = vsel %vm1495_vm10, %v1304_v27, %v754_v53  ;;  %vm771_vm15 = vweird.f32 %v1308_v22 }
 0x1bb   : > { %1309 = vrcp.f32 %v647_v58  ;;  %v683_v60 = vsel %vm682_vm12, %v1306_v31, %v679_v20  ;;  %v763_v63 = vsel %vm760_vm13, %v762_v55, %v758_v59  ;;  %vm772_vm2 = vmor %vm770_vm1, %vm771_vm15  ;;  %v714_v14 = vand.u32 2147483647, %v647_v58 }
 0x1bc   : > { %v767_v61 = vsub.f32 1.0, %v766_v57  ;;  %v688_v62 = vsel %vm685_vm14, %v687_v56, %v683_v60  ;;  %v764_v2 = vmul.f32 %v1445_v28, %v763_v63  ;;  %v716_v28 = vand.u32 2147483648, %v647_v58 }
 0x1bd   : > { %v689_v1 = vmul.f32 %v1447_v29, %v688_v62  ;;  %vm710_vm5 = vweird.f32 %v647_v58  ;;  %vm715_vm7 = vcmp.eq.f32.partialorder %v714_v14, 8.507059e+37  ;;  %v1327_v56 = vmov 64.0  }
 0x1be   : > { %v768_v3 = vmul.f32 %v1308_v22, %v767_v61  ;;  %1239 = vmatmul.msk.f32.vlgmr.msrb.gmra.mxu3 %vm410_vm0, %v764_v2  ;;  %v717_v16 = vor.u32 1.1754944e-38, %v716_v28  ;;  %1311 = vrcp.f32 %v1327_v56 }
 0x1bf   : > { %1234 = vmatmul.msk.f32.gmra.mxu0 %vm410_vm0, %v689_v1 }
 0x1c0   : > { %v769_v6 = vadd.f32 %v1308_v22, %v768_v3 }
 0x1c1   : > { %v1310_v7 = vpop.eup %1309 }
 0x1c2   : > { %v706_v9 = vmul.f32 %v1310_v7, %v647_v58  ;;  %v773_v10 = vsel %vm772_vm2, %v1308_v22, %v769_v6  ;;  %vm711_vm4 = vweird.f32 %v1310_v7  ;;  %v1028_v22 = vld [vmem:[%s380_s19 + $0x8] sm:$0xff] }
 0x1c3   : > { %v778_v11 = vsel %vm775_vm3, %v777_v8, %v773_v10  ;;  %vm712_vm6 = vmor %vm710_vm5, %vm711_vm4 }
 0x1c4   : > { %v707_v12 = vsub.f32 1.0, %v706_v9  ;;  %v779_v29 = vmul.f32 %v1453_v34, %v778_v11  ;;  %v1247_v34 = vld [vmem:[%s1566_s4 + $0x20] sm:$0xff]  ;;  %v1312_v57 = vpop.eup %1311 }
 0x1c5   : > { %983 = vmatpush.msra.mxu2 %v1247_v34  ;;  %v1039_v58 = vmul.f32 64.0, %v1312_v57 }
 0x1c6   : > { %v708_v4 = vmul.f32 %v1310_v7, %v707_v12  ;;  %1240 = vmatmul.msk.f32.gmra.mxu3 %vm410_vm0, %v779_v29 }
 0x1c7   : > { %v1040_v59 = vsub.f32 1.0, %v1039_v58 }
 0x1c8   : > { %v709_v15 = vadd.f32 %v1310_v7, %v708_v4 }
 0x1c9   : > { %v1041_v60 = vmul.f32 %v1312_v57, %v1040_v59 }
 0x1ca   : > { %v713_v17 = vsel %vm712_vm6, %v1310_v7, %v709_v15 }
 0x1cb   : > { %v718_v18 = vsel %vm715_vm7, %v717_v16, %v713_v17  ;;  %v1042_v61 = vadd.f32 %v1312_v57, %v1041_v60 }
 0x1cc   : > { %v719_v19 = vmul.f32 %v1457_v36, %v718_v18  ;;  %v1252_v36 = vld [vmem:[%s1566_s4 + $0x38] sm:$0xff] }
 0x1cd   : > { %1016 = vmatpush.msra.mxu3 %v1252_v36 }
 0x1ce   : > { %1236 = vmatmul.msk.f32.gmra.mxu1 %vm410_vm0, %v719_v19 }
 0x1cf   : > { %1017 = vmatpush.msra.mxu3 %v1251_v26 }
 0x229   : > { %v861_v27 = vpop.f32.mrf.mxu2 }
 0x22a   : > { %1249 = vmatmul.msk.f32.vlgmr.msra.gmra.mxu2 %vm410_vm0, %v861_v27 }
 0x231   : > { %v864_v30 = vpop.f32.mrf.mxu2 }
 0x232   : > { %1250 = vmatmul.msk.f32.gmra.mxu2 %vm410_vm0, %v864_v30 }
 0x233   : > { %v803_v13 = vpop.f32.mrf.mxu0 }
 0x234   : > { %v832_v31 = vpop.f32.mrf.mxu1  ;;  %1245 = vmatmul.msk.f32.vlgmr.msra.gmra.mxu1 %vm410_vm0, %v803_v13 }
 0x235   : > { %1243 = vmatmul.msk.f32.vlgmr.msra.gmra.mxu0 %vm410_vm0, %v832_v31 }
 0x23c   : > { %v806_v32 = vpop.f32.mrf.mxu0 }
 0x23d   : > { %1246 = vmatmul.msk.f32.gmra.mxu1 %vm410_vm0, %v806_v32 }
 0x241   : > { %v890_v33 = vpop.f32.mrf.mxu3 }
 0x242   : > { %1253 = vmatmul.msk.f32.vlgmr.msra.gmra.mxu3 %vm410_vm0, %v890_v33 }
 0x249   : > { %v893_v35 = vpop.f32.mrf.mxu3 }
 0x24a   : > { %1254 = vmatmul.msk.f32.gmra.mxu3 %vm410_vm0, %v893_v35 }
 0x24b   : > { %v835_v37 = vpop.f32.mrf.mxu1 }
 0x24c   : > { %1244 = vmatmul.msk.f32.gmra.mxu0 %vm410_vm0, %v835_v37  ;;  %vm1043_vm0 = vweird.f32 %v1312_v57 }
 0x24d   : > { %v1044_v62 = vsel %vm1043_vm0, %v1312_v57, %v1042_v61 }
 0x2ad   : > { %v985_v40 = vpop.f32.mrf.mxu2 }
 0x2b1   : > { %v953_v39 = vpop.f32.mrf.mxu1 }
 0x2b2   : > { %v924_v38 = vpop.f32.mrf.mxu0 }
 0x2b3   : > { %v954_v41 = vadd.f32 %v953_v39, %v924_v38 }
 0x2b5   : > { %v991_v42 = vadd.f32 %v985_v40, %v954_v41  ;;  %v988_v50 = vpop.f32.mrf.mxu2 }
 0x2ba   : > { %v956_v46 = vpop.f32.mrf.mxu1 }
 0x2c5   : > { %v1019_v43 = vpop.f32.mrf.mxu3 }
 0x2c6   : > { %v1025_v45 = vadd.f32 %v1019_v43, %v991_v42 }
 0x2c8   : > { %v1029_v48 = vadd.f32 %v1027_v44, %v1025_v45 }
 0x2c9   : > { %v927_v47 = vpop.f32.mrf.mxu0 }
 0x2ca   : > { %v957_v49 = vadd.f32 %v956_v46, %v927_v47  ;;  %v1032_v51 = vsel %vm1031_vm8, %v1029_v48, 0.0 }
 0x2cb   : > { %1033 = vadd.xlane.f32.xlu2 %v1032_v51 }
 0x2cc   : > { %v992_v52 = vadd.f32 %v988_v50, %v957_v49 }
 0x2cd   : > { %v1022_v53 = vpop.f32.mrf.mxu3 }
 0x2ce   : > { %v1026_v54 = vadd.f32 %v1022_v53, %v992_v52 }
 0x2d0   : > { %v1030_v20 = vadd.f32 %v1028_v22, %v1026_v54 }
 0x2d2   : > { %v1035_v55 = vsel %vm1031_vm8, %v1030_v20, 0.0 }
 0x2d3   : > { %1036 = vadd.xlane.f32.xlu0 %v1035_v55 }
 0x33e   : > { %v1034_v63 = vpop.xlane.xlu2 %1033 }
 0x33f   : > { %v1045_v0 = vmul.f32 %v1044_v62, %v1034_v63 }
 0x341   : > { %v1047_v1 = vsub.f32 %v1029_v48, %v1045_v0 }
 0x343   : > { %v1049_v2 = vmul.f32 %v1047_v1, %v1047_v1 }
 0x345   : > { %v1051_v3 = vsel %vm1031_vm8, %v1049_v2, 0.0 }
 0x346   : > { %1052 = vadd.xlane.f32.xlu1 %v1051_v3  ;;  %v1037_v5 = vpop.xlane.xlu0 %1036 }
 0x347   : > { %v1046_v6 = vmul.f32 %v1044_v62, %v1037_v5 }
 0x349   : > { %v1048_v7 = vsub.f32 %v1030_v20, %v1046_v6 }
 0x34b   : > { %v1050_v8 = vmul.f32 %v1048_v7, %v1048_v7 }
 0x34d   : > { %v1054_v9 = vsel %vm1031_vm8, %v1050_v8, 0.0 }
 0x34e   : > { %1055 = vadd.xlane.f32.xlu2 %v1054_v9 }
 0x3b9   : > { %v1053_v10 = vpop.xlane.xlu1 %1052 }
 0x3ba   : > { %v1057_v11 = vmul.f32 %v1053_v10, %v1044_v62 }
 0x3bc   : > { %v1059_v12 = vadd.f32 1e-05, %v1057_v11 }
 0x3be   : > { %1313 = vrsqrt.f32 %v1059_v12  ;;  %vm1067_vm10 = vweird.f32 %v1059_v12 }
 0x3c1   : > { %v1056_v29 = vpop.xlane.xlu2 %1055 }
 0x3c2   : > { %v1058_v28 = vmul.f32 %v1056_v29, %v1044_v62 }
 0x3c4   : > { %v1314_v4 = vpop.eup %1313  ;;  %v1060_v14 = vadd.f32 1e-05, %v1058_v28 }
 0x3c5   : > { %v1062_v15 = vmul.f32 %v1314_v4, %v1059_v12  ;;  %vm1068_vm9 = vweird.f32 %v1314_v4 }
 0x3c6   : > { %1315 = vrsqrt.f32 %v1060_v14  ;;  %vm1069_vm11 = vmor %vm1067_vm10, %vm1068_vm9  ;;  %vm1077_vm13 = vweird.f32 %v1060_v14 }
 0x3c7   : > { %v1063_v16 = vmul.f32 %v1314_v4, %v1062_v15 }
 0x3c9   : > { %v1064_v17 = vmul.f32 0.5, %v1063_v16 }
 0x3cb   : > { %v1065_v18 = vsub.f32 1.5, %v1064_v17 }
 0x3cc   : > { %v1316_v19 = vpop.eup %1315 }
 0x3cd   : > { %v1066_v34 = vmul.f32 %v1314_v4, %v1065_v18  ;;  %v1072_v21 = vmul.f32 %v1316_v19, %v1060_v14  ;;  %vm1078_vm12 = vweird.f32 %v1316_v19 }
 0x3ce   : > { %vm1079_vm14 = vmor %vm1077_vm13, %vm1078_vm12 }
 0x3cf   : > { %v1070_v36 = vsel %vm1069_vm11, %v1314_v4, %v1066_v34  ;;  %v1073_v24 = vmul.f32 %v1316_v19, %v1072_v21 }
 0x3d0   : > { %v1081_v26 = vmul.f32 %v1070_v36, %v1047_v1 }
 0x3d1   : > { %v1074_v27 = vmul.f32 0.5, %v1073_v24 }
 0x3d2   : > { %v1087_v30 = vmul.f32 %v1275_v23, %v1081_v26 }
 0x3d3   : > { %v1075_v13 = vsub.f32 1.5, %v1074_v27 }
 0x3d4   : > { %v1093_v31 = vadd.f32 %v1276_v25, %v1087_v30 }
 0x3d5   : > { %v1076_v32 = vmul.f32 %v1316_v19, %v1075_v13 }
 0x3d6   : > { %1095 = vst.msk [vmem:[%s385_s26] sm:$0xff] %vm1031_vm8, %v1093_v31 }
 0x3d7   : > { %v1080_v33 = vsel %vm1079_vm14, %v1316_v19, %v1076_v32 }
 0x3d8   : > { %v1082_v35 = vmul.f32 %v1080_v33, %v1048_v7 }
 0x3da   : > { %v1088_v37 = vmul.f32 %v1275_v23, %v1082_v35 }
 0x3dc   : > { %v1094_v38 = vadd.f32 %v1276_v25, %v1088_v37 }
 0x3de   : > { %1096 = vst.msk [vmem:[%s385_s26 + $0x8] sm:$0xff] %vm1031_vm8, %v1094_v38 }
 0x3df PF: > { %s18_s27 = sadd.s32 1, %s1323_s27  }
 0x3e0   : > { %p15_p4 = scmp.ge.s32.totalorder %s18_s27, 4  }
 0x3e2   :  { %17 = sbr.rel (!%p15_p4) target bundleno = 1 (0x1), region = 97 }

// kernel: transformer_forward.28
= control target key start
LH: loop header
LB: loop body
LE: loop exit
PB: predicated region body
PF: predicated region fallthrough
CT: control target
= control target key end

     0   :  { %s431_s12 = smov 0   ;;  %s512_s0 = inlined_call_operand.vmem [shape: f32[32,64], index: 0, kind: input, shape index: {}]   ;;  %s513_s1 = inlined_call_operand.vmem [shape: f32[2,64,64], index: 1, kind: input, shape index: {}]   ;;  %s514_s2 = inlined_call_operand.vmem [shape: f32[32,64], index: 2, kind: output, shape index: {0}]   ;;  %s515_s3 = inlined_call_operand.vmem [shape: f32[32,64], index: 3, kind: output, shape index: {1}]  }
   0x1 LB: > { %s354_s13 = sadd.s32 4294967295, %s409_s12   ;;  %p358_p0 = scmp.ge.s32.totalorder %s409_s12, 1  ;;  %s409_s12 = sphi %s431_s12, %s14_s12  }
   0x2   : > { %p141_p1 = scmp.lt.s32.totalorder %s409_s12, 3 }
   0x4   : > { %p142_p2 = pnand %p358_p0, %p141_p1 }
   0x5   : > { %s359_s20 = sshll.u32 (!%p142_p2), %s354_s13, 1 }
   0x6   : > { %145 = sbr.rel (%p142_p2) target bundleno = 161 (0xa1), region = 28  ;;  %p171_p3 = scmp.lt.s32.totalorder (!%p142_p2), %s359_s20, 3 }
   0xb   : > { %v197_v0 = vld [vmem:[%s513_s1 + $0x38] sm:$0xff]  ;;  %v196_v2 = vld [vmem:[%s513_s1 + $0x30] sm:$0xff]  ;;  %v195_v4 = vld [vmem:[%s513_s1 + $0x28] sm:$0xff]  ;;  %s517_s20 = smov (!%p171_p3, %s359_s20), 3  ;;  %vm198_vm0 = vcmask 523264  }
   0xc   : > { %v374_v1 = vld [vmem:[%s513_s1 + $0x78] sm:$0xff]  ;;  %379 = vmatpush.msra.mxu2 %v197_v0  ;;  %v373_v3 = vld [vmem:[%s513_s1 + $0x70] sm:$0xff]  ;;  %v372_v5 = vld [vmem:[%s513_s1 + $0x68] sm:$0xff]  ;;  %213 = vmatpush.msra.mxu0 %v197_v0  ;;  %s469_s8 = sshll.u32 %s517_s20, 3 }
   0xd   : > { %387 = vmatpush.msra.mxu3 %v374_v1  ;;  %247 = vmatpush.msra.mxu1 %v374_v1  ;;  %v194_v6 = vld [vmem:[%s513_s1 + $0x20] sm:$0xff]  ;;  %v193_v8 = vld [vmem:[%s513_s1 + $0x18] sm:$0xff]  ;;  %v192_v10 = vld [vmem:[%s513_s1 + $0x10] sm:$0xff]  ;;  %s174_s20 = scalar_lea.vmem %s512_s0, %s469_s8  ;;  %s180_s27 = scalar_lea.vmem %s514_s2, %s469_s8 }
   0xe   : > { %380 = vmatpush.msra.mxu2 %v196_v2  ;;  %v371_v7 = vld [vmem:[%s513_s1 + $0x60] sm:$0xff]  ;;  %214 = vmatpush.msra.mxu0 %v196_v2  ;;  %v370_v9 = vld [vmem:[%s513_s1 + $0x58] sm:$0xff]  ;;  %v369_v11 = vld [vmem:[%s513_s1 + $0x50] sm:$0xff]  ;;  %s186_s30 = scalar_lea.vmem %s515_s3, %s469_s8 }
   0xf   : > { %388 = vmatpush.msra.mxu3 %v373_v3  ;;  %248 = vmatpush.msra.mxu1 %v373_v3  ;;  %v191_v12 = vld [vmem:[%s513_s1 + $0x8] sm:$0xff]  ;;  %v190_v14 = vld [vmem:[%s513_s1] sm:$0xff] }
  0x10   : > { %381 = vmatpush.msra.mxu2 %v195_v4  ;;  %215 = vmatpush.msra.mxu0 %v195_v4  ;;  %v368_v13 = vld [vmem:[%s513_s1 + $0x48] sm:$0xff]  ;;  %v367_v15 = vld [vmem:[%s513_s1 + $0x40] sm:$0xff] }
  0x11   : > { %389 = vmatpush.msra.mxu3 %v372_v5  ;;  %249 = vmatpush.msra.mxu1 %v372_v5  ;;  %v189_v16 = vld [vmem:[%s174_s20 + $0x8] sm:$0xff]  ;;  %v188_v17 = vld [vmem:[%s174_s20] sm:$0xff] }
  0x12   : > { %382 = vmatpush.msra.mxu2 %v194_v6  ;;  %216 = vmatpush.msra.mxu0 %v194_v6 }
  0x13   : > { %390 = vmatpush.msra.mxu3 %v371_v7  ;;  %250 = vmatpush.msra.mxu1 %v371_v7 }
  0x14   : > { %383 = vmatpush.msra.mxu2 %v193_v8  ;;  %217 = vmatpush.msra.mxu0 %v193_v8 }
  0x15   : > { %391 = vmatpush.msra.mxu3 %v370_v9  ;;  %251 = vmatpush.msra.mxu1 %v370_v9 }
  0x16   : > { %384 = vmatpush.msra.mxu2 %v192_v10  ;;  %218 = vmatpush.msra.mxu0 %v192_v10 }
  0x17   : > { %392 = vmatpush.msra.mxu3 %v369_v11  ;;  %252 = vmatpush.msra.mxu1 %v369_v11 }
  0x18   : > { %385 = vmatpush.msra.mxu2 %v191_v12  ;;  %219 = vmatpush.msra.mxu0 %v191_v12 }
  0x19   : > { %393 = vmatpush.msra.mxu3 %v368_v13  ;;  %253 = vmatpush.msra.mxu1 %v368_v13 }
  0x1a   : > { %386 = vmatpush.msra.mxu2 %v190_v14  ;;  %220 = vmatpush.msra.mxu0 %v190_v14 }
  0x1b   : > { %394 = vmatpush.msra.mxu3 %v367_v15  ;;  %366 = vmatmul.msk.f32.vlgmr.msra.gmra.mxu2 %vm198_vm0, %v189_v16 }
  0x1c   : > { %376 = vmatmul.msk.f32.vlgmr.msra.gmra.mxu3 %vm198_vm0, %v189_v16  ;;  %254 = vmatpush.msra.mxu1 %v367_v15 }
  0x1d   : > { %365 = vmatmul.msk.f32.vlgmr.msra.gmra.mxu0 %vm198_vm0, %v188_v17  ;;  %375 = vmatmul.msk.f32.vlgmr.msra.gmra.mxu1 %vm198_vm0, %v188_v17 }
  0x9a   : > { %v222_v18 = vpop.f32.mrf.mxu0  ;;  %v256_v19 = vpop.f32.mrf.mxu1 }
  0x9b   : > { %228 = vst.msk [vmem:[%s180_s27] sm:$0xff] %vm198_vm0, %v222_v18 }
  0x9c   : > { %262 = vst.msk [vmem:[%s186_s30] sm:$0xff] %vm198_vm0, %v256_v19 }
  0x9e   : > { %v225_v20 = vpop.f32.mrf.mxu2 }
  0x9f   : > { %v259_v21 = vpop.f32.mrf.mxu3  ;;  %229 = vst.msk [vmem:[%s180_s27 + $0x8] sm:$0xff] %vm198_vm0, %v225_v20 }
  0xa0   : > { %263 = vst.msk [vmem:[%s186_s30 + $0x8] sm:$0xff] %vm198_vm0, %v259_v21 }
  0xa1 PF: > { %s14_s12 = sadd.s32 1, %s409_s12  }
  0xa2   : > { %p11_p4 = scmp.ge.s32.totalorder %s14_s12, 4  }
  0xa4   :  { %13 = sbr.rel (!%p11_p4) target bundleno = 1 (0x1), region = 71 }

// kernel: transformer_forward.37
= control target key start
LH: loop header
LB: loop body
LE: loop exit
PB: predicated region body
PF: predicated region fallthrough
CT: control target
= control target key end

     0   :  { %8 = vsyncpa [#allocation3], 0  ;;  %s752_s0 = inlined_call_operand.vmem [shape: f32[32,64], index: 0, kind: input, shape index: {}]   ;;  %s753_s1 = inlined_call_operand.vmem [shape: f32[128,64], index: 1, kind: input, shape index: {}]   ;;  %s754_s2 = inlined_call_operand.vmem [shape: f32[1,128], index: 2, kind: input, shape index: {}]   ;;  %s755_s3 = inlined_call_operand.hbm [shape: f32[32,128], index: 3, kind: output, shape index: {}]  }
   0x1   :  { %10 = vsyncpa [#allocation3 + $0x1], 0  ;;  %s579_s12 = smov 0   ;;  %s581_s13 = smov 0  }
   0x2   :  { %s583_s14 = smov 0   ;;  %s585_s15 = smov 0  }
   0x3 LB: > { %s600_s16 = sadd.s32 4294967295, %s555_s15   ;;  %s396_s17 = sadd.s32 4294967294, %s555_s15   ;;  %s555_s15 = sphi %s585_s15, %s761_s15   ;;  %s551_s14 = sphi %s583_s14, %s760_s14   ;;  %s547_s13 = sphi %s581_s13, %s759_s13   ;;  %s543_s12 = sphi %s579_s12, %s758_s12  }
   0x4   : > { %s604_s18 = sadd.s32 1, %s555_s15   ;;  %s91_s19 = sadd.s32 1, %s551_s14 }
   0x5   : > { %s88_s20 = ssub.s32 %s555_s15, %s604_s18  ;;  %p101_p0 = scmp.ne.s32.totalorder %s551_s14, %s547_s13 }
   0x6   : > { %p89_p1 = scmp.eq.s32.totalorder %s88_s20, 0  ;;  %p102_p2 = scmp.eq.s32.totalorder %s600_s16, 1 }
   0x7   : > { %p107_p3 = scmp.ne.s32.totalorder %s547_s13, %s543_s12  ;;  %p108_p4 = scmp.eq.s32.totalorder %s396_s17, 1 }
   0x8   : > { %s615_s21 = scalar_select %p89_p1, %s551_s14, %s91_s19  }
   0x9   : > { %p617_p5 = por %p102_p2, %p101_p0  ;;  %p621_p6 = por %p108_p4, %p107_p3 }
   0xa   : > { %p399_p7 = scmp.ge.s32.totalorder %s555_s15, 1  ;;  %p141_p8 = scmp.lt.s32.totalorder %s555_s15, 3 }
   0xc   : > { %p142_p9 = pnand %p399_p7, %p141_p8 }
   0xd   : > { %s401_s30 = sshll.u32 (!%p142_p9), %s600_s16, 1  ;;  %s162_s27 = sand.u32 (!%p142_p9), 1, %s547_s13  }
   0xe   : > { %145 = sbr.rel (%p142_p9) target bundleno = 485 (0x1e5), region = 32  ;;  %p166_p10 = scmp.lt.s32.totalorder (!%p142_p9), %s401_s30, 3 }
   0xf   : > { %s400_s28 = sshll.u32 (!%p142_p9), %s162_s27, 4  ;;  %s426_s29 = sshll.u32 (!%p142_p9), %s600_s16, 4 }
  0x10   : > { %s330_s5 = scalar_lea.hbm (!%p142_p9), %s755_s3, %s426_s29  ;;  %s164_s6 = scalar_lea.vmem (!%p142_p9), [#allocation2], %s400_s28 }
  0x11   : > { %s331_s7 = sshll.u32 (!%p142_p9), %s164_s6, 4  ;;  %s333_s8 = sshll.u32 (!%p142_p9), %s330_s5, 4  ;;  %s332_s7 = int_to_ptr.vmem [resolvable:$true] %s331_s7  ;;  %s334_s8 = int_to_ptr.hbm [resolvable:$true] %s333_s8 }
  0x12   : > { %s319_s16 = scalar_lea.sflag (!%p142_p9), [#allocation3], %s162_s27  ;;  %s507_s9 = sshra.s32 (!%p142_p9), %s334_s8, 4  ;;  %s508_s9 = int_to_ptr.hbm [resolvable:$true] %s507_s9 }
  0x13   : > { %v189_v0 = vld [vmem:[%s753_s1 + $0x78] sm:$0xff]  ;;  %vm194_vm0 = vcmask 523264   ;;  %v188_v1 = vld [vmem:[%s753_s1 + $0x70] sm:$0xff]  ;;  %v187_v2 = vld [vmem:[%s753_s1 + $0x68] sm:$0xff]  ;;  %s763_s30 = smov (!%p166_p10, %s401_s30), 3  ;;  %s513_s19 = scalar_lea.hbm %s755_s3, 32 }
  0x14   : > { %403 = vmatpush.xpose.msk.msra.mxu0 %vm194_vm0, %v189_v0  ;;  %427 = vmatpush.xpose.msk.msra.mxu1 %vm194_vm0, %v189_v0  ;;  %v186_v3 = vld [vmem:[%s753_s1 + $0x60] sm:$0xff]  ;;  %v185_v4 = vld [vmem:[%s753_s1 + $0x58] sm:$0xff]  ;;  %v184_v5 = vld [vmem:[%s753_s1 + $0x50] sm:$0xff]  ;;  %s402_s10 = sshll.u32 %s763_s30, 3  ;;  %p514_p0 = scmp.lt.s32.totalorder %s508_s9, %s755_s3 }
  0x15   : > { %v183_v6 = vld [vmem:[%s753_s1 + $0x48] sm:$0xff]  ;;  %v182_v7 = vld [vmem:[%s753_s1 + $0x40] sm:$0xff]  ;;  %v181_v8 = vld [vmem:[%s753_s1 + $0x38] sm:$0xff]  ;;  %s169_s24 = scalar_lea.vmem %s752_s0, %s402_s10  ;;  %s509_s10 = scalar_lea.hbm %s508_s9, 16 }
  0x16   : > { %v180_v9 = vld [vmem:[%s753_s1 + $0x30] sm:$0xff]  ;;  %v179_v10 = vld [vmem:[%s753_s1 + $0x28] sm:$0xff]  ;;  %v178_v11 = vld [vmem:[%s753_s1 + $0x20] sm:$0xff]  ;;  %p510_p11 = scmp.ne.s32.totalorder %s508_s9, %s509_s10  ;;  %p515_p1 = scmp.lt.s32.totalorder %s513_s19, %s509_s10 }
  0x17   : > { %v177_v12 = vld [vmem:[%s753_s1 + $0x18] sm:$0xff]  ;;  %v176_v13 = vld [vmem:[%s753_s1 + $0x10] sm:$0xff]  ;;  %v175_v14 = vld [vmem:[%s753_s1 + $0x8] sm:$0xff] }
  0x18   : > { %404 = vmatpush.xpose.msk.msra.mxu0 %vm194_vm0, %v188_v1  ;;  %428 = vmatpush.xpose.msk.msra.mxu1 %vm194_vm0, %v188_v1  ;;  %v174_v15 = vld [vmem:[%s753_s1] sm:$0xff]  ;;  %v173_v17 = vld [vmem:[%s169_s24 + $0x8] sm:$0xff]  ;;  %p511_p12 = pnand %p510_p11, %p617_p5  ;;  %p516_p2 = por %p515_p1, %p514_p0 }
  0x19   : > { %v172_v16 = vld [vmem:[%s169_s24] sm:$0xff] }
  0x1a   : > { %v484_v18 = vld [vmem:[%s754_s2] ss:$0 sm:$0xff]  ;;  %p512_p13 = pneg %p511_p12 }
  0x1c   : > { %405 = vmatpush.xpose.msk.msra.mxu0 %vm194_vm0, %v187_v2  ;;  %429 = vmatpush.xpose.msk.msra.mxu1 %vm194_vm0, %v187_v2  ;;  %p517_p3 = pnand %p516_p2, %p512_p13 }
  0x20   : > { %406 = vmatpush.xpose.msk.msra.mxu0 %vm194_vm0, %v186_v3  ;;  %430 = vmatpush.xpose.msk.msra.mxu1 %vm194_vm0, %v186_v3 }
  0x24   : > { %407 = vmatpush.xpose.msk.msra.mxu0 %vm194_vm0, %v185_v4  ;;  %431 = vmatpush.xpose.msk.msra.mxu1 %vm194_vm0, %v185_v4 }
  0x28   : > { %408 = vmatpush.xpose.msk.msra.mxu0 %vm194_vm0, %v184_v5  ;;  %432 = vmatpush.xpose.msk.msra.mxu1 %vm194_vm0, %v184_v5 }
  0x2c   : > { %409 = vmatpush.xpose.msk.msra.mxu0 %vm194_vm0, %v183_v6  ;;  %433 = vmatpush.xpose.msk.msra.mxu1 %vm194_vm0, %v183_v6 }
  0x30   : > { %410 = vmatpush.xpose.msk.msra.mxu0 %vm194_vm0, %v182_v7  ;;  %434 = vmatpush.xpose.msk.msra.mxu1 %vm194_vm0, %v182_v7 }
  0x34   : > { %411 = vmatpush.xpose.msk.msra.mxu0 %vm194_vm0, %v181_v8  ;;  %435 = vmatpush.xpose.msk.msra.mxu1 %vm194_vm0, %v181_v8 }
  0x38   : > { %412 = vmatpush.xpose.msk.msra.mxu0 %vm194_vm0, %v180_v9  ;;  %436 = vmatpush.xpose.msk.msra.mxu1 %vm194_vm0, %v180_v9 }
  0x3c   : > { %413 = vmatpush.xpose.msk.msra.mxu0 %vm194_vm0, %v179_v10  ;;  %437 = vmatpush.xpose.msk.msra.mxu1 %vm194_vm0, %v179_v10 }
  0x40   : > { %414 = vmatpush.xpose.msk.msra.mxu0 %vm194_vm0, %v178_v11  ;;  %438 = vmatpush.xpose.msk.msra.mxu1 %vm194_vm0, %v178_v11 }
  0x44   : > { %415 = vmatpush.xpose.msk.msra.mxu0 %vm194_vm0, %v177_v12  ;;  %439 = vmatpush.xpose.msk.msra.mxu1 %vm194_vm0, %v177_v12 }
  0x48   : > { %416 = vmatpush.xpose.msk.msra.mxu0 %vm194_vm0, %v176_v13  ;;  %440 = vmatpush.xpose.msk.msra.mxu1 %vm194_vm0, %v176_v13 }
  0x4c   : > { %417 = vmatpush.xpose.msk.msra.mxu0 %vm194_vm0, %v175_v14  ;;  %441 = vmatpush.xpose.msk.msra.mxu1 %vm194_vm0, %v175_v14 }
  0x50   : > { %418 = vmatpush.xpose.msk.msra.mxu0 %vm194_vm0, %v174_v15  ;;  %442 = vmatpush.xpose.msk.msra.mxu1 %vm194_vm0, %v174_v15 }
  0x53   : > { %419 = vmatmul.msk.f32.vlgmr.msra.gmra.mxu0 %vm194_vm0, %v172_v16  ;;  %420 = vmatmul.msk.f32.vlgmr.msra.gmra.mxu1 %vm194_vm0, %v173_v17 }
  0xd0   : > { %v266_v19 = vpop.f32.mrf.mxu0  ;;  %v269_v21 = vpop.f32.mrf.mxu1 }
  0xd1   : > { %v267_v20 = vadd.f32 %v484_v18, %v266_v19  ;;  %v270_v22 = vadd.f32 %v484_v18, %v269_v21 }
  0xd3   : > { %272 = vmax.xlane.f32.xlu0 %v267_v20 }
  0xdb   : > { %274 = vmax.xlane.f32.xlu0 %v270_v22 }
 0x146   : > { %v273_v23 = vpop.xlane.xlu0 %272 }
 0x147   : > { %v276_v24 = vsub.f32 %v267_v20, %v273_v23 }
 0x149   : > { %v278_v25 = vmul.f32 1.442695, %v276_v24 }
 0x14b   : > { %485 = vpow2.f32 %v278_v25 }
 0x14e   : > { %v275_v26 = vpop.xlane.xlu0 %274 }
 0x14f   : > { %v277_v27 = vsub.f32 %v270_v22, %v275_v26 }
 0x151   : > { %v486_v28 = vpop.eup %485  ;;  %v280_v29 = vmul.f32 1.442695, %v277_v27 }
 0x152   : > { %282 = vadd.xlane.f32.xlu1 %v486_v28 }
 0x153   : > { %487 = vpow2.f32 %v280_v29 }
 0x159   : > { %v488_v30 = vpop.eup %487 }
 0x15a   : > { %284 = vadd.xlane.f32.xlu1 %v488_v30 }
 0x1c5   : > { %v283_v31 = vpop.xlane.xlu1 %282 }
 0x1c6   : > { %489 = vrcp.f32 %v283_v31  ;;  %v297_v36 = vand.u32 2147483648, %v283_v31  ;;  %v295_v38 = vand.u32 2147483647, %v283_v31  ;;  %vm291_vm2 = vweird.f32 %v283_v31 }
 0x1c8   : > { %v298_v41 = vor.u32 1.1754944e-38, %v297_v36  ;;  %vm296_vm4 = vcmp.eq.f32.partialorder %v295_v38, 8.507059e+37 }
 0x1cc   : > { %v490_v32 = vpop.eup %489 }
 0x1cd   : > { %v287_v33 = vmul.f32 %v490_v32, %v283_v31  ;;  %v285_v34 = vpop.xlane.xlu1 %284  ;;  %vm292_vm1 = vweird.f32 %v490_v32 }
 0x1ce   : > { %491 = vrcp.f32 %v285_v34  ;;  %vm293_vm3 = vmor %vm291_vm2, %vm292_vm1  ;;  %v312_v47 = vand.u32 2147483648, %v285_v34  ;;  %v310_v49 = vand.u32 2147483647, %v285_v34  ;;  %vm306_vm6 = vweird.f32 %v285_v34 }
 0x1cf   : > { %v288_v35 = vsub.f32 1.0, %v287_v33 }
 0x1d0   : > { %v313_v51 = vor.u32 1.1754944e-38, %v312_v47  ;;  %vm311_vm8 = vcmp.eq.f32.partialorder %v310_v49, 8.507059e+37 }
 0x1d1   : > { %v289_v37 = vmul.f32 %v490_v32, %v288_v35 }
 0x1d3   : > { %v290_v39 = vadd.f32 %v490_v32, %v289_v37 }
 0x1d4   : > { %v492_v40 = vpop.eup %491 }
 0x1d5   : > { %v294_v42 = vsel %vm293_vm3, %v490_v32, %v290_v39  ;;  %v302_v43 = vmul.f32 %v492_v40, %v285_v34  ;;  %vm307_vm5 = vweird.f32 %v492_v40 }
 0x1d6   : > { %v299_v44 = vsel %vm296_vm4, %v298_v41, %v294_v42  ;;  %vm308_vm7 = vmor %vm306_vm6, %vm307_vm5 }
 0x1d7   : > { %v300_v45 = vmul.f32 %v486_v28, %v299_v44  ;;  %v303_v46 = vsub.f32 1.0, %v302_v43 }
 0x1d9   : > { %v304_v48 = vmul.f32 %v492_v40, %v303_v46  ;;  %316 = vst [vmem:[%s164_s6] sm:$0xff] %v300_v45 }
 0x1db   : > { %v305_v50 = vadd.f32 %v492_v40, %v304_v48 }
 0x1dd   : > { %v309_v52 = vsel %vm308_vm7, %v492_v40, %v305_v50 }
 0x1de   : > { %v314_v53 = vsel %vm311_vm8, %v313_v51, %v309_v52 }
 0x1df   : > { %v315_v54 = vmul.f32 %v488_v30, %v314_v53 }
 0x1e1   : > { %317 = vst [vmem:[%s164_s6 + $0x8] sm:$0xff] %v315_v54 }
 0x1e2   : > { %520 = shalt.err (!%p517_p3)
}
 0x1e3   : > { %s557_s25 = smov 128   ;;  %s558_s26 = smov 8  }
 0x1e4   : > { %443 = dma.vmem_to_hbm [thread:$0]  (%p617_p5), %s332_s7, 256, %s334_s8, %s319_s16, %s557_s25, %s557_s25, %s558_s26  }
 0x1e5 PF: > { %p449_p4 = scmp.ge.s32.totalorder %s555_s15, 2  ;;  %s348_s27 = sand.u32 1, %s543_s12  }
 0x1e6   : > { %s349_s28 = scalar_lea.sflag [#allocation3], %s348_s27 }
 0x1e7   : > { %p446_p7 = pnand %p449_p4, %p621_p6 }
 0x1e9   : > { %p447_p8 = pneg %p446_p7 }
 0x1eb   : > { %538 = dma.done.wait (%p447_p8), %s349_s28, 256  }
 0x1ec   : > { %540 = vsyncadd (%p447_p8), %s349_s28, 4294967040  ;;  %p13_p9 = scmp.ge.s32.totalorder %s604_s18, 4   ;;  %s758_s12 = smov %s547_s13 }
 0x1ed   : > { %s759_s13 = smov %s551_s14  ;;  %s760_s14 = smov %s615_s21 }
 0x1ee   : > { %s761_s15 = smov %s604_s18  ;;  %15 = sbr.rel (!%p13_p9) target bundleno = 3 (0x3), region = 67 }
 0x1f3   :  { %355 = vsyncpa [#allocation3], 1 }
 0x1f4   :  { %357 = vsyncpa [#allocation3 + $0x1], 1 }

// kernel: transformer_forward.29
= control target key start
LH: loop header
LB: loop body
LE: loop exit
PB: predicated region body
PF: predicated region fallthrough
CT: control target
= control target key end

     0   :  { %s1386_s27 = smov 0   ;;  %s1591_s0 = inlined_call_operand.vmem [shape: f32[2,4,16,16], index: 0, kind: input, shape index: {}]   ;;  %s1592_s1 = inlined_call_operand.vmem [shape: f32[2,4,16,16], index: 1, kind: input, shape index: {}]   ;;  %s1593_s2 = inlined_call_operand.vmem [shape: f32[2,4,16,16], index: 2, kind: input, shape index: {}]   ;;  %s1594_s3 = inlined_call_operand.vmem [shape: f32[2,16,1], index: 3, kind: input, shape index: {}]   ;;  %s1595_s4 = inlined_call_operand.vmem [shape: f32[4,16,64], index: 4, kind: input, shape index: {}]   ;;  %s1596_s5 = inlined_call_operand.vmem [shape: f32[2,16,64], index: 5, kind: input, shape index: {}]   ;;  %s1597_s6 = inlined_call_operand.vmem [shape: f32[1,64], index: 6, kind: input, shape index: {}]   ;;  %s1598_s7 = inlined_call_operand.vmem [shape: f32[1,64], index: 7, kind: input, shape index: {}]   ;;  %s1599_s8 = inlined_call_operand.vmem [shape: f32[2,16,64], index: 8, kind: output, shape index: {}]  }
   0x1 LB: > { %s1213_s28 = sadd.s32 4294967295, %s1336_s27   ;;  %p1217_p0 = scmp.ge.s32.totalorder %s1336_s27, 1  ;;  %s1336_s27 = sphi %s1386_s27, %s18_s27  }
   0x2   : > { %p302_p1 = scmp.lt.s32.totalorder %s1336_s27, 3 }
   0x4   : > { %p303_p2 = pnand %p1217_p0, %p302_p1 }
   0x5   : > { %p356_p3 = scmp.lt.s32.totalorder (!%p303_p2), %s1213_s28, 1 }
   0x6   : > { %306 = sbr.rel (%p303_p2) target bundleno = 991 (0x3df), region = 52 }
   0xb   : > { %v1338_v0 = vmov 0   ;;  %s1609_s28 = smov (!%p356_p3, %s1213_s28), 1  ;;  %vm410_vm0 = vcmask 130048   ;;  %v1339_v21 = vmov 4.0   ;;  %v565_v24 = vlaneseq }
   0xc   : > { %1287 = vset.pattern.permute.xlu0 %v1338_v0  ;;  %s1394_s29 = sshll.u32 %s1609_s28, 6  ;;  %s1396_s30 = sshll.u32 %s1609_s28, 4  ;;  %1290 = vrcp.f32 %v1339_v21 }
   0xd   : > { %s365_s11 = scalar_lea.vmem %s1592_s1, %s1394_s29  ;;  %s375_s14 = scalar_lea.vmem %s1594_s3, %s1396_s30  ;;  %v566_v26 = vshrl.u32 %v565_v24, 7  ;;  %v569_v27 = vand.u32 127, %v565_v24 }
   0xe   : > { %v395_v1 = vld [vmem:[%s365_s11 + $0x8] sm:$0xff]  ;;  %v397_v2 = vld [vmem:[%s365_s11 + $0x18] sm:$0xff]  ;;  %v394_v5 = vld [vmem:[%s365_s11] sm:$0xff]  ;;  %s360_s17 = scalar_lea.vmem %s1591_s0, %s1394_s29  ;;  %s370_s20 = scalar_lea.vmem %s1593_s2, %s1394_s29 }
   0xf   : > { %v399_v3 = vld [vmem:[%s365_s11 + $0x28] sm:$0xff]  ;;  %1230 = vmatpush.xpose.msk.msra.mxu0 %vm410_vm0, %v395_v1  ;;  %1234 = vmatpush.xpose.msk.msra.mxu1 %vm410_vm0, %v397_v2  ;;  %v401_v4 = vld [vmem:[%s365_s11 + $0x38] sm:$0xff]  ;;  %v396_v6 = vld [vmem:[%s365_s11 + $0x10] sm:$0xff]  ;;  %vm570_vm3 = vcmp.le.s32.totalorder %v569_v27, %v566_v26  ;;  %v567_v39 = vadd.s32 8, %v566_v26  ;;  %s380_s19 = scalar_lea.vmem %s1596_s5, %s1396_s30  ;;  %s385_s26 = scalar_lea.vmem %s1599_s8, %s1396_s30 }
  0x10   : > { %1238 = vmatpush.xpose.msk.msra.mxu2 %vm410_vm0, %v399_v3  ;;  %1242 = vmatpush.xpose.msk.msra.mxu3 %vm410_vm0, %v401_v4  ;;  %v398_v7 = vld [vmem:[%s365_s11 + $0x20] sm:$0xff]  ;;  %v400_v8 = vld [vmem:[%s365_s11 + $0x30] sm:$0xff]  ;;  %v552_v15 = vld [vmem:[%s375_s14 + $0x8] sm:$0xff] }
  0x11   : > { %v551_v9 = vld [vmem:[%s375_s14] sm:$0xff]  ;;  %v388_v11 = vld [vmem:[%s360_s17 + $0x10] sm:$0xff]  ;;  %vm554_vm2 = vcmp.gt.f32.partialorder %v552_v15, 0.5  ;;  %v387_v17 = vld [vmem:[%s360_s17 + $0x8] sm:$0xff]  ;;  %vm571_vm7 = vcmp.le.s32.totalorder %v569_v27, %v567_v39 }
  0x12   : > { %v386_v10 = vld [vmem:[%s360_s17] sm:$0xff]  ;;  %vm553_vm1 = vcmp.gt.f32.partialorder %v551_v9, 0.5  ;;  %v392_v13 = vld [vmem:[%s360_s17 + $0x30] sm:$0xff]  ;;  %v556_v16 = vsel %vm554_vm2, 1, %v1338_v0  ;;  %v389_v18 = vld [vmem:[%s360_s17 + $0x18] sm:$0xff]  ;;  %v1291_v22 = vpop.eup %1290 }
  0x13   : > { %1231 = vmatpush.xpose.msk.msra.mxu0 %vm410_vm0, %v394_v5  ;;  %1235 = vmatpush.xpose.msk.msra.mxu1 %vm410_vm0, %v396_v6  ;;  %v390_v12 = vld [vmem:[%s360_s17 + $0x20] sm:$0xff]  ;;  %v555_v14 = vsel %vm553_vm1, 1, %v1338_v0  ;;  %v391_v19 = vld [vmem:[%s360_s17 + $0x28] sm:$0xff]  ;;  %v393_v20 = vld [vmem:[%s360_s17 + $0x38] sm:$0xff]  ;;  %v587_v23 = vmul.f32 4.0, %v1291_v22  ;;  %vm591_vm5 = vweird.f32 %v1291_v22 }
  0x14   : > { %1239 = vmatpush.xpose.msk.msra.mxu2 %vm410_vm0, %v398_v7  ;;  %1243 = vmatpush.xpose.msk.msra.mxu3 %vm410_vm0, %v400_v8 }
  0x15   : > { %558 = vperm.xlu0 %1287, %v555_v14   ;;  %v588_v25 = vsub.f32 1.0, %v587_v23 }
  0x16   : > { %1232 = vmatmul.msk.f32.vlgmr.msra.gmra.mxu0 %vm410_vm0, %v386_v10  ;;  %1236 = vmatmul.msk.f32.vlgmr.msra.gmra.mxu1 %vm410_vm0, %v388_v11 }
  0x17   : > { %1240 = vmatmul.msk.f32.vlgmr.msra.gmra.mxu2 %vm410_vm0, %v390_v12  ;;  %1244 = vmatmul.msk.f32.vlgmr.msra.gmra.mxu3 %vm410_vm0, %v392_v13  ;;  %v589_v28 = vmul.f32 %v1291_v22, %v588_v25 }
  0x19   : > { %v590_v30 = vadd.f32 %v1291_v22, %v589_v28 }
  0x1b   : > { %v592_v32 = vsel %vm591_vm5, %v1291_v22, %v590_v30 }
  0x1d   : > { %561 = vperm.xlu0 %1287, %v556_v16  }
  0x1e   : > { %1233 = vmatmul.msk.f32.gmra.mxu0 %vm410_vm0, %v387_v17  ;;  %1237 = vmatmul.msk.f32.gmra.mxu1 %vm410_vm0, %v389_v18 }
  0x1f   : > { %1241 = vmatmul.msk.f32.gmra.mxu2 %vm410_vm0, %v391_v19  ;;  %1245 = vmatmul.msk.f32.gmra.mxu3 %vm410_vm0, %v393_v20 }
  0x87   : > { %v559_v29 = vpop.permute.xlu0 %558 }
  0x88   : > { %vm563_vm4 = vcmp.eq.s32.totalorder %v559_v29, 1 }
  0x89   : > { %vm1426_vm6 = vmor %vm563_vm4, %vm570_vm3 }
  0x8f   : > { %v562_v41 = vpop.permute.xlu0 %561 }
  0x90   : > { %vm564_vm8 = vcmp.eq.s32.totalorder %v562_v41, 1 }
  0x91   : > { %vm1438_vm9 = vmor %vm564_vm8, %vm571_vm7 }
  0x93   : > { %v475_v33 = vpop.f32.mrf.mxu1  ;;  %v440_v45 = vpop.f32.mrf.mxu0 }
  0x94   : > { %v580_v34 = vsel %vm1426_vm6, -1e+09, %v475_v33  ;;  %v578_v54 = vsel %vm1426_vm6, -1e+09, %v440_v45  ;;  %v406_v45 = vld [vmem:[%s370_s20 + $0x20] sm:$0xff] }
  0x95   : > { %v595_v35 = vmul.f32 %v592_v32, %v580_v34  ;;  %v593_v56 = vmul.f32 %v592_v32, %v578_v54 }
  0x97   : > { %v607_v36 = vsel %vm410_vm0, %v595_v35, -inf  ;;  %v601_v61 = vsel %vm410_vm0, %v593_v56, -inf }
  0x98   : > { %608 = vmax.xlane.f32.xlu0 %v607_v36 }
  0x9a   : > { %v510_v37 = vpop.f32.mrf.mxu2  ;;  %v545_v38 = vpop.f32.mrf.mxu3 }
  0x9b   : > { %v582_v40 = vsel %vm1426_vm6, -1e+09, %v510_v37  ;;  %v584_v44 = vsel %vm1426_vm6, -1e+09, %v545_v38  ;;  %v443_v58 = vpop.f32.mrf.mxu0  ;;  %v478_v59 = vpop.f32.mrf.mxu1 }
  0x9c   : > { %v597_v42 = vmul.f32 %v592_v32, %v582_v40  ;;  %v599_v47 = vmul.f32 %v592_v32, %v584_v44  ;;  %v579_v62 = vsel %vm1438_vm9, -1e+09, %v443_v58  ;;  %v581_v63 = vsel %vm1438_vm9, -1e+09, %v478_v59  ;;  %v407_v44 = vld [vmem:[%s370_s20 + $0x28] sm:$0xff]  ;;  %v408_v59 = vld [vmem:[%s370_s20 + $0x30] sm:$0xff] }
  0x9d   : > { %v594_v0 = vmul.f32 %v592_v32, %v579_v62  ;;  %v596_v1 = vmul.f32 %v592_v32, %v581_v63  ;;  %871 = vmatpush.msrb.mxu2 %v407_v44 }
  0x9e   : > { %v613_v43 = vsel %vm410_vm0, %v597_v42, -inf  ;;  %v619_v52 = vsel %vm410_vm0, %v599_v47, -inf }
  0x9f   : > { %614 = vmax.xlane.f32.xlu1 %v613_v43  ;;  %v610_v2 = vsel %vm410_vm0, %v596_v1, -inf  ;;  %v604_v3 = vsel %vm410_vm0, %v594_v0, -inf  ;;  %872 = vmatpush.msrb.mxu2 %v406_v45 }
  0xa2   : > { %v513_v48 = vpop.f32.mrf.mxu2  ;;  %v548_v51 = vpop.f32.mrf.mxu3 }
  0xa3   : > { %v583_v49 = vsel %vm1438_vm9, -1e+09, %v513_v48  ;;  %v585_v55 = vsel %vm1438_vm9, -1e+09, %v548_v51  ;;  %v405_v48 = vld [vmem:[%s370_s20 + $0x18] sm:$0xff] }
  0xa4   : > { %v598_v50 = vmul.f32 %v592_v32, %v583_v49  ;;  %v600_v57 = vmul.f32 %v592_v32, %v585_v55  ;;  %842 = vmatpush.msrb.mxu1 %v405_v48  ;;  %v402_v49 = vld [vmem:[%s370_s20] sm:$0xff] }
  0xa6   : > { %v616_v53 = vsel %vm410_vm0, %v598_v50, -inf  ;;  %v622_v60 = vsel %vm410_vm0, %v600_v57, -inf }
  0xa7   : > { %620 = vmax.xlane.f32.xlu1 %v619_v52  ;;  %617 = vmax.xlane.f32.xlu2 %v616_v53  ;;  %v409_v52 = vld [vmem:[%s370_s20 + $0x38] sm:$0xff] }
  0xa8   : > { %900 = vmatpush.msrb.mxu3 %v409_v52 }
  0xaa   : > { %901 = vmatpush.msrb.mxu3 %v408_v59 }
  0xaf   : > { %623 = vmax.xlane.f32.xlu1 %v622_v60  ;;  %602 = vmax.xlane.f32.xlu2 %v601_v61 }
  0xb7   : > { %611 = vmax.xlane.f32.xlu1 %v610_v2  ;;  %605 = vmax.xlane.f32.xlu2 %v604_v3 }
 0x10b   : > { %v609_v8 = vpop.xlane.xlu0 %608 }
 0x10c   : > { %v627_v12 = vsub.f32 %v595_v35, %v609_v8 }
 0x10e   : > { %v637_v15 = vmul.f32 1.442695, %v627_v12 }
 0x112   : > { %v615_v4 = vpop.xlane.xlu1 %614 }
 0x113   : > { %v629_v5 = vsub.f32 %v597_v42, %v615_v4 }
 0x115   : > { %v641_v6 = vmul.f32 1.442695, %v629_v5 }
 0x117   : > { %1292 = vpow2.f32 %v641_v6 }
 0x11a   : > { %v618_v7 = vpop.xlane.xlu2 %617  ;;  %v621_v14 = vpop.xlane.xlu1 %620 }
 0x11b   : > { %v630_v9 = vsub.f32 %v598_v50, %v618_v7  ;;  %v631_v20 = vsub.f32 %v599_v47, %v621_v14  ;;  %v403_v47 = vld [vmem:[%s370_s20 + $0x8] sm:$0xff]  ;;  %v404_v50 = vld [vmem:[%s370_s20 + $0x10] sm:$0xff] }
 0x11c   : > { %813 = vmatpush.msrb.mxu0 %v403_v47  ;;  %843 = vmatpush.msrb.mxu1 %v404_v50 }
 0x11d   : > { %v1458_v10 = vpop.eup %1292  ;;  %v643_v11 = vmul.f32 1.442695, %v630_v9  ;;  %v645_v23 = vmul.f32 1.442695, %v631_v20 }
 0x11e   : > { %v661_v13 = vsel %vm410_vm0, %v1458_v10, 0.0  ;;  %814 = vmatpush.msrb.mxu0 %v402_v49 }
 0x11f   : > { %662 = vadd.xlane.f32.xlu2 %v661_v13  ;;  %1294 = vpow2.f32 %v643_v11 }
 0x120   : > { %1296 = vpow2.f32 %v637_v15 }
 0x122   : > { %v603_v16 = vpop.xlane.xlu2 %602  ;;  %v624_v22 = vpop.xlane.xlu1 %623 }
 0x123   : > { %v625_v17 = vsub.f32 %v593_v56, %v603_v16  ;;  %v632_v29 = vsub.f32 %v600_v57, %v624_v22 }
 0x125   : > { %v633_v18 = vmul.f32 1.442695, %v625_v17  ;;  %v1462_v19 = vpop.eup %1294  ;;  %v647_v32 = vmul.f32 1.442695, %v632_v29 }
 0x126   : > { %v664_v21 = vsel %vm410_vm0, %v1462_v19, 0.0  ;;  %v1466_v26 = vpop.eup %1296 }
 0x127   : > { %1298 = vpow2.f32 %v633_v18  ;;  %665 = vadd.xlane.f32.xlu2 %v664_v21  ;;  %v655_v31 = vsel %vm410_vm0, %v1466_v26, 0.0 }
 0x128   : > { %1300 = vpow2.f32 %v645_v23 }
 0x12a   : > { %v606_v24 = vpop.xlane.xlu2 %605  ;;  %v612_v33 = vpop.xlane.xlu1 %611 }
 0x12b   : > { %v626_v25 = vsub.f32 %v594_v0, %v606_v24  ;;  %v628_v36 = vsub.f32 %v596_v1, %v612_v33 }
 0x12d   : > { %v635_v27 = vmul.f32 1.442695, %v626_v25  ;;  %v1468_v28 = vpop.eup %1298  ;;  %v639_v39 = vmul.f32 1.442695, %v628_v36  ;;  %v1261_v25 = vld [vmem:[%s1595_s4 + $0x28] sm:$0xff] }
 0x12e   : > { %v649_v30 = vsel %vm410_vm0, %v1468_v28, 0.0  ;;  %v1474_v34 = vpop.eup %1300  ;;  %995 = vmatpush.msra.mxu2 %v1261_v25 }
 0x12f   : > { %1302 = vpow2.f32 %v635_v27  ;;  %650 = vadd.xlane.f32.xlu1 %v649_v30  ;;  %656 = vadd.xlane.f32.xlu2 %v655_v31  ;;  %v667_v37 = vsel %vm410_vm0, %v1474_v34, 0.0 }
 0x130   : > { %1304 = vpow2.f32 %v647_v32 }
 0x131   : > { %1306 = vpow2.f32 %v639_v39 }
 0x135   : > { %v1476_v35 = vpop.eup %1302 }
 0x136   : > { %v652_v38 = vsel %vm410_vm0, %v1476_v35, 0.0  ;;  %v1482_v40 = vpop.eup %1304 }
 0x137   : > { %668 = vadd.xlane.f32.xlu1 %v667_v37  ;;  %653 = vadd.xlane.f32.xlu2 %v652_v38  ;;  %v670_v41 = vsel %vm410_vm0, %v1482_v40, 0.0  ;;  %v1486_v42 = vpop.eup %1306 }
 0x138   : > { %v658_v43 = vsel %vm410_vm0, %v1486_v42, 0.0 }
 0x13f   : > { %671 = vadd.xlane.f32.xlu1 %v670_v41 }
 0x147   : > { %659 = vadd.xlane.f32.xlu1 %v658_v43 }
 0x192   : > { %v663_v46 = vpop.xlane.xlu2 %662 }
 0x193   : > { %1308 = vrcp.f32 %v663_v46  ;;  %v744_v56 = vand.u32 2147483648, %v663_v46  ;;  %v742_v58 = vand.u32 2147483647, %v663_v46  ;;  %vm738_vm11 = vweird.f32 %v663_v46 }
 0x195   : > { %v745_v61 = vor.u32 1.1754944e-38, %v744_v56  ;;  %vm743_vm13 = vcmp.eq.f32.partialorder %v742_v58, 8.507059e+37 }
 0x199   : > { %v1309_v51 = vpop.eup %1308 }
 0x19a   : > { %v734_v53 = vmul.f32 %v1309_v51, %v663_v46  ;;  %v666_v54 = vpop.xlane.xlu2 %665  ;;  %vm739_vm10 = vweird.f32 %v1309_v51 }
 0x19b   : > { %1310 = vrcp.f32 %v666_v54  ;;  %vm740_vm12 = vmor %vm738_vm11, %vm739_vm10  ;;  %v759_v7 = vand.u32 2147483648, %v666_v54  ;;  %vm753_vm15 = vweird.f32 %v666_v54  ;;  %v757_v9 = vand.u32 2147483647, %v666_v54 }
 0x19c   : > { %v735_v55 = vsub.f32 1.0, %v734_v53 }
 0x19d   : > { %v760_v17 = vor.u32 1.1754944e-38, %v759_v7  ;;  %vm758_vm2 = vcmp.eq.f32.partialorder %v757_v9, 8.507059e+37 }
 0x19e   : > { %v736_v57 = vmul.f32 %v1309_v51, %v735_v55 }
 0x1a0   : > { %v737_v60 = vadd.f32 %v1309_v51, %v736_v57 }
 0x1a1   : > { %v1311_v62 = vpop.eup %1310 }
 0x1a2   : > { %v741_v63 = vsel %vm740_vm12, %v1309_v51, %v737_v60  ;;  %v749_v0 = vmul.f32 %v1311_v62, %v666_v54  ;;  %v651_v1 = vpop.xlane.xlu1 %650  ;;  %v657_v2 = vpop.xlane.xlu2 %656  ;;  %vm754_vm14 = vweird.f32 %v1311_v62 }
 0x1a3   : > { %v746_v3 = vsel %vm743_vm13, %v745_v61, %v741_v63  ;;  %1312 = vrcp.f32 %v651_v1  ;;  %vm755_vm1 = vmor %vm753_vm15, %vm754_vm14  ;;  %v684_v23 = vand.u32 2147483648, %v651_v1  ;;  %v682_v27 = vand.u32 2147483647, %v651_v1 }
 0x1a4   : > { %v750_v4 = vsub.f32 1.0, %v749_v0  ;;  %1314 = vrcp.f32 %v657_v2  ;;  %v747_v5 = vmul.f32 %v1458_v10, %v746_v3  ;;  %v714_v30 = vand.u32 2147483648, %v657_v2 }
 0x1a5   : > { %vm678_vm4 = vweird.f32 %v651_v1  ;;  %v712_v32 = vand.u32 2147483647, %v657_v2  ;;  %v685_v38 = vor.u32 1.1754944e-38, %v684_v23  ;;  %vm708_vm7 = vweird.f32 %v657_v2 }
 0x1a6   : > { %v751_v6 = vmul.f32 %v1311_v62, %v750_v4  ;;  %1250 = vmatmul.msk.f32.vlgmr.msrb.gmra.mxu2 %vm410_vm0, %v747_v5  ;;  %vm683_vm8 = vcmp.eq.f32.partialorder %v682_v27, 8.507059e+37  ;;  %v715_v44 = vor.u32 1.1754944e-38, %v714_v30  ;;  %v1255_v27 = vld [vmem:[%s1595_s4 + $0x18] sm:$0xff]  ;;  %v1254_v30 = vld [vmem:[%s1595_s4 + $0x10] sm:$0xff] }
 0x1a7   : > { %vm713_vm10 = vcmp.eq.f32.partialorder %v712_v32, 8.507059e+37  ;;  %934 = vmatpush.msra.mxu0 %v1255_v27  ;;  %v1264_v32 = vld [vmem:[%s1595_s4 + $0x30] sm:$0xff] }
 0x1a8   : > { %v752_v8 = vadd.f32 %v1311_v62, %v751_v6 }
 0x1a9   : > { %v1313_v11 = vpop.eup %1312  ;;  %935 = vmatpush.msra.mxu0 %v1254_v30 }
 0x1aa   : > { %v1315_v12 = vpop.eup %1314  ;;  %v674_v13 = vmul.f32 %v1313_v11, %v651_v1  ;;  %v1496_v14 = vpop.xlane.xlu1 %668  ;;  %v756_v16 = vsel %vm755_vm1, %v1311_v62, %v752_v8  ;;  %vm679_vm3 = vweird.f32 %v1313_v11 }
 0x1ab   : > { %v1498_v15 = vpop.xlane.xlu2 %653  ;;  %v704_v18 = vmul.f32 %v1315_v12, %v657_v2  ;;  %1316 = vrcp.f32 %v1496_v14  ;;  %v761_v21 = vsel %vm758_vm2, %v760_v17, %v756_v16  ;;  %vm709_vm5 = vweird.f32 %v1315_v12  ;;  %vm1507_vm6 = vmor %vm678_vm4, %vm679_vm3 }
 0x1ac   : > { %v675_v10 = vsub.f32 1.0, %v674_v13  ;;  %1318 = vrcp.f32 %v1498_v15  ;;  %v762_v24 = vmul.f32 %v1462_v19, %v761_v21  ;;  %vm710_vm9 = vmor %vm708_vm7, %vm709_vm5  ;;  %v774_v49 = vand.u32 2147483648, %v1496_v14 }
 0x1ad   : > { %v705_v20 = vsub.f32 1.0, %v704_v18  ;;  %v699_v54 = vand.u32 2147483648, %v1498_v15  ;;  %v772_v56 = vand.u32 2147483647, %v1496_v14  ;;  %v697_v58 = vand.u32 2147483647, %v1498_v15 }
 0x1ae   : > { %v676_v22 = vmul.f32 %v1313_v11, %v675_v10  ;;  %1251 = vmatmul.msk.f32.gmra.mxu2 %vm410_vm0, %v762_v24  ;;  %vm768_vm13 = vweird.f32 %v1496_v14  ;;  %vm693_vm15 = vweird.f32 %v1498_v15  ;;  %v775_v61 = vor.u32 1.1754944e-38, %v774_v49 }
 0x1af   : > { %v706_v29 = vmul.f32 %v1315_v12, %v705_v20  ;;  %v700_v62 = vor.u32 1.1754944e-38, %v699_v54  ;;  %vm773_vm2 = vcmp.eq.f32.partialorder %v772_v56, 8.507059e+37  ;;  %vm698_vm3 = vcmp.eq.f32.partialorder %v697_v58, 8.507059e+37 }
 0x1b0   : > { %v677_v31 = vadd.f32 %v1313_v11, %v676_v22 }
 0x1b1   : > { %v1317_v33 = vpop.eup %1316  ;;  %v707_v19 = vadd.f32 %v1315_v12, %v706_v29  ;;  %v910_v29 = vld [vmem:[%s1595_s4 + $0x8] sm:$0xff] }
 0x1b2   : > { %v1319_v37 = vpop.eup %1318  ;;  %v764_v39 = vmul.f32 %v1317_v33, %v1496_v14  ;;  %v672_v41 = vpop.xlane.xlu1 %671  ;;  %v681_v43 = vsel %vm1507_vm6, %v1313_v11, %v677_v31  ;;  %vm769_vm11 = vweird.f32 %v1317_v33  ;;  %963 = vmatpush.msra.mxu1 %v910_v29  ;;  %v909_v31 = vld [vmem:[%s1595_s4] sm:$0xff] }
 0x1b3   : > { %v689_v45 = vmul.f32 %v1319_v37, %v1498_v15  ;;  %1320 = vrcp.f32 %v672_v41  ;;  %v686_v47 = vsel %vm683_vm8, %v685_v38, %v681_v43  ;;  %v711_v48 = vsel %vm710_vm9, %v1315_v12, %v707_v19  ;;  %vm1524_vm14 = vmor %vm768_vm13, %vm769_vm11  ;;  %v1288_v29 = vld [vmem:[%s1597_s6] ss:$0 sm:$0xff] }
 0x1b4   : > { %v765_v46 = vsub.f32 1.0, %v764_v39  ;;  %v687_v51 = vmul.f32 %v1468_v28, %v686_v47  ;;  %v716_v52 = vsel %vm713_vm10, %v715_v44, %v711_v48  ;;  %vm694_vm12 = vweird.f32 %v1319_v37  ;;  %964 = vmatpush.msra.mxu1 %v909_v31  ;;  %v1289_v31 = vld [vmem:[%s1598_s7] ss:$0 sm:$0xff] }
 0x1b5   : > { %v690_v50 = vsub.f32 1.0, %v689_v45  ;;  %v717_v55 = vmul.f32 %v1466_v26, %v716_v52  ;;  %vm695_vm1 = vmor %vm693_vm15, %vm694_vm12  ;;  %v789_v6 = vand.u32 2147483648, %v672_v41  ;;  %v787_v11 = vand.u32 2147483647, %v672_v41 }
 0x1b6   : > { %v766_v53 = vmul.f32 %v1317_v33, %v765_v46  ;;  %1246 = vmatmul.msk.f32.vlgmr.msrb.gmra.mxu0 %vm410_vm0, %v687_v51  ;;  %vm783_vm5 = vweird.f32 %v672_v41  ;;  %vm1044_vm12 = vcmask 523264  }
 0x1b7   : > { %v691_v57 = vmul.f32 %v1319_v37, %v690_v50  ;;  %1248 = vmatmul.msk.f32.vlgmr.msrb.gmra.mxu1 %vm410_vm0, %v717_v55  ;;  %v790_v14 = vor.u32 1.1754944e-38, %v789_v6  ;;  %vm788_vm7 = vcmp.eq.f32.partialorder %v787_v11, 8.507059e+37  ;;  %v1040_v50 = vld [vmem:[%s380_s19] sm:$0xff] }
 0x1b8   : > { %v767_v59 = vadd.f32 %v1317_v33, %v766_v53 }
 0x1b9   : > { %v1321_v28 = vpop.eup %1320  ;;  %v692_v26 = vadd.f32 %v1319_v37, %v691_v57 }
 0x1ba   : > { %v779_v63 = vmul.f32 %v1321_v28, %v672_v41  ;;  %v660_v0 = vpop.xlane.xlu1 %659  ;;  %v771_v1 = vsel %vm1524_vm14, %v1317_v33, %v767_v59  ;;  %vm784_vm4 = vweird.f32 %v1321_v28 }
 0x1bb   : > { %1322 = vrcp.f32 %v660_v0  ;;  %v696_v2 = vsel %vm695_vm1, %v1319_v37, %v692_v26  ;;  %v776_v5 = vsel %vm773_vm2, %v775_v61, %v771_v1  ;;  %vm785_vm6 = vmor %vm783_vm5, %vm784_vm4  ;;  %v727_v20 = vand.u32 2147483647, %v660_v0 }
 0x1bc   : > { %v780_v3 = vsub.f32 1.0, %v779_v63  ;;  %v701_v4 = vsel %vm698_vm3, %v700_v62, %v696_v2  ;;  %v777_v8 = vmul.f32 %v1474_v34, %v776_v5  ;;  %v729_v34 = vand.u32 2147483648, %v660_v0 }
 0x1bd   : > { %v702_v7 = vmul.f32 %v1476_v35, %v701_v4  ;;  %vm723_vm9 = vweird.f32 %v660_v0  ;;  %vm728_vm11 = vcmp.eq.f32.partialorder %v727_v20, 8.507059e+37  ;;  %v1340_v62 = vmov 64.0  }
 0x1be   : > { %v781_v9 = vmul.f32 %v1321_v28, %v780_v3  ;;  %1252 = vmatmul.msk.f32.vlgmr.msrb.gmra.mxu3 %vm410_vm0, %v777_v8  ;;  %v730_v22 = vor.u32 1.1754944e-38, %v729_v34  ;;  %1324 = vrcp.f32 %v1340_v62 }
 0x1bf   : > { %1247 = vmatmul.msk.f32.gmra.mxu0 %vm410_vm0, %v702_v7 }
 0x1c0   : > { %v782_v12 = vadd.f32 %v1321_v28, %v781_v9 }
 0x1c1   : > { %v1323_v13 = vpop.eup %1322 }
 0x1c2   : > { %v719_v15 = vmul.f32 %v1323_v13, %v660_v0  ;;  %v786_v16 = vsel %vm785_vm6, %v1321_v28, %v782_v12  ;;  %vm724_vm8 = vweird.f32 %v1323_v13  ;;  %v1041_v28 = vld [vmem:[%s380_s19 + $0x8] sm:$0xff] }
 0x1c3   : > { %v791_v17 = vsel %vm788_vm7, %v790_v14, %v786_v16  ;;  %vm725_vm10 = vmor %vm723_vm9, %vm724_vm8 }
 0x1c4   : > { %v720_v18 = vsub.f32 1.0, %v719_v15  ;;  %v792_v35 = vmul.f32 %v1482_v40, %v791_v17  ;;  %v1260_v40 = vld [vmem:[%s1595_s4 + $0x20] sm:$0xff]  ;;  %v1325_v63 = vpop.eup %1324 }
 0x1c5   : > { %996 = vmatpush.msra.mxu2 %v1260_v40  ;;  %v1052_v0 = vmul.f32 64.0, %v1325_v63 }
 0x1c6   : > { %v721_v10 = vmul.f32 %v1323_v13, %v720_v18  ;;  %1253 = vmatmul.msk.f32.gmra.mxu3 %vm410_vm0, %v792_v35 }
 0x1c7   : > { %v1053_v1 = vsub.f32 1.0, %v1052_v0 }
 0x1c8   : > { %v722_v21 = vadd.f32 %v1323_v13, %v721_v10 }
 0x1c9   : > { %v1054_v2 = vmul.f32 %v1325_v63, %v1053_v1 }
 0x1ca   : > { %v726_v23 = vsel %vm725_vm10, %v1323_v13, %v722_v21 }
 0x1cb   : > { %v731_v24 = vsel %vm728_vm11, %v730_v22, %v726_v23  ;;  %v1055_v3 = vadd.f32 %v1325_v63, %v1054_v2 }
 0x1cc   : > { %v732_v25 = vmul.f32 %v1486_v42, %v731_v24  ;;  %v1265_v42 = vld [vmem:[%s1595_s4 + $0x38] sm:$0xff] }
 0x1cd   : > { %1029 = vmatpush.msra.mxu3 %v1265_v42 }
 0x1ce   : > { %1249 = vmatmul.msk.f32.gmra.mxu1 %vm410_vm0, %v732_v25 }
 0x1cf   : > { %1030 = vmatpush.msra.mxu3 %v1264_v32 }
 0x229   : > { %v874_v33 = vpop.f32.mrf.mxu2 }
 0x22a   : > { %1262 = vmatmul.msk.f32.vlgmr.msra.gmra.mxu2 %vm410_vm0, %v874_v33 }
 0x231   : > { %v877_v36 = vpop.f32.mrf.mxu2 }
 0x232   : > { %1263 = vmatmul.msk.f32.gmra.mxu2 %vm410_vm0, %v877_v36 }
 0x233   : > { %v816_v19 = vpop.f32.mrf.mxu0 }
 0x234   : > { %v845_v37 = vpop.f32.mrf.mxu1  ;;  %1258 = vmatmul.msk.f32.vlgmr.msra.gmra.mxu1 %vm410_vm0, %v816_v19 }
 0x235   : > { %1256 = vmatmul.msk.f32.vlgmr.msra.gmra.mxu0 %vm410_vm0, %v845_v37 }
 0x23c   : > { %v819_v38 = vpop.f32.mrf.mxu0 }
 0x23d   : > { %1259 = vmatmul.msk.f32.gmra.mxu1 %vm410_vm0, %v819_v38 }
 0x241   : > { %v903_v39 = vpop.f32.mrf.mxu3 }
 0x242   : > { %1266 = vmatmul.msk.f32.vlgmr.msra.gmra.mxu3 %vm410_vm0, %v903_v39 }
 0x249   : > { %v906_v41 = vpop.f32.mrf.mxu3 }
 0x24a   : > { %1267 = vmatmul.msk.f32.gmra.mxu3 %vm410_vm0, %v906_v41 }
 0x24b   : > { %v848_v43 = vpop.f32.mrf.mxu1 }
 0x24c   : > { %1257 = vmatmul.msk.f32.gmra.mxu0 %vm410_vm0, %v848_v43  ;;  %vm1056_vm0 = vweird.f32 %v1325_v63 }
 0x24d   : > { %v1057_v4 = vsel %vm1056_vm0, %v1325_v63, %v1055_v3 }
 0x2ad   : > { %v998_v46 = vpop.f32.mrf.mxu2 }
 0x2b1   : > { %v966_v45 = vpop.f32.mrf.mxu1 }
 0x2b2   : > { %v937_v44 = vpop.f32.mrf.mxu0 }
 0x2b3   : > { %v967_v47 = vadd.f32 %v966_v45, %v937_v44 }
 0x2b5   : > { %v1004_v48 = vadd.f32 %v998_v46, %v967_v47  ;;  %v1001_v56 = vpop.f32.mrf.mxu2 }
 0x2ba   : > { %v969_v52 = vpop.f32.mrf.mxu1 }
 0x2c5   : > { %v1032_v49 = vpop.f32.mrf.mxu3 }
 0x2c6   : > { %v1038_v51 = vadd.f32 %v1032_v49, %v1004_v48 }
 0x2c8   : > { %v1042_v54 = vadd.f32 %v1040_v50, %v1038_v51 }
 0x2c9   : > { %v940_v53 = vpop.f32.mrf.mxu0 }
 0x2ca   : > { %v970_v55 = vadd.f32 %v969_v52, %v940_v53  ;;  %v1045_v57 = vsel %vm1044_vm12, %v1042_v54, 0.0 }
 0x2cb   : > { %1046 = vadd.xlane.f32.xlu2 %v1045_v57 }
 0x2cc   : > { %v1005_v58 = vadd.f32 %v1001_v56, %v970_v55 }
 0x2cd   : > { %v1035_v59 = vpop.f32.mrf.mxu3 }
 0x2ce   : > { %v1039_v60 = vadd.f32 %v1035_v59, %v1005_v58 }
 0x2d0   : > { %v1043_v26 = vadd.f32 %v1041_v28, %v1039_v60 }
 0x2d2   : > { %v1048_v61 = vsel %vm1044_vm12, %v1043_v26, 0.0 }
 0x2d3   : > { %1049 = vadd.xlane.f32.xlu0 %v1048_v61 }
 0x33e   : > { %v1047_v5 = vpop.xlane.xlu2 %1046 }
 0x33f   : > { %v1058_v6 = vmul.f32 %v1057_v4, %v1047_v5 }
 0x341   : > { %v1060_v7 = vsub.f32 %v1042_v54, %v1058_v6 }
 0x343   : > { %v1062_v8 = vmul.f32 %v1060_v7, %v1060_v7 }
 0x345   : > { %v1064_v9 = vsel %vm1044_vm12, %v1062_v8, 0.0 }
 0x346   : > { %1065 = vadd.xlane.f32.xlu1 %v1064_v9  ;;  %v1050_v11 = vpop.xlane.xlu0 %1049 }
 0x347   : > { %v1059_v12 = vmul.f32 %v1057_v4, %v1050_v11 }
 0x349   : > { %v1061_v13 = vsub.f32 %v1043_v26, %v1059_v12 }
 0x34b   : > { %v1063_v14 = vmul.f32 %v1061_v13, %v1061_v13 }
 0x34d   : > { %v1067_v15 = vsel %vm1044_vm12, %v1063_v14, 0.0 }
 0x34e   : > { %1068 = vadd.xlane.f32.xlu2 %v1067_v15 }
 0x3b9   : > { %v1066_v16 = vpop.xlane.xlu1 %1065 }
 0x3ba   : > { %v1070_v17 = vmul.f32 %v1066_v16, %v1057_v4 }
 0x3bc   : > { %v1072_v18 = vadd.f32 1e-05, %v1070_v17 }
 0x3be   : > { %1326 = vrsqrt.f32 %v1072_v18  ;;  %vm1080_vm14 = vweird.f32 %v1072_v18 }
 0x3c1   : > { %v1069_v35 = vpop.xlane.xlu2 %1068 }
 0x3c2   : > { %v1071_v34 = vmul.f32 %v1069_v35, %v1057_v4 }
 0x3c4   : > { %v1327_v10 = vpop.eup %1326  ;;  %v1073_v20 = vadd.f32 1e-05, %v1071_v34 }
 0x3c5   : > { %v1075_v21 = vmul.f32 %v1327_v10, %v1072_v18  ;;  %vm1081_vm13 = vweird.f32 %v1327_v10 }
 0x3c6   : > { %1328 = vrsqrt.f32 %v1073_v20  ;;  %vm1082_vm15 = vmor %vm1080_vm14, %vm1081_vm13  ;;  %vm1090_vm2 = vweird.f32 %v1073_v20 }
 0x3c7   : > { %v1076_v22 = vmul.f32 %v1327_v10, %v1075_v21 }
 0x3c9   : > { %v1077_v23 = vmul.f32 0.5, %v1076_v22 }
 0x3cb   : > { %v1078_v24 = vsub.f32 1.5, %v1077_v23 }
 0x3cc   : > { %v1329_v25 = vpop.eup %1328 }
 0x3cd   : > { %v1079_v40 = vmul.f32 %v1327_v10, %v1078_v24  ;;  %v1085_v27 = vmul.f32 %v1329_v25, %v1073_v20  ;;  %vm1091_vm1 = vweird.f32 %v1329_v25 }
 0x3ce   : > { %vm1092_vm3 = vmor %vm1090_vm2, %vm1091_vm1 }
 0x3cf   : > { %v1083_v42 = vsel %vm1082_vm15, %v1327_v10, %v1079_v40  ;;  %v1086_v30 = vmul.f32 %v1329_v25, %v1085_v27 }
 0x3d0   : > { %v1094_v32 = vmul.f32 %v1083_v42, %v1060_v7 }
 0x3d1   : > { %v1087_v33 = vmul.f32 0.5, %v1086_v30 }
 0x3d2   : > { %v1100_v36 = vmul.f32 %v1288_v29, %v1094_v32 }
 0x3d3   : > { %v1088_v19 = vsub.f32 1.5, %v1087_v33 }
 0x3d4   : > { %v1106_v37 = vadd.f32 %v1289_v31, %v1100_v36 }
 0x3d5   : > { %v1089_v38 = vmul.f32 %v1329_v25, %v1088_v19 }
 0x3d6   : > { %1108 = vst.msk [vmem:[%s385_s26] sm:$0xff] %vm1044_vm12, %v1106_v37 }
 0x3d7   : > { %v1093_v39 = vsel %vm1092_vm3, %v1329_v25, %v1089_v38 }
 0x3d8   : > { %v1095_v41 = vmul.f32 %v1093_v39, %v1061_v13 }
 0x3da   : > { %v1101_v43 = vmul.f32 %v1288_v29, %v1095_v41 }
 0x3dc   : > { %v1107_v44 = vadd.f32 %v1289_v31, %v1101_v43 }
 0x3de   : > { %1109 = vst.msk [vmem:[%s385_s26 + $0x8] sm:$0xff] %vm1044_vm12, %v1107_v44 }
 0x3df PF: > { %s18_s27 = sadd.s32 1, %s1336_s27  }
 0x3e0   : > { %p15_p4 = scmp.ge.s32.totalorder %s18_s27, 4  }
 0x3e2   :  { %17 = sbr.rel (!%p15_p4) target bundleno = 1 (0x1), region = 97 }

</bundles_post_ra>
